<compile_context>
chip_gen: v5e
topology: v5e:2x2
jax: 0.10.0
libtpu: 0.0.40
codegen_flags: <defaults>
</compile_context>

<pallas_src>
import math
from functools import partial

import jax
import jax.numpy as jnp
from jax import lax
from jax.experimental import pallas as pl
from jax.experimental.pallas import tpu as pltpu


_F32 = 4                  # bytes per f32
_FUSED_BATCH_MAX = 32     # single-tile fused-sampling path for small batches (nb == 1)


def _ceil_to(x, m):
    return (x + m - 1) // m * m


# ------------------------------ shared math (kernel & reference) ------------------------------
def _softplus(rho):
    # Stable softplus: log1p(exp(rho)) == max(rho, 0) + log(1 + exp(-|rho|)).
    return jnp.maximum(rho, 0.0) + jnp.log(1.0 + jnp.exp(-jnp.abs(rho)))


def _sample(mu, rho, eps):
    # Gaussian reparameterization: w = mu + softplus(rho) * eps.
    return mu + _softplus(rho) * eps


def _mlp_softmax(x, w1, b1, w2, b2, w3, b3, mm_dtype):
    # relu(x@W1+b1) -> relu(.@W2+b2) -> softmax(.@W3+b3).  mm_dtype=bf16 is the
    # compute-bound lever for the v6e/v7x MXU; biases and softmax stay f32.
    def mm(a, b):
        return jnp.dot(a.astype(mm_dtype), b.astype(mm_dtype),
                       preferred_element_type=jnp.float32)

    h1 = jnp.maximum(mm(x, w1) + b1, 0.0)
    h2 = jnp.maximum(mm(h1, w2) + b2, 0.0)
    # Padded class lanes carry a -1e30 bias baked into b3 (prepare_bayesian_params), so their
    # exp() underflows to exactly 0 — no per-tile iota/where mask needed.
    logits = mm(h2, w3) + b3
    m = jnp.max(logits, axis=-1, keepdims=True)
    e = jnp.exp(logits - m)
    denom = jnp.sum(e, axis=-1, keepdims=True)
    return e * pl.reciprocal(denom, approx=True)


# --------------------------------------- Pallas kernels ---------------------------------------
def _fused_fwd_kernel(cc_ref, x_ref,
                      w1mu, w1rho, ew1, b1mu, b1rho, eb1,
                      w2mu, w2rho, ew2, b2mu, b2rho, eb2,
                      w3mu, w3rho, ew3, b3mu, b3rho, eb3,
                      o_ref, *, mm_dtype):
    """Small-batch path (one grid step): sampling + MLP + softmax fused in one kernel.
    Component selection already happened via the cc-indexed BlockSpec index_maps, so only
    the chosen mixture component was DMA'd HBM->VMEM."""
    del cc_ref
    w1 = _sample(w1mu[...], w1rho[...], ew1[...]); b1 = _sample(b1mu[...], b1rho[...], eb1[...])
    w2 = _sample(w2mu[...], w2rho[...], ew2[...]); b2 = _sample(b2mu[...], b2rho[...], eb2[...])
    w3 = _sample(w3mu[...], w3rho[...], ew3[...]); b3 = _sample(b3mu[...], b3rho[...], eb3[...])
    o_ref[...] = _mlp_softmax(x_ref[...], w1, b1, w2, b2, w3, b3, mm_dtype)


def _sampler_kernel(cc_ref,
                    w1mu, w1rho, ew1, b1mu, b1rho, eb1,
                    w2mu, w2rho, ew2, b2mu, b2rho, eb2,
                    w3mu, w3rho, ew3, b3mu, b3rho, eb3,
                    w1_o, b1_o, w2_o, b2_o, w3_o, b3_o):
    """Tiny precursor kernel for the multi-tile path: sample the posterior ONCE (instead of
    once per batch tile) and materialize ~0.6 MiB of sampled weights, cutting the main
    kernel's weight stream from mu+rho+eps (3x) down to w (1x)."""
    del cc_ref
    w1_o[...] = _sample(w1mu[...], w1rho[...], ew1[...])
    b1_o[...] = _sample(b1mu[...], b1rho[...], eb1[...])
    w2_o[...] = _sample(w2mu[...], w2rho[...], ew2[...])
    b2_o[...] = _sample(b2mu[...], b2rho[...], eb2[...])
    w3_o[...] = _sample(w3mu[...], w3rho[...], ew3[...])
    b3_o[...] = _sample(b3mu[...], b3rho[...], eb3[...])


def _mlp_kernel(x_ref, w1, b1, w2, b2, w3, b3, o_ref, *, mm_dtype):
    """Batch-tiled MLP over pre-sampled weights; 1-D 'parallel' grid (dual-TC on v7x).
    Weights use constant block indices -> DMA'd once and VMEM-resident across tiles."""
    o_ref[...] = _mlp_softmax(x_ref[...], w1[...], b1[...], w2[...], b2[...],
                              w3[...], b3[...], mm_dtype)


# ----------------------------------- VMEM budgeting helpers -----------------------------------
def _vmem_limit_or_none(est_bytes):
    """Return an explicit scoped-VMEM limit only when the (double-buffered) resident parameter
    set would not fit the default 16-32 MiB scoped limit (n_units >~ 1k); at n_units=32 the
    footprint is a few MiB so nothing is overridden.
    # TODO(synk): at very large n_units additionally single-buffer the resident weight specs
    # (pipeline_mode=pl.Buffered(1) or manual DMA) and re-derive TB against v7x's 64 MiB VMEM."""
    if est_bytes <= 24 << 20:
        return None
    return int(min(est_bytes * 5 // 4, 112 << 20))


def _fused_vmem_estimate(B, K, H_pad, C_pad):
    w = 3 * (K * H_pad + H_pad * H_pad + H_pad * C_pad + 2 * H_pad + C_pad)   # mu + rho + eps
    io = B * (K + C_pad)
    tmp = B * (K + 2 * H_pad + C_pad) + (K * H_pad + H_pad * H_pad + H_pad * C_pad)
    return (2 * (w + io) + tmp) * _F32


def _mlp_vmem_estimate(TB, K, H_pad, C_pad):
    w = K * H_pad + H_pad * H_pad + H_pad * C_pad + 2 * H_pad + C_pad         # sampled w / b
    io = TB * (K + C_pad)
    tmp = TB * (K + 2 * H_pad + C_pad)
    return (2 * (w + io) + tmp) * _F32


# -------------------------------- one-time parameter preparation ------------------------------
def prepare_bayesian_params(layers, n_classes=10):
    """ONE-TIME prep (do this at parameter init / after each optimizer update, NOT per forward):
      * transpose weights to (3, n_in, n_out) so output features land on the 128-lane axis,
      * zero-pad feature dims to 128 lanes (K = 784 stays unpadded),
      * bake a -1e30 bias into the padded class lanes of layer 3 (kills them in the softmax)."""
    H = layers[0]["w_mu"].shape[1]
    C = layers[2]["w_mu"].shape[1]
    assert C == n_classes
    K = layers[0]["w_mu"].shape[2]
    H_pad, C_pad = _ceil_to(H, 128), _ceil_to(C, 128)

    def prep(p, in_pad, out_pad, bias_pad_value=0.0):
        n_out, n_in = p["w_mu"].shape[1], p["w_mu"].shape[2]
        wpad = ((0, 0), (0, in_pad - n_in), (0, out_pad - n_out))
        w_mu = jnp.pad(jnp.transpose(p["w_mu"], (0, 2, 1)), wpad)
        w_rho = jnp.pad(jnp.transpose(p["w_rho"], (0, 2, 1)), wpad)
        bpad = ((0, 0), (0, 0), (0, out_pad - n_out))
        b_mu = jnp.pad(p["b_mu"][:, None, :], bpad, constant_values=bias_pad_value)
        b_rho = jnp.pad(p["b_rho"][:, None, :], bpad)
        return (w_mu, w_rho, b_mu, b_rho)

    return dict(
        L1=prep(layers[0], K, H_pad),
        L2=prep(layers[1], H_pad, H_pad),
        L3=prep(layers[2], H_pad, C_pad, bias_pad_value=-1e30),
    )


def prepare_eps(eps, params):
    """Per-sample prep: zero-pad the N(0,1) draws to the padded layout.  Zero pad => sampled
    padded weights are exactly 0, keeping padded lanes inert through the whole MLP."""
    K, H_pad = params["L1"][0].shape[1], params["L1"][0].shape[2]
    C_pad = params["L3"][0].shape[2]

    def pad(e_w, e_b, in_pad, out_pad):
        n_in, n_out = e_w.shape
        return (jnp.pad(e_w, ((0, in_pad - n_in), (0, out_pad - n_out))),
                jnp.pad(e_b, ((0, 0), (0, out_pad - n_out))))

    return [pad(*eps[0], K, H_pad), pad(*eps[1], H_pad, H_pad), pad(*eps[2], H_pad, C_pad)]


# ------------------------------------------- forward ------------------------------------------
def bayes_mlp_forward(x, cc, params, eps_p, *, n_classes=10, matmul_dtype=jnp.float32):
    """x: any shape reshaped to (-1, 784) f32.  cc: (3,) int32 mixture choice per layer.
    params: output of prepare_bayesian_params.  eps_p: output of prepare_eps.
    Returns softmax probabilities (B, n_classes) f32."""
    w1mu = params["L1"][0]
    K, H_pad = w1mu.shape[1], w1mu.shape[2]
    C_pad = params["L3"][0].shape[2]

    x = x.reshape(-1, K).astype(jnp.float32)     # mirrors x.view(-1, 28*28)
    B = x.shape[0]
    cc = jnp.asarray(cc, jnp.int32)

    def layer_args(Lp, Le):
        w_mu, w_rho, b_mu, b_rho = Lp
        e_w, e_b = Le
        return [w_mu, w_rho, e_w, b_mu, b_rho, e_b]

    L1 = layer_args(params["L1"], eps_p[0])
    L2 = layer_args(params["L2"], eps_p[1])
    L3 = layer_args(params["L3"], eps_p[2])
    param_args = L1 + L2 + L3

    def comp_spec(shape, layer_idx):
        # (3, d1, d2): DMA only the mixture component chosen by the scalar-prefetch cc.
        return pl.BlockSpec((None,) + shape[1:],
                            lambda i, cc_ref: (cc_ref[layer_idx], 0, 0))

    def full_spec(shape):
        # Constant block index + full-array block -> VMEM-resident across grid steps.
        return pl.BlockSpec(shape, lambda i, cc_ref: (0,) * len(shape))

    def layer_specs(arrs, layer_idx):
        w_mu, w_rho, e_w, b_mu, b_rho, e_b = arrs
        return [comp_spec(w_mu.shape, layer_idx), comp_spec(w_rho.shape, layer_idx),
                full_spec(e_w.shape),
                comp_spec(b_mu.shape, layer_idx), comp_spec(b_rho.shape, layer_idx),
                full_spec(e_b.shape)]

    param_in_specs = layer_specs(L1, 0) + layer_specs(L2, 1) + layer_specs(L3, 2)

    # ---------------- small batch: single fused tile (sampling fused in-kernel) ----------------
    if B <= _FUSED_BATCH_MAX:
        # Block batch dim == full array dim (allowed even if B % 8 != 0) -> no batch padding.
        out = pl.pallas_call(
            partial(_fused_fwd_kernel, mm_dtype=matmul_dtype),
            out_shape=jax.ShapeDtypeStruct((B, C_pad), jnp.float32),
            grid_spec=pltpu.PrefetchScalarGridSpec(
                num_scalar_prefetch=1, grid=(1,),
                in_specs=[pl.BlockSpec((B, K), lambda i, cc_ref: (i, 0))] + param_in_specs,
                out_specs=pl.BlockSpec((B, C_pad), lambda i, cc_ref: (i, 0))),
            compiler_params=pltpu.CompilerParams(
                dimension_semantics=("arbitrary",),
                vmem_limit_bytes=_vmem_limit_or_none(_fused_vmem_estimate(B, K, H_pad, C_pad))),
        )(cc, x, *param_args)
        return out[:, :n_classes]

    # ------------- larger batch: precursor sampler + batch-parallel MLP (>=2 tiles) ------------
    sampled_shapes = (
        jax.ShapeDtypeStruct((K, H_pad), jnp.float32),
        jax.ShapeDtypeStruct((1, H_pad), jnp.float32),
        jax.ShapeDtypeStruct((H_pad, H_pad), jnp.float32),
        jax.ShapeDtypeStruct((1, H_pad), jnp.float32),
        jax.ShapeDtypeStruct((H_pad, C_pad), jnp.float32),
        jax.ShapeDtypeStruct((1, C_pad), jnp.float32),
    )
    w1, b1, w2, b2, w3, b3 = pl.pallas_call(
        _sampler_kernel,
        out_shape=sampled_shapes,
        grid_spec=pltpu.PrefetchScalarGridSpec(
            num_scalar_prefetch=1, grid=(1,),
            in_specs=param_in_specs,
            out_specs=[full_spec(s.shape) for s in sampled_shapes]),
        compiler_params=pltpu.CompilerParams(dimension_semantics=("arbitrary",)),
    )(cc, *param_args)

    # >=2 grid steps so both v7x TensorCores get work; tiles up to 512 rows amortize the
    # ~0.35 us per-grid-step overhead while the x tile stays well under the VMEM budget.
    TB = min(512, _ceil_to(pl.cdiv(B, 2), 8))
    B_pad = _ceil_to(B, TB)
    nb = B_pad // TB
    x_p = x if B_pad == B else jnp.pad(x, ((0, B_pad - B), (0, 0)))

    def resident(shape):
        return pl.BlockSpec(shape, lambda i: (0,) * len(shape))

    out = pl.pallas_call(
        partial(_mlp_kernel, mm_dtype=matmul_dtype),
        out_shape=jax.ShapeDtypeStruct((B_pad, C_pad), jnp.float32),
        grid_spec=pltpu.PrefetchScalarGridSpec(
            num_scalar_prefetch=0, grid=(nb,),
            in_specs=[pl.BlockSpec((TB, K), lambda i: (i, 0)),
                      resident((K, H_pad)), resident((1, H_pad)),
                      resident((H_pad, H_pad)), resident((1, H_pad)),
                      resident((H_pad, C_pad)), resident((1, C_pad))],
            out_specs=pl.BlockSpec((TB, C_pad), lambda i: (i, 0))),
        compiler_params=pltpu.CompilerParams(
            dimension_semantics=("parallel",),
            vmem_limit_bytes=_vmem_limit_or_none(_mlp_vmem_estimate(TB, K, H_pad, C_pad))),
    )(x_p, w1, b1, w2, b2, w3, b3)
    return out[:B, :n_classes]


# -------------------------------- parameter / noise construction ------------------------------
def init_bayesian_linear(key, n_input, n_output, lower_bound=-5.0, upper_bound=-4.0):
    """Mirrors BayesianLinear.__init__: (3, n_out, n_in) mus/rhos and (3, n_out) biases."""
    k1, k2, k3, k4 = jax.random.split(key, 4)
    std = math.sqrt(2.0 / n_input)
    return dict(
        w_mu=jax.random.normal(k1, (3, n_output, n_input), jnp.float32) * std,
        w_rho=jax.random.uniform(k2, (3, n_output, n_input), jnp.float32, lower_bound, upper_bound),
        b_mu=jax.random.normal(k3, (3, n_output), jnp.float32) * std,
        b_rho=jax.random.uniform(k4, (3, n_output), jnp.float32, lower_bound, upper_bound),
    )


def make_eps(key, n_units, n_classes=10):
    """Per-forward-sample N(0,1) noise in (n_in, n_out) layout (one component per layer)."""
    k = jax.random.split(key, 6)
    return [
        (jax.random.normal(k[0], (28 * 28, n_units), jnp.float32),
         jax.random.normal(k[1], (1, n_units), jnp.float32)),
        (jax.random.normal(k[2], (n_units, n_units), jnp.float32),
         jax.random.normal(k[3], (1, n_units), jnp.float32)),
        (jax.random.normal(k[4], (n_units, n_classes), jnp.float32),
         jax.random.normal(k[5], (1, n_classes), jnp.float32)),
    ]


def reference_forward(x, cc, layers, eps):
    """Pure-JAX reference (identical math, unpadded) with the same eps / cc."""
    x = x.reshape(-1, 28 * 28)

    def lin(h, p, e, c):
        e_w, e_b = e
        w_t = jnp.transpose(p["w_mu"][c]) + _softplus(jnp.transpose(p["w_rho"][c])) * e_w
        b = p["b_mu"][c] + _softplus(p["b_rho"][c]) * e_b[0]
        return jnp.dot(h, w_t, precision=lax.Precision.HIGHEST) + b

    h1 = jnp.maximum(lin(x, layers[0], eps[0], cc[0]), 0.0)
    h2 = jnp.maximum(lin(h1, layers[1], eps[1], cc[1]), 0.0)
    return jax.nn.softmax(lin(h2, layers[2], eps[2], cc[2]), axis=-1)


# ---------------------------------------------- main ------------------------------------------
if __name__ == "__main__":
    n_units = 32
    keys = jax.random.split(jax.random.PRNGKey(0), 12)

    l1 = init_bayesian_linear(keys[6], 28 * 28, n_units)
    l2 = init_bayesian_linear(keys[7], n_units, n_units)
    l3 = init_bayesian_linear(keys[8], n_units, 10)
    layers = [l1, l2, l3]

    # One-time layout prep (would live next to the params in a training loop).
    params = prepare_bayesian_params(layers, n_classes=10)

    fwd = jax.jit(bayes_mlp_forward, static_argnames=("n_classes", "matmul_dtype"))

    def run_and_check(x_img, cc, eps, atol):
        eps_p = prepare_eps(eps, params)
        out = jax.block_until_ready(fwd(x_img, cc, params, eps_p))
        ref = reference_forward(x_img, cc, layers, eps)
        assert out.shape == (ref.shape[0], 10)
        assert bool(jnp.all(jnp.isfinite(out)))
        assert jnp.allclose(jnp.sum(out, axis=-1), 1.0, atol=5e-3)
        assert jnp.allclose(out, ref, atol=atol, rtol=0.0)
        return out, eps_p

    # Path 1: B=2 -> single fused tile (sampling fused in-kernel, no batch padding).
    x1 = jax.random.normal(keys[0], (2, 1, 28, 28), jnp.float32)
    cc1 = jax.random.randint(keys[1], (3,), 0, 3, dtype=jnp.int32)
    eps1 = make_eps(keys[2], n_units)
    run_and_check(x1, cc1, eps1, atol=2e-2)

    # Path 2: B=80 -> precursor sampler kernel + 2-step batch-parallel MLP kernel.
    x2 = jax.random.normal(keys[3], (80, 1, 28, 28), jnp.float32)
    cc2 = jax.random.randint(keys[4], (3,), 0, 3, dtype=jnp.int32)
    eps2 = make_eps(keys[5], n_units)
    out2_f32, eps2_p = run_and_check(x2, cc2, eps2, atol=2e-2)

    # bf16 matmul variant (v6e/v7x compute-bound lever); loose numeric check only.
    out2_bf16 = jax.block_until_ready(fwd(x2, cc2, params, eps2_p, matmul_dtype=jnp.bfloat16))
    assert bool(jnp.all(jnp.isfinite(out2_bf16)))
    assert jnp.allclose(jnp.sum(out2_bf16, axis=-1), 1.0, atol=5e-3)
    assert float(jnp.max(jnp.abs(out2_bf16 - out2_f32))) < 0.1

    print("KERNEL_OK")
</pallas_src>

<mosaic_0001>
module attributes {stable_mosaic.version = 11 : i64} {
  func.func @_fused_fwd_kernel(%arg0: i32, %arg1: memref<3xi32, #tpu.memory_space<smem>>, %arg2: memref<2x784xf32, #tpu.memory_space<vmem>>, %arg3: memref<1x784x128xf32, #tpu.memory_space<vmem>>, %arg4: memref<1x784x128xf32, #tpu.memory_space<vmem>>, %arg5: memref<784x128xf32, #tpu.memory_space<vmem>>, %arg6: memref<1x1x128xf32, #tpu.memory_space<vmem>>, %arg7: memref<1x1x128xf32, #tpu.memory_space<vmem>>, %arg8: memref<1x128xf32, #tpu.memory_space<vmem>>, %arg9: memref<1x128x128xf32, #tpu.memory_space<vmem>>, %arg10: memref<1x128x128xf32, #tpu.memory_space<vmem>>, %arg11: memref<128x128xf32, #tpu.memory_space<vmem>>, %arg12: memref<1x1x128xf32, #tpu.memory_space<vmem>>, %arg13: memref<1x1x128xf32, #tpu.memory_space<vmem>>, %arg14: memref<1x128xf32, #tpu.memory_space<vmem>>, %arg15: memref<1x128x128xf32, #tpu.memory_space<vmem>>, %arg16: memref<1x128x128xf32, #tpu.memory_space<vmem>>, %arg17: memref<128x128xf32, #tpu.memory_space<vmem>>, %arg18: memref<1x1x128xf32, #tpu.memory_space<vmem>>, %arg19: memref<1x1x128xf32, #tpu.memory_space<vmem>>, %arg20: memref<1x128xf32, #tpu.memory_space<vmem>>, %arg21: memref<2x128xf32, #tpu.memory_space<vmem>>) attributes {dimension_semantics = [#tpu.dimension_semantics<arbitrary>], iteration_bounds = array<i64: 1>, scalar_prefetch = 1 : i64, scratch_operands = 0 : i64, tpu.core_type = #tpu.core_type<tc>, window_params = [{transform_indices = @transform_0, window_bounds = array<i64: 2, 784>}, {transform_indices = @transform_1, window_bounds = array<i64: 1, 784, 128>}, {transform_indices = @transform_2, window_bounds = array<i64: 1, 784, 128>}, {pipeline_mode = #tpu.pipeline_mode<synchronous>, transform_indices = @transform_3, window_bounds = array<i64: 784, 128>}, {transform_indices = @transform_4, window_bounds = array<i64: 1, 1, 128>}, {transform_indices = @transform_5, window_bounds = array<i64: 1, 1, 128>}, {pipeline_mode = #tpu.pipeline_mode<synchronous>, transform_indices = @transform_6, window_bounds = array<i64: 1, 128>}, {transform_indices = @transform_7, window_bounds = array<i64: 1, 128, 128>}, {transform_indices = @transform_8, window_bounds = array<i64: 1, 128, 128>}, {pipeline_mode = #tpu.pipeline_mode<synchronous>, transform_indices = @transform_9, window_bounds = array<i64: 128, 128>}, {transform_indices = @transform_10, window_bounds = array<i64: 1, 1, 128>}, {transform_indices = @transform_11, window_bounds = array<i64: 1, 1, 128>}, {pipeline_mode = #tpu.pipeline_mode<synchronous>, transform_indices = @transform_12, window_bounds = array<i64: 1, 128>}, {transform_indices = @transform_13, window_bounds = array<i64: 1, 128, 128>}, {transform_indices = @transform_14, window_bounds = array<i64: 1, 128, 128>}, {pipeline_mode = #tpu.pipeline_mode<synchronous>, transform_indices = @transform_15, window_bounds = array<i64: 128, 128>}, {transform_indices = @transform_16, window_bounds = array<i64: 1, 1, 128>}, {transform_indices = @transform_17, window_bounds = array<i64: 1, 1, 128>}, {pipeline_mode = #tpu.pipeline_mode<synchronous>, transform_indices = @transform_18, window_bounds = array<i64: 1, 128>}, {transform_indices = @transform_19, window_bounds = array<i64: 2, 128>}]} {
    %c0 = arith.constant 0 : index
    %c0_0 = arith.constant 0 : index
    %c0_1 = arith.constant 0 : index
    %0 = vector.load %arg3[%c0, %c0_0, %c0_1] : memref<1x784x128xf32, #tpu.memory_space<vmem>>, vector<1x784x128xf32>
    %1 = vector.shape_cast %0 : vector<1x784x128xf32> to vector<784x128xf32>
    %c0_2 = arith.constant 0 : index
    %c0_3 = arith.constant 0 : index
    %c0_4 = arith.constant 0 : index
    %2 = vector.load %arg4[%c0_2, %c0_3, %c0_4] : memref<1x784x128xf32, #tpu.memory_space<vmem>>, vector<1x784x128xf32>
    %3 = vector.shape_cast %2 : vector<1x784x128xf32> to vector<784x128xf32>
    %c0_5 = arith.constant 0 : index
    %c0_6 = arith.constant 0 : index
    %4 = vector.load %arg5[%c0_5, %c0_6] : memref<784x128xf32, #tpu.memory_space<vmem>>, vector<784x128xf32>
    %cst = arith.constant 0.000000e+00 : f32
    %5 = vector.broadcast %cst : f32 to vector<784x128xf32>
    %6 = arith.maximumf %3, %5 : vector<784x128xf32>
    %7 = math.absf %3 : vector<784x128xf32>
    %cst_7 = arith.constant 0.000000e+00 : f32
    %8 = vector.broadcast %cst_7 : f32 to vector<784x128xf32>
    %9 = arith.subf %8, %7 : vector<784x128xf32>
    %10 = math.exp %9 : vector<784x128xf32>
    %cst_8 = arith.constant 1.000000e+00 : f32
    %11 = vector.broadcast %cst_8 : f32 to vector<784x128xf32>
    %12 = arith.addf %11, %10 : vector<784x128xf32>
    %13 = math.log %12 : vector<784x128xf32>
    %14 = arith.addf %6, %13 : vector<784x128xf32>
    %15 = arith.mulf %14, %4 : vector<784x128xf32>
    %16 = arith.addf %1, %15 : vector<784x128xf32>
    %c0_9 = arith.constant 0 : index
    %c0_10 = arith.constant 0 : index
    %c0_11 = arith.constant 0 : index
    %17 = vector.load %arg6[%c0_9, %c0_10, %c0_11] : memref<1x1x128xf32, #tpu.memory_space<vmem>>, vector<1x1x128xf32>
    %18 = vector.shape_cast %17 : vector<1x1x128xf32> to vector<1x128xf32>
    %c0_12 = arith.constant 0 : index
    %c0_13 = arith.constant 0 : index
    %c0_14 = arith.constant 0 : index
    %19 = vector.load %arg7[%c0_12, %c0_13, %c0_14] : memref<1x1x128xf32, #tpu.memory_space<vmem>>, vector<1x1x128xf32>
    %20 = vector.shape_cast %19 : vector<1x1x128xf32> to vector<1x128xf32>
    %c0_15 = arith.constant 0 : index
    %c0_16 = arith.constant 0 : index
    %21 = vector.load %arg8[%c0_15, %c0_16] : memref<1x128xf32, #tpu.memory_space<vmem>>, vector<1x128xf32>
    %cst_17 = arith.constant 0.000000e+00 : f32
    %22 = vector.broadcast %cst_17 : f32 to vector<1x128xf32>
    %23 = arith.maximumf %20, %22 : vector<1x128xf32>
    %24 = math.absf %20 : vector<1x128xf32>
    %cst_18 = arith.constant 0.000000e+00 : f32
    %25 = vector.broadcast %cst_18 : f32 to vector<1x128xf32>
    %26 = arith.subf %25, %24 : vector<1x128xf32>
    %27 = math.exp %26 : vector<1x128xf32>
    %cst_19 = arith.constant 1.000000e+00 : f32
    %28 = vector.broadcast %cst_19 : f32 to vector<1x128xf32>
    %29 = arith.addf %28, %27 : vector<1x128xf32>
    %30 = math.log %29 : vector<1x128xf32>
    %31 = arith.addf %23, %30 : vector<1x128xf32>
    %32 = arith.mulf %31, %21 : vector<1x128xf32>
    %33 = arith.addf %18, %32 : vector<1x128xf32>
    %c0_20 = arith.constant 0 : index
    %c0_21 = arith.constant 0 : index
    %c0_22 = arith.constant 0 : index
    %34 = vector.load %arg9[%c0_20, %c0_21, %c0_22] : memref<1x128x128xf32, #tpu.memory_space<vmem>>, vector<1x128x128xf32>
    %35 = vector.shape_cast %34 : vector<1x128x128xf32> to vector<128x128xf32>
    %c0_23 = arith.constant 0 : index
    %c0_24 = arith.constant 0 : index
    %c0_25 = arith.constant 0 : index
    %36 = vector.load %arg10[%c0_23, %c0_24, %c0_25] : memref<1x128x128xf32, #tpu.memory_space<vmem>>, vector<1x128x128xf32>
    %37 = vector.shape_cast %36 : vector<1x128x128xf32> to vector<128x128xf32>
    %c0_26 = arith.constant 0 : index
    %c0_27 = arith.constant 0 : index
    %38 = vector.load %arg11[%c0_26, %c0_27] : memref<128x128xf32, #tpu.memory_space<vmem>>, vector<128x128xf32>
    %cst_28 = arith.constant 0.000000e+00 : f32
    %39 = vector.broadcast %cst_28 : f32 to vector<128x128xf32>
    %40 = arith.maximumf %37, %39 : vector<128x128xf32>
    %41 = math.absf %37 : vector<128x128xf32>
    %cst_29 = arith.constant 0.000000e+00 : f32
    %42 = vector.broadcast %cst_29 : f32 to vector<128x128xf32>
    %43 = arith.subf %42, %41 : vector<128x128xf32>
    %44 = math.exp %43 : vector<128x128xf32>
    %cst_30 = arith.constant 1.000000e+00 : f32
    %45 = vector.broadcast %cst_30 : f32 to vector<128x128xf32>
    %46 = arith.addf %45, %44 : vector<128x128xf32>
    %47 = math.log %46 : vector<128x128xf32>
    %48 = arith.addf %40, %47 : vector<128x128xf32>
    %49 = arith.mulf %48, %38 : vector<128x128xf32>
    %50 = arith.addf %35, %49 : vector<128x128xf32>
    %c0_31 = arith.constant 0 : index
    %c0_32 = arith.constant 0 : index
    %c0_33 = arith.constant 0 : index
    %51 = vector.load %arg12[%c0_31, %c0_32, %c0_33] : memref<1x1x128xf32, #tpu.memory_space<vmem>>, vector<1x1x128xf32>
    %52 = vector.shape_cast %51 : vector<1x1x128xf32> to vector<1x128xf32>
    %c0_34 = arith.constant 0 : index
    %c0_35 = arith.constant 0 : index
    %c0_36 = arith.constant 0 : index
    %53 = vector.load %arg13[%c0_34, %c0_35, %c0_36] : memref<1x1x128xf32, #tpu.memory_space<vmem>>, vector<1x1x128xf32>
    %54 = vector.shape_cast %53 : vector<1x1x128xf32> to vector<1x128xf32>
    %c0_37 = arith.constant 0 : index
    %c0_38 = arith.constant 0 : index
    %55 = vector.load %arg14[%c0_37, %c0_38] : memref<1x128xf32, #tpu.memory_space<vmem>>, vector<1x128xf32>
    %cst_39 = arith.constant 0.000000e+00 : f32
    %56 = vector.broadcast %cst_39 : f32 to vector<1x128xf32>
    %57 = arith.maximumf %54, %56 : vector<1x128xf32>
    %58 = math.absf %54 : vector<1x128xf32>
    %cst_40 = arith.constant 0.000000e+00 : f32
    %59 = vector.broadcast %cst_40 : f32 to vector<1x128xf32>
    %60 = arith.subf %59, %58 : vector<1x128xf32>
    %61 = math.exp %60 : vector<1x128xf32>
    %cst_41 = arith.constant 1.000000e+00 : f32
    %62 = vector.broadcast %cst_41 : f32 to vector<1x128xf32>
    %63 = arith.addf %62, %61 : vector<1x128xf32>
    %64 = math.log %63 : vector<1x128xf32>
    %65 = arith.addf %57, %64 : vector<1x128xf32>
    %66 = arith.mulf %65, %55 : vector<1x128xf32>
    %67 = arith.addf %52, %66 : vector<1x128xf32>
    %c0_42 = arith.constant 0 : index
    %c0_43 = arith.constant 0 : index
    %c0_44 = arith.constant 0 : index
    %68 = vector.load %arg15[%c0_42, %c0_43, %c0_44] : memref<1x128x128xf32, #tpu.memory_space<vmem>>, vector<1x128x128xf32>
    %69 = vector.shape_cast %68 : vector<1x128x128xf32> to vector<128x128xf32>
    %c0_45 = arith.constant 0 : index
    %c0_46 = arith.constant 0 : index
    %c0_47 = arith.constant 0 : index
    %70 = vector.load %arg16[%c0_45, %c0_46, %c0_47] : memref<1x128x128xf32, #tpu.memory_space<vmem>>, vector<1x128x128xf32>
    %71 = vector.shape_cast %70 : vector<1x128x128xf32> to vector<128x128xf32>
    %c0_48 = arith.constant 0 : index
    %c0_49 = arith.constant 0 : index
    %72 = vector.load %arg17[%c0_48, %c0_49] : memref<128x128xf32, #tpu.memory_space<vmem>>, vector<128x128xf32>
    %cst_50 = arith.constant 0.000000e+00 : f32
    %73 = vector.broadcast %cst_50 : f32 to vector<128x128xf32>
    %74 = arith.maximumf %71, %73 : vector<128x128xf32>
    %75 = math.absf %71 : vector<128x128xf32>
    %cst_51 = arith.constant 0.000000e+00 : f32
    %76 = vector.broadcast %cst_51 : f32 to vector<128x128xf32>
    %77 = arith.subf %76, %75 : vector<128x128xf32>
    %78 = math.exp %77 : vector<128x128xf32>
    %cst_52 = arith.constant 1.000000e+00 : f32
    %79 = vector.broadcast %cst_52 : f32 to vector<128x128xf32>
    %80 = arith.addf %79, %78 : vector<128x128xf32>
    %81 = math.log %80 : vector<128x128xf32>
    %82 = arith.addf %74, %81 : vector<128x128xf32>
    %83 = arith.mulf %82, %72 : vector<128x128xf32>
    %84 = arith.addf %69, %83 : vector<128x128xf32>
    %c0_53 = arith.constant 0 : index
    %c0_54 = arith.constant 0 : index
    %c0_55 = arith.constant 0 : index
    %85 = vector.load %arg18[%c0_53, %c0_54, %c0_55] : memref<1x1x128xf32, #tpu.memory_space<vmem>>, vector<1x1x128xf32>
    %86 = vector.shape_cast %85 : vector<1x1x128xf32> to vector<1x128xf32>
    %c0_56 = arith.constant 0 : index
    %c0_57 = arith.constant 0 : index
    %c0_58 = arith.constant 0 : index
    %87 = vector.load %arg19[%c0_56, %c0_57, %c0_58] : memref<1x1x128xf32, #tpu.memory_space<vmem>>, vector<1x1x128xf32>
    %88 = vector.shape_cast %87 : vector<1x1x128xf32> to vector<1x128xf32>
    %c0_59 = arith.constant 0 : index
    %c0_60 = arith.constant 0 : index
    %89 = vector.load %arg20[%c0_59, %c0_60] : memref<1x128xf32, #tpu.memory_space<vmem>>, vector<1x128xf32>
    %cst_61 = arith.constant 0.000000e+00 : f32
    %90 = vector.broadcast %cst_61 : f32 to vector<1x128xf32>
    %91 = arith.maximumf %88, %90 : vector<1x128xf32>
    %92 = math.absf %88 : vector<1x128xf32>
    %cst_62 = arith.constant 0.000000e+00 : f32
    %93 = vector.broadcast %cst_62 : f32 to vector<1x128xf32>
    %94 = arith.subf %93, %92 : vector<1x128xf32>
    %95 = math.exp %94 : vector<1x128xf32>
    %cst_63 = arith.constant 1.000000e+00 : f32
    %96 = vector.broadcast %cst_63 : f32 to vector<1x128xf32>
    %97 = arith.addf %96, %95 : vector<1x128xf32>
    %98 = math.log %97 : vector<1x128xf32>
    %99 = arith.addf %91, %98 : vector<1x128xf32>
    %100 = arith.mulf %99, %89 : vector<1x128xf32>
    %101 = arith.addf %86, %100 : vector<1x128xf32>
    %c0_64 = arith.constant 0 : index
    %c0_65 = arith.constant 0 : index
    %102 = vector.load %arg2[%c0_64, %c0_65] : memref<2x784xf32, #tpu.memory_space<vmem>>, vector<2x784xf32>
    %cst_66 = arith.constant dense<0.000000e+00> : vector<2x128xf32>
    %103 = tpu.matmul %102, %16, %cst_66 {dimension_numbers = #tpu.dot_dimension_numbers<[1], [0], [0], [1], [0, 0, 1, 1], [], []>} : vector<2x784xf32>, vector<784x128xf32>, vector<2x128xf32> -> vector<2x128xf32>
    %104 = vector.broadcast %33 : vector<1x128xf32> to vector<2x128xf32>
    %105 = arith.addf %103, %104 : vector<2x128xf32>
    %cst_67 = arith.constant 0.000000e+00 : f32
    %106 = vector.broadcast %cst_67 : f32 to vector<2x128xf32>
    %107 = arith.maximumf %105, %106 : vector<2x128xf32>
    %cst_68 = arith.constant dense<0.000000e+00> : vector<2x128xf32>
    %108 = tpu.matmul %107, %50, %cst_68 {dimension_numbers = #tpu.dot_dimension_numbers<[1], [0], [0], [1], [0, 0, 1, 1], [], []>} : vector<2x128xf32>, vector<128x128xf32>, vector<2x128xf32> -> vector<2x128xf32>
    %109 = vector.broadcast %67 : vector<1x128xf32> to vector<2x128xf32>
    %110 = arith.addf %108, %109 : vector<2x128xf32>
    %cst_69 = arith.constant 0.000000e+00 : f32
    %111 = vector.broadcast %cst_69 : f32 to vector<2x128xf32>
    %112 = arith.maximumf %110, %111 : vector<2x128xf32>
    %cst_70 = arith.constant dense<0.000000e+00> : vector<2x128xf32>
    %113 = tpu.matmul %112, %84, %cst_70 {dimension_numbers = #tpu.dot_dimension_numbers<[1], [0], [0], [1], [0, 0, 1, 1], [], []>} : vector<2x128xf32>, vector<128x128xf32>, vector<2x128xf32> -> vector<2x128xf32>
    %114 = vector.broadcast %101 : vector<1x128xf32> to vector<2x128xf32>
    %115 = arith.addf %113, %114 : vector<2x128xf32>
    %cst_71 = arith.constant dense<0xFF800000> : vector<2xf32>
    %116 = vector.multi_reduction <maximumf>, %115, %cst_71 [1] : vector<2x128xf32> to vector<2xf32>
    %117 = vector.shape_cast %116 : vector<2xf32> to vector<2x1xf32>
    %118 = vector.broadcast %117 : vector<2x1xf32> to vector<2x128xf32>
    %119 = arith.subf %115, %118 : vector<2x128xf32>
    %120 = math.exp %119 : vector<2x128xf32>
    %cst_72 = arith.constant dense<0.000000e+00> : vector<2xf32>
    %121 = vector.multi_reduction <add>, %120, %cst_72 [1] : vector<2x128xf32> to vector<2xf32>
    %122 = vector.shape_cast %121 : vector<2xf32> to vector<2x1xf32>
    %123 = tpu.reciprocal %122 {approx = true} : vector<2x1xf32> -> vector<2x1xf32>
    %124 = vector.broadcast %123 : vector<2x1xf32> to vector<2x128xf32>
    %125 = arith.mulf %120, %124 : vector<2x128xf32>
    %c0_73 = arith.constant 0 : index
    %c0_74 = arith.constant 0 : index
    %126 = vector.load %arg21[%c0_73, %c0_74] : memref<2x128xf32, #tpu.memory_space<vmem>>, vector<2x128xf32>
    tpu.vector_store %arg21[%c0_73, %c0_74], %125 {strides = array<i32>} : memref<2x128xf32, #tpu.memory_space<vmem>>, vector<2x128xf32>,
    return
  }
  func.func @transform_0(%arg0: i32, %arg1: memref<3xi32, #tpu.memory_space<smem>>) -> (i32, i32) {
    %c0_i32 = arith.constant 0 : i32
    %c0_i32_0 = arith.constant 0 : i32
    return %arg0, %c0_i32 : i32, i32
  }
  func.func @transform_1(%arg0: i32, %arg1: memref<3xi32, #tpu.memory_space<smem>>) -> (i32, i32, i32) {
    %c0 = arith.constant 0 : index
    %0 = memref.load %arg1[%c0] : memref<3xi32, #tpu.memory_space<smem>>
    %c0_i32 = arith.constant 0 : i32
    %c0_i32_0 = arith.constant 0 : i32
    %c0_i32_1 = arith.constant 0 : i32
    return %0, %c0_i32, %c0_i32_0 : i32, i32, i32
  }
  func.func @transform_2(%arg0: i32, %arg1: memref<3xi32, #tpu.memory_space<smem>>) -> (i32, i32, i32) {
    %c0 = arith.constant 0 : index
    %0 = memref.load %arg1[%c0] : memref<3xi32, #tpu.memory_space<smem>>
    %c0_i32 = arith.constant 0 : i32
    %c0_i32_0 = arith.constant 0 : i32
    %c0_i32_1 = arith.constant 0 : i32
    return %0, %c0_i32, %c0_i32_0 : i32, i32, i32
  }
  func.func @transform_3(%arg0: i32, %arg1: memref<3xi32, #tpu.memory_space<smem>>) -> (i32, i32) {
    %c0_i32 = arith.constant 0 : i32
    %c0_i32_0 = arith.constant 0 : i32
    %c0_i32_1 = arith.constant 0 : i32
    return %c0_i32, %c0_i32_0 : i32, i32
  }
  func.func @transform_4(%arg0: i32, %arg1: memref<3xi32, #tpu.memory_space<smem>>) -> (i32, i32, i32) {
    %c0 = arith.constant 0 : index
    %0 = memref.load %arg1[%c0] : memref<3xi32, #tpu.memory_space<smem>>
    %c0_i32 = arith.constant 0 : i32
    %c0_i32_0 = arith.constant 0 : i32
    %c0_i32_1 = arith.constant 0 : i32
    return %0, %c0_i32, %c0_i32_0 : i32, i32, i32
  }
  func.func @transform_5(%arg0: i32, %arg1: memref<3xi32, #tpu.memory_space<smem>>) -> (i32, i32, i32) {
    %c0 = arith.constant 0 : index
    %0 = memref.load %arg1[%c0] : memref<3xi32, #tpu.memory_space<smem>>
    %c0_i32 = arith.constant 0 : i32
    %c0_i32_0 = arith.constant 0 : i32
    %c0_i32_1 = arith.constant 0 : i32
    return %0, %c0_i32, %c0_i32_0 : i32, i32, i32
  }
  func.func @transform_6(%arg0: i32, %arg1: memref<3xi32, #tpu.memory_space<smem>>) -> (i32, i32) {
    %c0_i32 = arith.constant 0 : i32
    %c0_i32_0 = arith.constant 0 : i32
    %c0_i32_1 = arith.constant 0 : i32
    return %c0_i32, %c0_i32_0 : i32, i32
  }
  func.func @transform_7(%arg0: i32, %arg1: memref<3xi32, #tpu.memory_space<smem>>) -> (i32, i32, i32) {
    %c1 = arith.constant 1 : index
    %0 = memref.load %arg1[%c1] : memref<3xi32, #tpu.memory_space<smem>>
    %c0_i32 = arith.constant 0 : i32
    %c0_i32_0 = arith.constant 0 : i32
    %c0_i32_1 = arith.constant 0 : i32
    return %0, %c0_i32, %c0_i32_0 : i32, i32, i32
  }
  func.func @transform_8(%arg0: i32, %arg1: memref<3xi32, #tpu.memory_space<smem>>) -> (i32, i32, i32) {
    %c1 = arith.constant 1 : index
    %0 = memref.load %arg1[%c1] : memref<3xi32, #tpu.memory_space<smem>>
    %c0_i32 = arith.constant 0 : i32
    %c0_i32_0 = arith.constant 0 : i32
    %c0_i32_1 = arith.constant 0 : i32
    return %0, %c0_i32, %c0_i32_0 : i32, i32, i32
  }
  func.func @transform_9(%arg0: i32, %arg1: memref<3xi32, #tpu.memory_space<smem>>) -> (i32, i32) {
    %c0_i32 = arith.constant 0 : i32
    %c0_i32_0 = arith.constant 0 : i32
    %c0_i32_1 = arith.constant 0 : i32
    return %c0_i32, %c0_i32_0 : i32, i32
  }
  func.func @transform_10(%arg0: i32, %arg1: memref<3xi32, #tpu.memory_space<smem>>) -> (i32, i32, i32) {
    %c1 = arith.constant 1 : index
    %0 = memref.load %arg1[%c1] : memref<3xi32, #tpu.memory_space<smem>>
    %c0_i32 = arith.constant 0 : i32
    %c0_i32_0 = arith.constant 0 : i32
    %c0_i32_1 = arith.constant 0 : i32
    return %0, %c0_i32, %c0_i32_0 : i32, i32, i32
  }
  func.func @transform_11(%arg0: i32, %arg1: memref<3xi32, #tpu.memory_space<smem>>) -> (i32, i32, i32) {
    %c1 = arith.constant 1 : index
    %0 = memref.load %arg1[%c1] : memref<3xi32, #tpu.memory_space<smem>>
    %c0_i32 = arith.constant 0 : i32
    %c0_i32_0 = arith.constant 0 : i32
    %c0_i32_1 = arith.constant 0 : i32
    return %0, %c0_i32, %c0_i32_0 : i32, i32, i32
  }
  func.func @transform_12(%arg0: i32, %arg1: memref<3xi32, #tpu.memory_space<smem>>) -> (i32, i32) {
    %c0_i32 = arith.constant 0 : i32
    %c0_i32_0 = arith.constant 0 : i32
    %c0_i32_1 = arith.constant 0 : i32
    return %c0_i32, %c0_i32_0 : i32, i32
  }
  func.func @transform_13(%arg0: i32, %arg1: memref<3xi32, #tpu.memory_space<smem>>) -> (i32, i32, i32) {
    %c2 = arith.constant 2 : index
    %0 = memref.load %arg1[%c2] : memref<3xi32, #tpu.memory_space<smem>>
    %c0_i32 = arith.constant 0 : i32
    %c0_i32_0 = arith.constant 0 : i32
    %c0_i32_1 = arith.constant 0 : i32
    return %0, %c0_i32, %c0_i32_0 : i32, i32, i32
  }
  func.func @transform_14(%arg0: i32, %arg1: memref<3xi32, #tpu.memory_space<smem>>) -> (i32, i32, i32) {
    %c2 = arith.constant 2 : index
    %0 = memref.load %arg1[%c2] : memref<3xi32, #tpu.memory_space<smem>>
    %c0_i32 = arith.constant 0 : i32
    %c0_i32_0 = arith.constant 0 : i32
    %c0_i32_1 = arith.constant 0 : i32
    return %0, %c0_i32, %c0_i32_0 : i32, i32, i32
  }
  func.func @transform_15(%arg0: i32, %arg1: memref<3xi32, #tpu.memory_space<smem>>) -> (i32, i32) {
    %c0_i32 = arith.constant 0 : i32
    %c0_i32_0 = arith.constant 0 : i32
    %c0_i32_1 = arith.constant 0 : i32
    return %c0_i32, %c0_i32_0 : i32, i32
  }
  func.func @transform_16(%arg0: i32, %arg1: memref<3xi32, #tpu.memory_space<smem>>) -> (i32, i32, i32) {
    %c2 = arith.constant 2 : index
    %0 = memref.load %arg1[%c2] : memref<3xi32, #tpu.memory_space<smem>>
    %c0_i32 = arith.constant 0 : i32
    %c0_i32_0 = arith.constant 0 : i32
    %c0_i32_1 = arith.constant 0 : i32
    return %0, %c0_i32, %c0_i32_0 : i32, i32, i32
  }
  func.func @transform_17(%arg0: i32, %arg1: memref<3xi32, #tpu.memory_space<smem>>) -> (i32, i32, i32) {
    %c2 = arith.constant 2 : index
    %0 = memref.load %arg1[%c2] : memref<3xi32, #tpu.memory_space<smem>>
    %c0_i32 = arith.constant 0 : i32
    %c0_i32_0 = arith.constant 0 : i32
    %c0_i32_1 = arith.constant 0 : i32
    return %0, %c0_i32, %c0_i32_0 : i32, i32, i32
  }
  func.func @transform_18(%arg0: i32, %arg1: memref<3xi32, #tpu.memory_space<smem>>) -> (i32, i32) {
    %c0_i32 = arith.constant 0 : i32
    %c0_i32_0 = arith.constant 0 : i32
    %c0_i32_1 = arith.constant 0 : i32
    return %c0_i32, %c0_i32_0 : i32, i32
  }
  func.func @transform_19(%arg0: i32, %arg1: memref<3xi32, #tpu.memory_space<smem>>) -> (i32, i32) {
    %c0_i32 = arith.constant 0 : i32
    %c0_i32_0 = arith.constant 0 : i32
    return %arg0, %c0_i32 : i32, i32
  }
}

</mosaic_0001>

<bundles_post_ra>
// kernel: bayes_mlp_forward.1
= control target key start
LH: loop header
LB: loop body
LE: loop exit
PB: predicated region body
PF: predicated region fallthrough
CT: control target
= control target key end

     0   :  { %s3590_s24 = smov [#allocation3]   ;;  %s4491_s0 = inlined_call_operand.hbm [shape: s32[3], index: 0, kind: input, shape index: {}]   ;;  %s4492_s1 = inlined_call_operand.vmem [shape: f32[2,784], index: 1, kind: input, shape index: {}]   ;;  %s4493_s2 = inlined_call_operand.hbm [shape: f32[3,784,128], index: 2, kind: input, shape index: {}]   ;;  %s4494_s3 = inlined_call_operand.hbm [shape: f32[3,784,128], index: 3, kind: input, shape index: {}]   ;;  %s4495_s4 = inlined_call_operand.hbm [shape: f32[784,128], index: 4, kind: input, shape index: {}]   ;;  %s4496_s5 = inlined_call_operand.hbm [shape: f32[3,1,128], index: 5, kind: input, shape index: {}]   ;;  %s4497_s6 = inlined_call_operand.hbm [shape: f32[3,1,128], index: 6, kind: input, shape index: {}]   ;;  %s4498_s7 = inlined_call_operand.hbm [shape: f32[1,128], index: 7, kind: input, shape index: {}]   ;;  %s4499_s8 = inlined_call_operand.hbm [shape: f32[3,128,128], index: 8, kind: input, shape index: {}]   ;;  %s4500_s9 = inlined_call_operand.hbm [shape: f32[3,128,128], index: 9, kind: input, shape index: {}]   ;;  %s4501_s10 = inlined_call_operand.hbm [shape: f32[128,128], index: 10, kind: input, shape index: {}]   ;;  %s4502_s11 = inlined_call_operand.hbm [shape: f32[3,1,128], index: 11, kind: input, shape index: {}]   ;;  %s4503_s12 = inlined_call_operand.hbm [shape: f32[3,1,128], index: 12, kind: input, shape index: {}]   ;;  %s4504_s13 = inlined_call_operand.hbm [shape: f32[1,128], index: 13, kind: input, shape index: {}]   ;;  %s4505_s14 = inlined_call_operand.hbm [shape: f32[3,128,128], index: 14, kind: input, shape index: {}]   ;;  %s4506_s15 = inlined_call_operand.hbm [shape: f32[3,128,128], index: 15, kind: input, shape index: {}]   ;;  %s4507_s16 = inlined_call_operand.hbm [shape: f32[128,128], index: 16, kind: input, shape index: {}]   ;;  %s4508_s17 = inlined_call_operand.hbm [shape: f32[3,1,128], index: 17, kind: input, shape index: {}]   ;;  %s4509_s18 = inlined_call_operand.hbm [shape: f32[3,1,128], index: 18, kind: input, shape index: {}]   ;;  %s4510_s19 = inlined_call_operand.hbm [shape: f32[1,128], index: 19, kind: input, shape index: {}]   ;;  %s4511_s20 = inlined_call_operand.hbm [shape: f32[2,128], index: 20, kind: output, shape index: {}]  }
   0x1   :  { %4522 = sst [smem:[#allocation49_spill]] %s4491_s0 }
   0x2   :  { %4523 = sst [smem:[#allocation50_spill]] %s4492_s1 }
   0x3   :  { %4524 = sst [smem:[#allocation51_spill]] %s4493_s2 }
   0x4   :  { %4525 = sst [smem:[#allocation52_spill]] %s4494_s3 }
   0x5   :  { %4526 = sst [smem:[#allocation53_spill]] %s4495_s4 }
   0x6   :  { %4527 = sst [smem:[#allocation54_spill]] %s4505_s14 }
   0x7   :  { %4528 = sst [smem:[#allocation55_spill]] %s4509_s18 }
   0x8   :  { %4529 = sst [smem:[#allocation56_spill]] %s4510_s19 }
   0x9   :  { %4530 = sst [smem:[#allocation57_spill]] %s4511_s20 }
   0xa   :  { %s4531_s23 = sld [smem:[#allocation49_spill]] }
  0x10   :  { %s26_s14 = sshll.u32 %s4531_s23, 4  ;;  %s27_s14 = int_to_ptr.hbm [resolvable:$true] %s26_s14 }
  0x11   :  { %29 = dma.hbm_to_smem %s27_s14, 16, %s3590_s24, [#allocation2] }
  0x12   :  { %3566 = dma.done.wait [#allocation2], 16 }
  0x13   :  { %3567 = vsyncadd [#allocation2], 4294967280 }
  0x14   :  { %32 = sfence }
  0x15   :  { %33 = vsyncpa [#allocation5], 0 }
  0x16   :  { %34 = vsyncpa [#allocation8], 0 }
  0x17   :  { %35 = vsyncpa [#allocation11], 0 }
  0x18   :  { %36 = vsyncpa [#allocation14], 0 }
  0x19   :  { %37 = vsyncpa [#allocation17], 0 }
  0x1a   :  { %38 = vsyncpa [#allocation20], 0 }
  0x1b   :  { %39 = vsyncpa [#allocation23], 0 }
  0x1c   :  { %40 = vsyncpa [#allocation26], 0 }
  0x1d   :  { %41 = vsyncpa [#allocation29], 0 }
  0x1e   :  { %42 = vsyncpa [#allocation32], 0 }
  0x1f   :  { %43 = vsyncpa [#allocation6], 0  ;;  %s3720_s2 = sld [smem:[#allocation3]]  ;;  %s3591_s14 = smov [#allocation7]  }
  0x20   :  { %s3722_s25 = sshll.u32 %s3591_s14, 4  ;;  %s3592_s3 = smov [#allocation10]  }
  0x21   :  { %4532 = sst [smem:[#allocation46_spill]] %s3722_s25  ;;  %s3725_s26 = sshll.u32 %s3592_s3, 4 }
  0x22   :  { %4533 = sst [smem:[#allocation47_spill]] %s3725_s26  ;;  %s124_s4 = sshll.u32 %s4498_s7, 4  ;;  %s3731_s4 = int_to_ptr.hbm [resolvable:$true] %s124_s4 }
  0x23   :  { %s3593_s29 = smov [#allocation13]   ;;  %s3735_s0 = sld [smem:[#allocation3 + $0x1]] }
  0x24   :  { %s3733_s30 = sshll.u32 %s3593_s29, 4  ;;  %s4535_s3 = sld [smem:[#allocation52_spill]] }
  0x25   :  { %4534 = sst [smem:[#allocation48_spill]] %s3733_s30  ;;  %s4519_s21 = smul.u32 784, %s3720_s2 }
  0x26   :  { %s98_s23 = scalar_lea.hbm %s4496_s5, %s3720_s2  ;;  %s3594_s29 = smov [#allocation16]  }
  0x27   :  { %s3742_s24 = sshll.u32 %s98_s23, 4  ;;  %s3751_s26 = sshll.u32 %s3594_s29, 4  ;;  %s101_s24 = int_to_ptr.hbm [resolvable:$true] %s3742_s24  ;;  %s158_s26 = int_to_ptr.vmem [resolvable:$true] %s3751_s26 }
  0x2a   :  { %s70_s27 = scalar_lea.hbm %s4535_s3, %s4519_s21  ;;  %s3114_s23 = scalar_lea.hbm %s4535_s3, 2352 }
  0x2b   :  { %s71_s28 = sshll.u32 %s70_s27, 4  ;;  %s72_s28 = int_to_ptr.hbm [resolvable:$true] %s71_s28 }
  0x2c   :  { %s3110_s25 = sshra.s32 %s72_s28, 4  ;;  %s3111_s25 = int_to_ptr.hbm [resolvable:$true] %s3110_s25 }
  0x2d   :  { %s3112_s20 = scalar_lea.hbm %s3111_s25, 784  ;;  %p3115_p1 = scmp.lt.s32.totalorder %s3111_s25, %s4535_s3 }
  0x2e   :  { %p3113_p0 = scmp.ne.s32.totalorder %s3111_s25, %s3112_s20  ;;  %p3116_p2 = scmp.lt.s32.totalorder %s3114_s23, %s3112_s20 }
  0x30   :  { %p3117_p3 = por %p3116_p2, %p3115_p1 }
  0x32   :  { %p3118_p4 = pnand %p3117_p3, %p3113_p0 }
  0x34   :  { %3121 = shalt.err (!%p3118_p4)
}
  0x35   :  { %s3595_s14 = smov 128   ;;  %s4536_s7 = sld [smem:[#allocation46_spill]] }
  0x36   :  { %s3596_s27 = smov 8   ;;  %s3134_s21 = sshra.s32 %s101_s24, 4  ;;  %s3135_s21 = int_to_ptr.hbm [resolvable:$true] %s3134_s21 }
  0x37   :  { %s3136_s1 = scalar_lea.hbm %s3135_s21, 1  ;;  %s3138_s19 = scalar_lea.hbm %s4496_s5, 3 }
  0x38   :  { %p3137_p5 = scmp.ne.s32.totalorder %s3135_s21, %s3136_s1  ;;  %p3139_p6 = scmp.lt.s32.totalorder %s3135_s21, %s4496_s5 }
  0x39   :  { %p3140_p7 = scmp.lt.s32.totalorder %s3138_s19, %s3136_s1 }
  0x3b   :  { %s4537_s29 = int_to_ptr.vmem [resolvable:$true] %s4536_s7  ;;  %p3141_p8 = por %p3140_p7, %p3139_p6 }
  0x3c   :  { %79 = dma.hbm_to_vmem [thread:$0]  %s72_s28, 12544, %s4537_s29, [#allocation8], %s3595_s14, %s3595_s14, %s3596_s27  }
  0x3d   :  { %p3142_p9 = pnand %p3141_p8, %p3137_p5 }
  0x3f   :  { %3145 = shalt.err (!%p3142_p9)
}
  0x40   :  { %s4538_s30 = sld [smem:[#allocation47_spill]]  ;;  %s4521_s18 = sshll.u32 %s3735_s0, 7 }
  0x41   :  { %s4540_s23 = sld [smem:[#allocation48_spill]]  ;;  %s154_s21 = scalar_lea.hbm %s4500_s9, %s4521_s18 }
  0x42   :  { %s182_s22 = scalar_lea.hbm %s4502_s11, %s3735_s0  ;;  %s155_s19 = sshll.u32 %s154_s21, 4  ;;  %s156_s19 = int_to_ptr.hbm [resolvable:$true] %s155_s19 }
  0x43   :  { %s3786_s20 = sshll.u32 %s182_s22, 4  ;;  %s185_s20 = int_to_ptr.hbm [resolvable:$true] %s3786_s20 }
  0x46   :  { %s4539_s3 = int_to_ptr.vmem [resolvable:$true] %s4538_s30 }
  0x47   :  { %105 = dma.hbm_to_vmem [thread:$0]  %s101_s24, 16, %s4539_s3, [#allocation11]  }
  0x48   :  { %s4541_s28 = int_to_ptr.vmem [resolvable:$true] %s4540_s23  ;;  %s3182_s24 = sshra.s32 %s156_s19, 4  ;;  %s3183_s24 = int_to_ptr.hbm [resolvable:$true] %s3182_s24 }
  0x49   :  { %129 = dma.hbm_to_vmem [thread:$0]  %s3731_s4, 16, %s4541_s28, [#allocation14]  }
  0x4a   :  { %s3184_s4 = scalar_lea.hbm %s3183_s24, 128  ;;  %s3186_s3 = scalar_lea.hbm %s4500_s9, 384 }
  0x4b   :  { %p3185_p10 = scmp.ne.s32.totalorder %s3183_s24, %s3184_s4  ;;  %p3187_p11 = scmp.lt.s32.totalorder %s3183_s24, %s4500_s9 }
  0x4c   :  { %p3188_p12 = scmp.lt.s32.totalorder %s3186_s3, %s3184_s4 }
  0x4e   :  { %p3189_p13 = por %p3188_p12, %p3187_p11 }
  0x50   :  { %p3190_p0 = pnand %p3189_p13, %p3185_p10 }
  0x52   :  { %3193 = shalt.err (!%p3190_p0)
}
  0x53   :  { %163 = dma.hbm_to_vmem [thread:$0]  %s156_s19, 2048, %s158_s26, [#allocation17], %s3595_s14, %s3595_s14, %s3596_s27  }
  0x54   :  { %s208_s21 = sshll.u32 %s4504_s13, 4  ;;  %s3597_s29 = smov [#allocation19]   ;;  %s209_s21 = int_to_ptr.hbm [resolvable:$true] %s208_s21 }
  0x55   :  { %s186_s1 = sshll.u32 %s3597_s29, 4  ;;  %s3206_s22 = sshra.s32 %s185_s20, 4  ;;  %s187_s1 = int_to_ptr.vmem [resolvable:$true] %s186_s1  ;;  %s3207_s22 = int_to_ptr.hbm [resolvable:$true] %s3206_s22 }
  0x56   :  { %s3208_s25 = scalar_lea.hbm %s3207_s22, 1  ;;  %s3210_s4 = scalar_lea.hbm %s4502_s11, 3 }
  0x57   :  { %p3209_p1 = scmp.ne.s32.totalorder %s3207_s22, %s3208_s25  ;;  %p3211_p2 = scmp.lt.s32.totalorder %s3207_s22, %s4502_s11 }
  0x58   :  { %p3212_p3 = scmp.lt.s32.totalorder %s3210_s4, %s3208_s25 }
  0x5a   :  { %p3213_p4 = por %p3212_p3, %p3211_p2 }
  0x5c   :  { %p3214_p5 = pnand %p3213_p4, %p3209_p1 }
  0x5e   :  { %3217 = shalt.err (!%p3214_p5)
}
  0x5f   :  { %189 = dma.hbm_to_vmem [thread:$0]  %s185_s20, 16, %s187_s1, [#allocation20]  }
  0x60   :  { %s3598_s13 = smov [#allocation22]   ;;  %s3807_s19 = sld [smem:[#allocation3 + $0x2]] }
  0x61   :  { %s210_s26 = sshll.u32 %s3598_s13, 4  ;;  %s3599_s23 = smov [#allocation25]   ;;  %s211_s26 = int_to_ptr.vmem [resolvable:$true] %s210_s26 }
  0x62   :  { %213 = dma.hbm_to_vmem [thread:$0]  %s209_s21, 16, %s211_s26, [#allocation23]  }
  0x63   :  { %s241_s28 = sshll.u32 %s3599_s23, 4  ;;  %s3600_s7 = smov [#allocation28]   ;;  %s242_s28 = int_to_ptr.vmem [resolvable:$true] %s241_s28 }
  0x64   :  { %s3809_s11 = sshll.u32 %s3600_s7, 4  ;;  %s4542_s5 = smul.u32 784, %s3720_s2  ;;  %s271_s11 = int_to_ptr.vmem [resolvable:$true] %s3809_s11 }
  0x65   :  { %s4543_s1 = sld [smem:[#allocation51_spill]]  ;;  %s3258_s18 = scalar_lea.hbm %s4506_s15, 384 }
  0x66   :  { %s2537_s25 = sshll.u32 %s3807_s19, 7  ;;  %s266_s21 = scalar_lea.hbm %s4508_s17, %s3807_s19 }
  0x67   :  { %s238_s3 = scalar_lea.hbm %s4506_s15, %s2537_s25  ;;  %s268_s13 = sshll.u32 %s266_s21, 4  ;;  %s269_s13 = int_to_ptr.hbm [resolvable:$true] %s268_s13 }
  0x68   :  { %s239_s26 = sshll.u32 %s238_s3, 4  ;;  %s240_s26 = int_to_ptr.hbm [resolvable:$true] %s239_s26 }
  0x69   :  { %s3254_s7 = sshra.s32 %s240_s26, 4  ;;  %s3255_s7 = int_to_ptr.hbm [resolvable:$true] %s3254_s7 }
  0x6a   :  { %p3259_p7 = scmp.lt.s32.totalorder %s3255_s7, %s4506_s15 }
  0x6b   :  { %s3817_s22 = scalar_lea.hbm %s4543_s1, %s4542_s5  ;;  %s3256_s5 = scalar_lea.hbm %s3255_s7, 128 }
  0x6c   :  { %s54_s23 = sshll.u32 %s3817_s22, 4  ;;  %p3257_p6 = scmp.ne.s32.totalorder %s3255_s7, %s3256_s5  ;;  %s55_s23 = int_to_ptr.hbm [resolvable:$true] %s54_s23 }
  0x6d   :  { %p3260_p8 = scmp.lt.s32.totalorder %s3258_s18, %s3256_s5 }
  0x6f   :  { %p3261_p9 = por %p3260_p8, %p3259_p7 }
  0x71   :  { %p3262_p10 = pnand %p3261_p9, %p3257_p6 }
  0x73   :  { %3265 = shalt.err (!%p3262_p10)
}
  0x74   :  { %247 = dma.hbm_to_vmem [thread:$0]  %s240_s26, 2048, %s242_s28, [#allocation26], %s3595_s14, %s3595_s14, %s3596_s27  }
  0x75   :  { %s3278_s22 = sshra.s32 %s269_s13, 4  ;;  %s3282_s3 = scalar_lea.hbm %s4508_s17, 3  ;;  %s3279_s22 = int_to_ptr.hbm [resolvable:$true] %s3278_s22 }
  0x76   :  { %s3280_s21 = scalar_lea.hbm %s3279_s22, 1  ;;  %p3283_p12 = scmp.lt.s32.totalorder %s3279_s22, %s4508_s17 }
  0x77   :  { %p3281_p11 = scmp.ne.s32.totalorder %s3279_s22, %s3280_s21  ;;  %p3284_p13 = scmp.lt.s32.totalorder %s3282_s3, %s3280_s21 }
  0x79   :  { %p3285_p0 = por %p3284_p13, %p3283_p12 }
  0x7b   :  { %p3286_p1 = pnand %p3285_p0, %p3281_p11 }
  0x7d   :  { %3289 = shalt.err (!%p3286_p1)
}
  0x7e   :  { %273 = dma.hbm_to_vmem [thread:$0]  %s269_s13, 16, %s271_s11, [#allocation29]  }
  0x7f   :  { %s3601_s15 = smov [#allocation4]   ;;  %s4544_s7 = sld [smem:[#allocation53_spill]] }
  0x80   :  { %s56_s18 = sshll.u32 %s3601_s15, 4  ;;  %s3302_s9 = sshra.s32 %s55_s23, 4  ;;  %s57_s18 = int_to_ptr.vmem [resolvable:$true] %s56_s18  ;;  %s3303_s9 = int_to_ptr.hbm [resolvable:$true] %s3302_s9 }
  0x81   :  { %s3304_s24 = scalar_lea.hbm %s3303_s9, 784  ;;  %s3306_s21 = scalar_lea.hbm %s4543_s1, 2352 }
  0x82   :  { %p3305_p2 = scmp.ne.s32.totalorder %s3303_s9, %s3304_s24  ;;  %p3307_p3 = scmp.lt.s32.totalorder %s3303_s9, %s4543_s1 }
  0x83   :  { %p3308_p4 = scmp.lt.s32.totalorder %s3306_s21, %s3304_s24 }
  0x85   :  { %s84_s5 = sshll.u32 %s4544_s7, 4  ;;  %p3309_p5 = por %p3308_p4, %p3307_p3  ;;  %s85_s5 = int_to_ptr.hbm [resolvable:$true] %s84_s5 }
  0x87   :  { %p3310_p6 = pnand %p3309_p5, %p3305_p2 }
  0x89   :  { %3313 = shalt.err (!%p3310_p6)
}
  0x8a   :  { %62 = dma.hbm_to_vmem [thread:$0]  %s55_s23, 12544, %s57_s18, [#allocation5], %s3595_s14, %s3595_s14, %s3596_s27  }
  0x8b   :  { %s111_s3 = scalar_lea.hbm %s4497_s6, %s3720_s2  ;;  %s3602_s20 = smov [#allocation9]  }
  0x8c   :  { %s86_s29 = sshll.u32 %s3602_s20, 4  ;;  %s113_s15 = sshll.u32 %s111_s3, 4  ;;  %s87_s29 = int_to_ptr.vmem [resolvable:$true] %s86_s29  ;;  %s114_s15 = int_to_ptr.hbm [resolvable:$true] %s113_s15 }
  0x8d   :  { %92 = dma.hbm_to_vmem [thread:$0]  %s85_s5, 12544, %s87_s29, [#allocation8], %s3595_s14, %s3595_s14, %s3596_s27  }
  0x8e   :  { %s4545_s1 = sshll.u32 %s3735_s0, 7  ;;  %s3603_s9 = smov [#allocation12]  }
  0x8f   :  { %s137_s7 = scalar_lea.hbm %s4499_s8, %s4545_s1  ;;  %s115_s23 = sshll.u32 %s3603_s9, 4  ;;  %s116_s23 = int_to_ptr.vmem [resolvable:$true] %s115_s23 }
  0x90   :  { %s138_s18 = sshll.u32 %s137_s7, 4  ;;  %s3350_s2 = sshra.s32 %s114_s15, 4  ;;  %s3871_s18 = int_to_ptr.hbm [resolvable:$true] %s138_s18  ;;  %s3351_s2 = int_to_ptr.hbm [resolvable:$true] %s3350_s2 }
  0x91   :  { %s3352_s24 = scalar_lea.hbm %s3351_s2, 1  ;;  %s3354_s21 = scalar_lea.hbm %s4497_s6, 3 }
  0x92   :  { %p3353_p7 = scmp.ne.s32.totalorder %s3351_s2, %s3352_s24  ;;  %p3355_p8 = scmp.lt.s32.totalorder %s3351_s2, %s4497_s6 }
  0x93   :  { %p3356_p9 = scmp.lt.s32.totalorder %s3354_s21, %s3352_s24 }
  0x95   :  { %p3357_p10 = por %p3356_p9, %p3355_p8 }
  0x97   :  { %p3358_p11 = pnand %p3357_p10, %p3353_p7 }
  0x99   :  { %3361 = shalt.err (!%p3358_p11)
}
  0x9a   :  { %118 = dma.hbm_to_vmem [thread:$0]  %s114_s15, 16, %s116_s23, [#allocation11]  }
  0x9b   :  { %s168_s13 = sshll.u32 %s4501_s10, 4  ;;  %s3604_s3 = smov [#allocation15]   ;;  %s169_s13 = int_to_ptr.hbm [resolvable:$true] %s168_s13 }
  0x9c   :  { %s140_s20 = sshll.u32 %s3604_s3, 4  ;;  %s3374_s29 = sshra.s32 %s3871_s18, 4  ;;  %s141_s20 = int_to_ptr.vmem [resolvable:$true] %s140_s20  ;;  %s3375_s29 = int_to_ptr.hbm [resolvable:$true] %s3374_s29 }
  0x9d   :  { %s3376_s1 = scalar_lea.hbm %s3375_s29, 128  ;;  %s3378_s26 = scalar_lea.hbm %s4499_s8, 384 }
  0x9e   :  { %p3377_p12 = scmp.ne.s32.totalorder %s3375_s29, %s3376_s1  ;;  %p3379_p13 = scmp.lt.s32.totalorder %s3375_s29, %s4499_s8 }
  0x9f   :  { %p3380_p0 = scmp.lt.s32.totalorder %s3378_s26, %s3376_s1 }
  0xa1   :  { %p3381_p1 = por %p3380_p0, %p3379_p13 }
  0xa3   :  { %p3382_p2 = pnand %p3381_p1, %p3377_p12 }
  0xa5   :  { %3385 = shalt.err (!%p3382_p2)
}
  0xa6   :  { %146 = dma.hbm_to_vmem [thread:$0]  %s3871_s18, 2048, %s141_s20, [#allocation14], %s3595_s14, %s3595_s14, %s3596_s27  }
  0xa7   :  { %s3605_s10 = smov [#allocation18]   ;;  %s195_s24 = scalar_lea.hbm %s4503_s12, %s3735_s0 }
  0xa8   :  { %s170_s15 = sshll.u32 %s3605_s10, 4  ;;  %s197_s17 = sshll.u32 %s195_s24, 4  ;;  %s171_s15 = int_to_ptr.vmem [resolvable:$true] %s170_s15  ;;  %s198_s17 = int_to_ptr.hbm [resolvable:$true] %s197_s17 }
  0xa9   :  { %176 = dma.hbm_to_vmem [thread:$0]  %s169_s13, 2048, %s171_s15, [#allocation17], %s3595_s14, %s3595_s14, %s3596_s27  }
  0xaa   :  { %s3606_s8 = smov [#allocation21]   ;;  %s4546_s4 = sld [smem:[#allocation54_spill]] }
  0xab   :  { %s199_s22 = sshll.u32 %s3606_s8, 4  ;;  %s3422_s11 = sshra.s32 %s198_s17, 4  ;;  %s200_s22 = int_to_ptr.vmem [resolvable:$true] %s199_s22  ;;  %s3423_s11 = int_to_ptr.hbm [resolvable:$true] %s3422_s11 }
  0xac   :  { %s3424_s3 = scalar_lea.hbm %s3423_s11, 1  ;;  %s3426_s29 = scalar_lea.hbm %s4503_s12, 3 }
  0xad   :  { %p3425_p3 = scmp.ne.s32.totalorder %s3423_s11, %s3424_s3  ;;  %p3427_p4 = scmp.lt.s32.totalorder %s3423_s11, %s4503_s12 }
  0xae   :  { %p3428_p5 = scmp.lt.s32.totalorder %s3426_s29, %s3424_s3 }
  0xb0   :  { %s221_s18 = scalar_lea.hbm %s4546_s4, %s2537_s25  ;;  %p3429_p6 = por %p3428_p5, %p3427_p4 }
  0xb1   :  { %s222_s30 = sshll.u32 %s221_s18, 4  ;;  %s223_s30 = int_to_ptr.hbm [resolvable:$true] %s222_s30 }
  0xb2   :  { %p3430_p7 = pnand %p3429_p6, %p3425_p3 }
  0xb4   :  { %3433 = shalt.err (!%p3430_p7)
}
  0xb5   :  { %202 = dma.hbm_to_vmem [thread:$0]  %s198_s17, 16, %s200_s22, [#allocation20]  }
  0xb6   :  { %s3607_s25 = smov [#allocation24]   ;;  %s252_s7 = sshll.u32 %s4507_s16, 4  ;;  %s253_s7 = int_to_ptr.hbm [resolvable:$true] %s252_s7 }
  0xb7   :  { %s224_s28 = sshll.u32 %s3607_s25, 4  ;;  %s3446_s9 = sshra.s32 %s223_s30, 4  ;;  %s225_s28 = int_to_ptr.vmem [resolvable:$true] %s224_s28  ;;  %s3447_s9 = int_to_ptr.hbm [resolvable:$true] %s3446_s9 }
  0xb8   :  { %s3448_s10 = scalar_lea.hbm %s3447_s9, 128  ;;  %s3450_s23 = scalar_lea.hbm %s4546_s4, 384 }
  0xb9   :  { %p3449_p8 = scmp.ne.s32.totalorder %s3447_s9, %s3448_s10  ;;  %p3451_p9 = scmp.lt.s32.totalorder %s3447_s9, %s4546_s4 }
  0xba   :  { %p3452_p10 = scmp.lt.s32.totalorder %s3450_s23, %s3448_s10 }
  0xbc   :  { %p3453_p11 = por %p3452_p10, %p3451_p9 }
  0xbe   :  { %p3454_p12 = pnand %p3453_p11, %p3449_p8 }
  0xc0   :  { %3457 = shalt.err (!%p3454_p12)
}
  0xc1   :  { %230 = dma.hbm_to_vmem [thread:$0]  %s223_s30, 2048, %s225_s28, [#allocation23], %s3595_s14, %s3595_s14, %s3596_s27  }
  0xc2   :  { %s4547_s8 = sld [smem:[#allocation55_spill]]  ;;  %s3608_s21 = smov [#allocation27]  }
  0xc3   :  { %s254_s5 = sshll.u32 %s3608_s21, 4  ;;  %s4548_s3 = sld [smem:[#allocation56_spill]]  ;;  %s255_s5 = int_to_ptr.vmem [resolvable:$true] %s254_s5 }
  0xc4   :  { %260 = dma.hbm_to_vmem [thread:$0]  %s253_s7, 2048, %s255_s5, [#allocation26], %s3595_s14, %s3595_s14, %s3596_s27  }
  0xc5   :  { %s3609_s20 = smov [#allocation30]  }
  0xc6   :  { %s283_s29 = sshll.u32 %s3609_s20, 4  ;;  %s284_s29 = int_to_ptr.vmem [resolvable:$true] %s283_s29 }
  0xc8   :  { %s279_s22 = scalar_lea.hbm %s4547_s8, %s3807_s19  ;;  %s3498_s25 = scalar_lea.hbm %s4547_s8, 3 }
  0xc9   :  { %s281_s18 = sshll.u32 %s279_s22, 4  ;;  %s292_s0 = sshll.u32 %s4548_s3, 4  ;;  %s282_s18 = int_to_ptr.hbm [resolvable:$true] %s281_s18  ;;  %s293_s0 = int_to_ptr.hbm [resolvable:$true] %s292_s0 }
  0xca   :  { %s3494_s30 = sshra.s32 %s282_s18, 4  ;;  %s3495_s30 = int_to_ptr.hbm [resolvable:$true] %s3494_s30 }
  0xcb   :  { %s3496_s19 = scalar_lea.hbm %s3495_s30, 1  ;;  %p3499_p0 = scmp.lt.s32.totalorder %s3495_s30, %s4547_s8 }
  0xcc   :  { %p3497_p13 = scmp.ne.s32.totalorder %s3495_s30, %s3496_s19  ;;  %p3500_p1 = scmp.lt.s32.totalorder %s3498_s25, %s3496_s19 }
  0xce   :  { %p3501_p2 = por %p3500_p1, %p3499_p0 }
  0xd0   :  { %p3502_p3 = pnand %p3501_p2, %p3497_p13 }
  0xd2   :  { %3505 = shalt.err (!%p3502_p3)
}
  0xd3   :  { %286 = dma.hbm_to_vmem [thread:$0]  %s282_s18, 16, %s284_s29, [#allocation29]  }
  0xd4   :  { %s3610_s14 = smov [#allocation31]  }
  0xd5   :  { %s294_s27 = sshll.u32 %s3610_s14, 4  ;;  %s295_s27 = int_to_ptr.vmem [resolvable:$true] %s294_s27 }
  0xd6   :  { %297 = dma.hbm_to_vmem [thread:$0]  %s293_s0, 16, %s295_s27, [#allocation32]  }
  0xd7   :  { %3568 = dma.done.wait [#allocation5], 12544  }
  0xd8   :  { %3569 = vsyncadd [#allocation5], 4294954752 }
  0xd9   :  { %3570 = dma.done.wait [#allocation8], 25088  }
  0xda   :  { %3571 = vsyncadd [#allocation8], 4294942208 }
  0xdb   :  { %3572 = dma.done.wait [#allocation11], 32  }
  0xdc   :  { %3573 = vsyncadd [#allocation11], 4294967264 }
  0xdd   :  { %3574 = dma.done.wait [#allocation14], 2064  }
  0xde   :  { %3575 = vsyncadd [#allocation14], 4294965232 }
  0xdf   :  { %3576 = dma.done.wait [#allocation17], 4096  }
  0xe0   :  { %3577 = vsyncadd [#allocation17], 4294963200 }
  0xe1   :  { %3578 = dma.done.wait [#allocation20], 32  }
  0xe2   :  { %3579 = vsyncadd [#allocation20], 4294967264 }
  0xe3   :  { %3580 = dma.done.wait [#allocation23], 2064  }
  0xe4   :  { %3581 = vsyncadd [#allocation23], 4294965232 }
  0xe5   :  { %3582 = dma.done.wait [#allocation26], 4096  }
  0xe6   :  { %3583 = vsyncadd [#allocation26], 4294963200 }
  0xe7   :  { %3584 = dma.done.wait [#allocation29], 32  }
  0xe8   :  { %3585 = vsyncadd [#allocation29], 4294967264 }
  0xe9   :  { %3586 = dma.done.wait [#allocation32], 16  }
  0xea   :  { %3587 = vsyncadd [#allocation32], 4294967280  ;;  %v3939_v0 = vld [vmem:[#allocation7 + $0x78] sm:$0xff]  ;;  %v3942_v2 = vld [vmem:[#allocation7 + $0x70] sm:$0xff]  ;;  %s4549_s9 = sld [smem:[#allocation50_spill]]  ;;  %vm2267_vm0 = vcmask 130048  }
  0xeb   :  { %v789_v1 = vand.u32 2147483647, %v3939_v0  ;;  %v788_v3 = vand.u32 2147483647, %v3942_v2  ;;  %v3945_v4 = vld [vmem:[#allocation7 + $0xf8] sm:$0xff]  ;;  %v3948_v7 = vld [vmem:[#allocation7 + $0x68] sm:$0xff] }
  0xec   :  { %v805_v6 = vand.u32 2147483647, %v3945_v4  ;;  %v787_v9 = vand.u32 2147483647, %v3948_v7  ;;  %v3951_v12 = vld [vmem:[#allocation7 + $0xf0] sm:$0xff]  ;;  %v3954_v17 = vld [vmem:[#allocation7 + $0x60] sm:$0xff] }
  0xed   :  { %v887_v5 = vsub.f32 0.0, %v789_v1  ;;  %v886_v8 = vsub.f32 0.0, %v788_v3  ;;  %v804_v15 = vand.u32 2147483647, %v3951_v12  ;;  %v3956_v20 = vld [vmem:[#allocation7 + $0xe8] sm:$0xff]  ;;  %v3960_v23 = vld [vmem:[#allocation7 + $0x58] sm:$0xff] }
  0xee   :  { %v903_v11 = vsub.f32 0.0, %v805_v6  ;;  %v885_v14 = vsub.f32 0.0, %v787_v9  ;;  %v786_v21 = vand.u32 2147483647, %v3954_v17  ;;  %v803_v22 = vand.u32 2147483647, %v3956_v20 }
  0xef   :  { %v1000_v10 = vmul.f32 1.442695, %v887_v5  ;;  %v998_v13 = vmul.f32 1.442695, %v886_v8  ;;  %v902_v19 = vsub.f32 0.0, %v804_v15  ;;  %v3963_v27 = vld [vmem:[#allocation7 + $0xe0] sm:$0xff] }
  0xf0   :  { %v1032_v16 = vmul.f32 1.442695, %v903_v11  ;;  %v996_v18 = vmul.f32 1.442695, %v885_v14  ;;  %v785_v25 = vand.u32 2147483647, %v3960_v23 }
  0xf1   :  { %2562 = vpow2.f32 %v1000_v10  ;;  %v1030_v24 = vmul.f32 1.442695, %v902_v19  ;;  %v884_v26 = vsub.f32 0.0, %v786_v21  ;;  %v691_v28 = vmax.f32 %v3939_v0, 0.0  ;;  %v3967_v31 = vld [vmem:[#allocation7 + $0x50] sm:$0xff]  ;;  %v3975_v46 = vld [vmem:[#allocation7 + $0xd8] sm:$0xff] }
  0xf2   :  { %2564 = vpow2.f32 %v998_v13  ;;  %v901_v29 = vsub.f32 0.0, %v803_v22  ;;  %v802_v30 = vand.u32 2147483647, %v3963_v27  ;;  %v690_v33 = vmax.f32 %v3942_v2, 0.0  ;;  %v3977_v47 = vld [vmem:[#allocation7 + $0x48] sm:$0xff]  ;;  %v3981_v55 = vld [vmem:[#allocation7 + $0xd0] sm:$0xff] }
  0xf3   :  { %2566 = vpow2.f32 %v1032_v16  ;;  %v707_v34 = vmax.f32 %v3945_v4, 0.0  ;;  %v689_v35 = vmax.f32 %v3948_v7, 0.0  ;;  %v994_v36 = vmul.f32 1.442695, %v884_v26  ;;  %v3985_v60 = vld [vmem:[#allocation7 + $0x40] sm:$0xff]  ;;  %v3989_v6 = vld [vmem:[#allocation7 + $0xc8] sm:$0xff] }
  0xf4   :  { %2568 = vpow2.f32 %v996_v18  ;;  %v706_v39 = vmax.f32 %v3951_v12, 0.0  ;;  %v688_v40 = vmax.f32 %v3954_v17, 0.0  ;;  %v883_v41 = vsub.f32 0.0, %v785_v25  ;;  %v593_v25 = vld [vmem:[#allocation9 + $0x78] sm:$0xff]  ;;  %s3611_s12 = smov [#allocation33]   ;;  %s4550_s16 = sld [smem:[#allocation57_spill]] }
  0xf5   :  { %2570 = vpow2.f32 %v1030_v24  ;;  %v900_v44 = vsub.f32 0.0, %v802_v30  ;;  %v784_v45 = vand.u32 2147483647, %v3967_v31  ;;  %v705_v50 = vmax.f32 %v3956_v20, 0.0  ;;  %s2476_s23 = sshll.u32 %s3611_s12, 4  ;;  %s2477_s23 = int_to_ptr.vmem [resolvable:$true] %s2476_s23 }
  0xf6   :  { %2572 = vpow2.f32 %v994_v36  ;;  %v1028_v51 = vmul.f32 1.442695, %v901_v29  ;;  %v801_v54 = vand.u32 2147483647, %v3975_v46  ;;  %v687_v57 = vmax.f32 %v3960_v23, 0.0 }
  0xf7   :  { %v2563_v32 = vpop.eup %2562  ;;  %v882_v53 = vsub.f32 0.0, %v784_v45  ;;  %v992_v58 = vmul.f32 1.442695, %v883_v41  ;;  %v783_v59 = vand.u32 2147483647, %v3977_v47  ;;  %v704_v1 = vmax.f32 %v3963_v27, 0.0 }
  0xf8   :  { %v2565_v37 = vpop.eup %2564  ;;  %v1181_v38 = vadd.f32 1.0, %v2563_v32  ;;  %v1026_v62 = vmul.f32 1.442695, %v900_v44  ;;  %v899_v63 = vsub.f32 0.0, %v801_v54  ;;  %v800_v5 = vand.u32 2147483647, %v3981_v55 }
  0xf9   :  { %v2567_v42 = vpop.eup %2566  ;;  %v1180_v43 = vadd.f32 1.0, %v2565_v37  ;;  %v881_v3 = vsub.f32 0.0, %v783_v59  ;;  %v990_v9 = vmul.f32 1.442695, %v882_v53  ;;  %v782_v11 = vand.u32 2147483647, %v3985_v60 }
  0xfa   :  { %v2569_v48 = vpop.eup %2568  ;;  %2574 = vlog2.f32 %v1181_v38  ;;  %v1197_v49 = vadd.f32 1.0, %v2567_v42  ;;  %v1024_v10 = vmul.f32 1.442695, %v899_v63  ;;  %v898_v16 = vsub.f32 0.0, %v800_v5  ;;  %v592_v37 = vld [vmem:[#allocation9 + $0x70] sm:$0xff]  ;;  %v609_v45 = vld [vmem:[#allocation9 + $0xf8] sm:$0xff] }
  0xfb   :  { %2576 = vlog2.f32 %v1180_v43  ;;  %v1179_v52 = vadd.f32 1.0, %v2569_v48  ;;  %v2571_v56 = vpop.eup %2570  ;;  %v988_v15 = vmul.f32 1.442695, %v881_v3  ;;  %v880_v21 = vsub.f32 0.0, %v782_v11  ;;  %v397_v43 = vld [vmem:[#allocation4 + $0x78] sm:$0xff]  ;;  %v396_v53 = vld [vmem:[#allocation4 + $0x70] sm:$0xff] }
  0xfc   :  { %2578 = vlog2.f32 %v1197_v49  ;;  %v1196_v61 = vadd.f32 1.0, %v2571_v56  ;;  %v2573_v8 = vpop.eup %2572  ;;  %v799_v22 = vand.u32 2147483647, %v3989_v6  ;;  %v686_v29 = vmax.f32 %v3967_v31, 0.0  ;;  %v413_v59 = vld [vmem:[#allocation4 + $0xf8] sm:$0xff]  ;;  %v395_v3 = vld [vmem:[#allocation4 + $0x68] sm:$0xff] }
  0xfd   :  { %2580 = vlog2.f32 %v1179_v52  ;;  %v1178_v14 = vadd.f32 1.0, %v2573_v8  ;;  %v1022_v30 = vmul.f32 1.442695, %v898_v16  ;;  %v986_v41 = vmul.f32 1.442695, %v880_v21  ;;  %v608_v5 = vld [vmem:[#allocation9 + $0xf0] sm:$0xff] }
  0xfe   :  { %2582 = vpow2.f32 %v1028_v51  ;;  %v897_v49 = vsub.f32 0.0, %v799_v22  ;;  %v703_v16 = vmax.f32 %v3975_v46, 0.0  ;;  %v590_v22 = vld [vmem:[#allocation9 + $0x60] sm:$0xff]  ;;  %v604_v31 = vld [vmem:[#allocation9 + $0xd0] sm:$0xff]  ;;  %vm2458_vm1 = vcmask 1041408   ;;  %s2478_s17 = sshll.u32 %s4550_s16, 4  ;;  %s2479_s17 = int_to_ptr.hbm [resolvable:$true] %s2478_s17 }
  0xff   :  { %2584 = vlog2.f32 %v1196_v61 }
 0x100   :  { %v2575_v13 = vpop.eup %2574  ;;  %2586 = vpow2.f32 %v992_v58 }
 0x101   :  { %v2577_v18 = vpop.eup %2576  ;;  %v1295_v19 = vmul.f32 0.6931472, %v2575_v13  ;;  %2588 = vpow2.f32 %v1026_v62  ;;  %v4004_v13 = vld [vmem:[#allocation7 + $0x38] sm:$0xff] }
 0x102   :  { %v2579_v24 = vpop.eup %2578  ;;  %v1293_v26 = vmul.f32 0.6931472, %v2577_v18  ;;  %2590 = vlog2.f32 %v1178_v14  ;;  %v412_v14 = vld [vmem:[#allocation4 + $0xf0] sm:$0xff] }
 0x103   :  { %v2581_v32 = vpop.eup %2580  ;;  %v1475_v36 = vadd.f32 %v1295_v19, %v691_v28  ;;  %v1327_v38 = vmul.f32 0.6931472, %v2579_v24  ;;  %2592 = vpow2.f32 %v990_v9  ;;  %v591_v28 = vld [vmem:[#allocation9 + $0x68] sm:$0xff] }
 0x104   :  { %v2583_v42 = vpop.eup %2582  ;;  %v1474_v44 = vadd.f32 %v1293_v26, %v690_v33  ;;  %v1291_v48 = vmul.f32 0.6931472, %v2581_v32  ;;  %2594 = vpow2.f32 %v1024_v10  ;;  %v781_v26 = vand.u32 2147483647, %v4004_v13 }
 0x105   :  { %v2585_v51 = vpop.eup %2584  ;;  %v1573_v52 = vmul.f32 %v1475_v36, %v593_v25  ;;  %v1491_v0 = vadd.f32 %v1327_v38, %v707_v34  ;;  %v1195_v54 = vadd.f32 1.0, %v2583_v42  ;;  %2596 = vpow2.f32 %v988_v15 }
 0x106   :  { %v2587_v56 = vpop.eup %2586  ;;  %v1572_v58 = vmul.f32 %v1474_v44, %v592_v37  ;;  %v1473_v2 = vadd.f32 %v1291_v48, %v689_v35  ;;  %v1325_v33 = vmul.f32 0.6931472, %v2585_v51  ;;  %2598 = vpow2.f32 %v1022_v30  ;;  %v4010_v30 = vld [vmem:[#allocation7 + $0xc0] sm:$0xff]  ;;  %v394_v37 = vld [vmem:[#allocation4 + $0x60] sm:$0xff] }
 0x107   :  { %v2589_v61 = vpop.eup %2588  ;;  %v1671_v62 = vadd.f32 %v1573_v52, %v397_v43  ;;  %v1589_v63 = vmul.f32 %v1491_v0, %v609_v45  ;;  %2600 = vlog2.f32 %v1195_v54  ;;  %v1177_v8 = vadd.f32 1.0, %v2587_v56  ;;  %v4012_v43 = vld [vmem:[#allocation7 + $0x30] sm:$0xff]  ;;  %v607_v0 = vld [vmem:[#allocation9 + $0xe8] sm:$0xff] }
 0x108   :  { %v2591_v4 = vpop.eup %2590  ;;  %v1670_v34 = vadd.f32 %v1572_v58, %v396_v53  ;;  %v1571_v9 = vmul.f32 %v1473_v2, %v591_v28  ;;  %v1490_v10 = vadd.f32 %v1325_v33, %v706_v39  ;;  %v1194_v11 = vadd.f32 1.0, %v2589_v61  ;;  %v4019_v2 = vld [vmem:[#allocation7 + $0xb8] sm:$0xff]  ;;  %v589_v61 = vld [vmem:[#allocation9 + $0x58] sm:$0xff] }
 0x109   :  { %v2593_v7 = vpop.eup %2592  ;;  %2270 = vmatpush.msra.mxu0 %v1671_v62  ;;  %v1687_v35 = vadd.f32 %v1589_v63, %v413_v59  ;;  %v1289_v15 = vmul.f32 0.6931472, %v2591_v4  ;;  %2602 = vlog2.f32 %v1177_v8  ;;  %v1020_v42 = vmul.f32 1.442695, %v897_v49  ;;  %v411_v33 = vld [vmem:[#allocation4 + $0xe8] sm:$0xff]  ;;  %v393_v4 = vld [vmem:[#allocation4 + $0x58] sm:$0xff] }
 0x10a   :  { %v2595_v18 = vpop.eup %2594  ;;  %v1669_v19 = vadd.f32 %v1571_v9, %v395_v3  ;;  %v1588_v21 = vmul.f32 %v1490_v10, %v608_v5  ;;  %2604 = vlog2.f32 %v1194_v11  ;;  %v1176_v24 = vadd.f32 1.0, %v2593_v7 }
 0x10b   :  { %v2597_v25 = vpop.eup %2596  ;;  %2271 = vmatpush.msra.mxu0 %v1670_v34  ;;  %2290 = vmatpush.msra.mxu1 %v1687_v35  ;;  %v1472_v12 = vadd.f32 %v1289_v15, %v688_v40  ;;  %v1193_v39 = vadd.f32 1.0, %v2595_v18  ;;  %2606 = vpow2.f32 %v986_v41  ;;  %v879_v40 = vsub.f32 0.0, %v781_v26 }
 0x10c   :  { %v2599_v32 = vpop.eup %2598  ;;  %v1686_v36 = vadd.f32 %v1588_v21, %v412_v14  ;;  %2608 = vlog2.f32 %v1176_v24  ;;  %v1175_v38 = vadd.f32 1.0, %v2597_v25  ;;  %v685_v48 = vmax.f32 %v3977_v47, 0.0  ;;  %v588_v21 = vld [vmem:[#allocation9 + $0x50] sm:$0xff]  ;;  %v605_v25 = vld [vmem:[#allocation9 + $0xd8] sm:$0xff] }
 0x10d   :  { %v2601_v44 = vpop.eup %2600  ;;  %2272 = vmatpush.msra.mxu0 %v1669_v19  ;;  %v1570_v45 = vmul.f32 %v1472_v12, %v590_v22  ;;  %2610 = vlog2.f32 %v1193_v39  ;;  %v1192_v17 = vadd.f32 1.0, %v2599_v32  ;;  %v798_v51 = vand.u32 2147483647, %v4010_v30  ;;  %v410_v19 = vld [vmem:[#allocation4 + $0xe0] sm:$0xff]  ;;  %v392_v39 = vld [vmem:[#allocation4 + $0x50] sm:$0xff]  ;;  %v587_v32 = vld [vmem:[#allocation9 + $0x48] sm:$0xff] }
 0x10e   :  { %2291 = vmatpush.msra.mxu1 %v1686_v36  ;;  %v1323_v41 = vmul.f32 0.6931472, %v2601_v44  ;;  %2612 = vlog2.f32 %v1175_v38  ;;  %v984_v49 = vmul.f32 1.442695, %v879_v40  ;;  %v780_v28 = vand.u32 2147483647, %v4012_v43 }
 0x10f   :  { %v2603_v52 = vpop.eup %2602  ;;  %v1668_v53 = vadd.f32 %v1570_v45, %v394_v37  ;;  %2614 = vlog2.f32 %v1192_v17  ;;  %v896_v59 = vsub.f32 0.0, %v798_v51  ;;  %v702_v63 = vmax.f32 %v3981_v55, 0.0  ;;  %v409_v44 = vld [vmem:[#allocation4 + $0xd8] sm:$0xff]  ;;  %v391_v40 = vld [vmem:[#allocation4 + $0x48] sm:$0xff] }
 0x110   :  { %v2605_v54 = vpop.eup %2604  ;;  %v1489_v56 = vadd.f32 %v1323_v41, %v705_v50  ;;  %v1287_v58 = vmul.f32 0.6931472, %v2603_v52  ;;  %2616 = vpow2.f32 %v1020_v42  ;;  %v878_v3 = vsub.f32 0.0, %v780_v28  ;;  %v606_v50 = vld [vmem:[#allocation9 + $0xe0] sm:$0xff] }
 0x111   :  { %v2607_v47 = vpop.eup %2606  ;;  %2273 = vmatpush.msra.mxu0 %v1668_v53  ;;  %v1321_v62 = vmul.f32 0.6931472, %v2605_v54  ;;  %2618 = vpow2.f32 %v984_v49  ;;  %v1018_v9 = vmul.f32 1.442695, %v896_v59  ;;  %v797_v14 = vand.u32 2147483647, %v4019_v2 }
 0x112   :  { %v2609_v5 = vpop.eup %2608  ;;  %v1587_v8 = vmul.f32 %v1489_v56, %v607_v0  ;;  %v1471_v20 = vadd.f32 %v1287_v58, %v687_v57  ;;  %v1174_v34 = vadd.f32 1.0, %v2607_v47  ;;  %v982_v35 = vmul.f32 1.442695, %v878_v3  ;;  %v4031_v53 = vld [vmem:[#allocation7 + $0x28] sm:$0xff]  ;;  %v408_v0 = vld [vmem:[#allocation4 + $0xd0] sm:$0xff]  ;;  %v4034_v28 = vld [vmem:[#allocation7 + $0xb0] sm:$0xff] }
 0x113   :  { %v2611_v10 = vpop.eup %2610  ;;  %v1488_v11 = vadd.f32 %v1321_v62, %v704_v1  ;;  %v1285_v7 = vmul.f32 0.6931472, %v2609_v5  ;;  %v895_v52 = vsub.f32 0.0, %v797_v14  ;;  %v684_v49 = vmax.f32 %v3985_v60, 0.0  ;;  %v4037_v62 = vld [vmem:[#allocation7 + $0x178] sm:$0xff]  ;;  %v586_v60 = vld [vmem:[#allocation9 + $0x40] sm:$0xff] }
 0x114   :  { %v2613_v55 = vpop.eup %2612  ;;  %v1685_v15 = vadd.f32 %v1587_v8, %v411_v33  ;;  %v1569_v18 = vmul.f32 %v1471_v20, %v589_v61  ;;  %v1319_v22 = vmul.f32 0.6931472, %v2611_v10  ;;  %2620 = vlog2.f32 %v1174_v34  ;;  %v390_v10 = vld [vmem:[#allocation4 + $0x40] sm:$0xff] }
 0x115   :  { %v2615_v23 = vpop.eup %2614  ;;  %v1586_v57 = vmul.f32 %v1488_v11, %v606_v50  ;;  %v1470_v24 = vadd.f32 %v1285_v7, %v686_v29  ;;  %v1283_v12 = vmul.f32 0.6931472, %v2613_v55  ;;  %2622 = vpow2.f32 %v1018_v9 }
 0x116   :  { %v2617_v27 = vpop.eup %2616  ;;  %2292 = vmatpush.msra.mxu1 %v1685_v15  ;;  %v1667_v1 = vadd.f32 %v1569_v18, %v393_v4  ;;  %v1487_v26 = vadd.f32 %v1319_v22, %v703_v16  ;;  %v1317_v36 = vmul.f32 0.6931472, %v2615_v23  ;;  %2624 = vpow2.f32 %v982_v35  ;;  %v4040_v4 = vld [vmem:[#allocation7 + $0x20] sm:$0xff] }
 0x117   :  { %v2619_v37 = vpop.eup %2618  ;;  %v1684_v38 = vadd.f32 %v1586_v57, %v410_v19  ;;  %v1568_v42 = vmul.f32 %v1470_v24, %v588_v21  ;;  %v1469_v45 = vadd.f32 %v1283_v12, %v685_v48  ;;  %v1191_v29 = vadd.f32 1.0, %v2617_v27  ;;  %v4046_v19 = vld [vmem:[#allocation7 + $0xa8] sm:$0xff]  ;;  %v4049_v27 = vld [vmem:[#allocation7 + $0x170] sm:$0xff] }
 0x118   :  { %2274 = vmatpush.msra.mxu0 %v1667_v1  ;;  %v1585_v17 = vmul.f32 %v1487_v26, %v605_v25  ;;  %v1486_v41 = vadd.f32 %v1317_v36, %v702_v63  ;;  %v1173_v51 = vadd.f32 1.0, %v2619_v37  ;;  %v1016_v58 = vmul.f32 1.442695, %v895_v52  ;;  %v585_v26 = vld [vmem:[#allocation9 + $0x38] sm:$0xff]  ;;  %v407_v37 = vld [vmem:[#allocation4 + $0xc8] sm:$0xff] }
 0x119   :  { %2293 = vmatpush.msra.mxu1 %v1684_v38  ;;  %v1666_v46 = vadd.f32 %v1568_v42, %v392_v39  ;;  %v1567_v16 = vmul.f32 %v1469_v45, %v587_v32  ;;  %2626 = vlog2.f32 %v1191_v29  ;;  %v779_v61 = vand.u32 2147483647, %v4031_v53  ;;  %v389_v29 = vld [vmem:[#allocation4 + $0x38] sm:$0xff] }
 0x11a   :  { %v2621_v48 = vpop.eup %2620  ;;  %v1683_v54 = vadd.f32 %v1585_v17, %v409_v44  ;;  %v1584_v56 = vmul.f32 %v1486_v41, %v604_v31  ;;  %2628 = vlog2.f32 %v1173_v51  ;;  %v796_v8 = vand.u32 2147483647, %v4034_v28  ;;  %v4054_v41 = vld [vmem:[#allocation7 + $0x1f8] sm:$0xff] }
 0x11b   :  { %v2623_v59 = vpop.eup %2622  ;;  %2275 = vmatpush.msra.mxu0 %v1666_v46  ;;  %v1665_v47 = vadd.f32 %v1567_v16, %v391_v40  ;;  %v1281_v33 = vmul.f32 0.6931472, %v2621_v48  ;;  %2630 = vpow2.f32 %v1016_v58  ;;  %v701_v50 = vmax.f32 %v3989_v6, 0.0 }
 0x11c   :  { %v2625_v63 = vpop.eup %2624  ;;  %2294 = vmatpush.msra.mxu1 %v1683_v54  ;;  %v1682_v3 = vadd.f32 %v1584_v56, %v408_v0  ;;  %v1190_v5 = vadd.f32 1.0, %v2623_v59  ;;  %v877_v9 = vsub.f32 0.0, %v779_v61  ;;  %v683_v11 = vmax.f32 %v4004_v13, 0.0  ;;  %v603_v13 = vld [vmem:[#allocation9 + $0xc8] sm:$0xff]  ;;  %v584_v59 = vld [vmem:[#allocation9 + $0x30] sm:$0xff] }
 0x11d   :  { %2276 = vmatpush.msra.mxu0 %v1665_v47  ;;  %v1468_v20 = vadd.f32 %v1281_v33, %v684_v49  ;;  %v1172_v34 = vadd.f32 1.0, %v2625_v63  ;;  %v894_v7 = vsub.f32 0.0, %v796_v8  ;;  %v821_v35 = vand.u32 2147483647, %v4037_v62  ;;  %v602_v49 = vld [vmem:[#allocation9 + $0xc0] sm:$0xff]  ;;  %v4058_v61 = vld [vmem:[#allocation7 + $0x18] sm:$0xff] }
 0x11e   :  { %2295 = vmatpush.msra.mxu1 %v1682_v3  ;;  %2632 = vlog2.f32 %v1190_v5  ;;  %v980_v15 = vmul.f32 1.442695, %v877_v9  ;;  %v778_v18 = vand.u32 2147483647, %v4040_v4  ;;  %v700_v22 = vmax.f32 %v4010_v30, 0.0  ;;  %v406_v3 = vld [vmem:[#allocation4 + $0xc0] sm:$0xff] }
 0x11f   :  { %v2627_v14 = vpop.eup %2626  ;;  %v1566_v55 = vmul.f32 %v1468_v20, %v586_v60  ;;  %2634 = vlog2.f32 %v1172_v34  ;;  %v1014_v23 = vmul.f32 1.442695, %v894_v7  ;;  %v919_v57 = vsub.f32 0.0, %v821_v35  ;;  %v388_v20 = vld [vmem:[#allocation4 + $0x30] sm:$0xff] }
 0x120   :  { %v2629_v21 = vpop.eup %2628  ;;  %v1315_v6 = vmul.f32 0.6931472, %v2627_v14  ;;  %2636 = vpow2.f32 %v980_v15  ;;  %v876_v12 = vsub.f32 0.0, %v778_v18  ;;  %v795_v36 = vand.u32 2147483647, %v4046_v19  ;;  %v4063_v14 = vld [vmem:[#allocation7 + $0xa0] sm:$0xff] }
 0x121   :  { %v1664_v24 = vadd.f32 %v1566_v55, %v390_v10  ;;  %v1279_v25 = vmul.f32 0.6931472, %v2629_v21  ;;  %v2631_v1 = vpop.eup %2630  ;;  %2638 = vpow2.f32 %v1014_v23  ;;  %v1064_v32 = vmul.f32 1.442695, %v919_v57  ;;  %v4065_v21 = vld [vmem:[#allocation7 + $0x168] sm:$0xff] }
 0x122   :  { %v1485_v39 = vadd.f32 %v1315_v6, %v701_v50  ;;  %v682_v30 = vmax.f32 %v4012_v43, 0.0  ;;  %v1189_v42 = vadd.f32 1.0, %v2631_v1  ;;  %v978_v44 = vmul.f32 1.442695, %v876_v12  ;;  %v4069_v12 = vld [vmem:[#allocation7 + $0x1f0] sm:$0xff] }
 0x123   :  { %2277 = vmatpush.msra.mxu0 %v1664_v24  ;;  %v1467_v38 = vadd.f32 %v1279_v25, %v683_v11  ;;  %2640 = vpow2.f32 %v1064_v32  ;;  %v893_v17 = vsub.f32 0.0, %v795_v36  ;;  %v820_v40 = vand.u32 2147483647, %v4049_v27  ;;  %v601_v24 = vld [vmem:[#allocation9 + $0xb8] sm:$0xff] }
 0x124   :  { %v2633_v45 = vpop.eup %2632  ;;  %v1583_v31 = vmul.f32 %v1485_v39, %v603_v13  ;;  %v699_v16 = vmax.f32 %v4019_v2, 0.0  ;;  %2642 = vlog2.f32 %v1189_v42  ;;  %v837_v33 = vand.u32 2147483647, %v4054_v41  ;;  %v405_v36 = vld [vmem:[#allocation4 + $0xb8] sm:$0xff] }
 0x125   :  { %v2635_v51 = vpop.eup %2634  ;;  %v1565_v52 = vmul.f32 %v1467_v38, %v585_v26  ;;  %v1313_v46 = vmul.f32 0.6931472, %v2633_v45  ;;  %2644 = vpow2.f32 %v978_v44  ;;  %v1012_v48 = vmul.f32 1.442695, %v893_v17 }
 0x126   :  { %v1681_v0 = vadd.f32 %v1583_v31, %v407_v37  ;;  %v1277_v43 = vmul.f32 0.6931472, %v2635_v51  ;;  %v2637_v54 = vpop.eup %2636  ;;  %v918_v47 = vsub.f32 0.0, %v820_v40  ;;  %v681_v2 = vmax.f32 %v4031_v53, 0.0  ;;  %v4074_v31 = vld [vmem:[#allocation7 + $0x10] sm:$0xff] }
 0x127   :  { %v1663_v56 = vadd.f32 %v1565_v52, %v389_v29  ;;  %v1484_v58 = vadd.f32 %v1313_v46, %v700_v22  ;;  %v2639_v63 = vpop.eup %2638  ;;  %v1171_v5 = vadd.f32 1.0, %v2637_v54  ;;  %2646 = vpow2.f32 %v1012_v48  ;;  %v600_v54 = vld [vmem:[#allocation9 + $0xb0] sm:$0xff] }
 0x128   :  { %2296 = vmatpush.msra.mxu1 %v1681_v0  ;;  %v1466_v60 = vadd.f32 %v1277_v43, %v682_v30  ;;  %v1188_v50 = vadd.f32 1.0, %v2639_v63  ;;  %v1062_v34 = vmul.f32 1.442695, %v918_v47  ;;  %v935_v9 = vsub.f32 0.0, %v837_v33  ;;  %v387_v47 = vld [vmem:[#allocation4 + $0x28] sm:$0xff] }
 0x129   :  { %2278 = vmatpush.msra.mxu0 %v1663_v56  ;;  %v1582_v8 = vmul.f32 %v1484_v58, %v602_v49  ;;  %v2641_v10 = vpop.eup %2640  ;;  %2648 = vlog2.f32 %v1171_v5  ;;  %v698_v7 = vmax.f32 %v4034_v28, 0.0  ;;  %v777_v35 = vand.u32 2147483647, %v4058_v61  ;;  %v404_v5 = vld [vmem:[#allocation4 + $0xb0] sm:$0xff] }
 0x12a   :  { %v1564_v11 = vmul.f32 %v1466_v60, %v584_v59  ;;  %v2643_v55 = vpop.eup %2642  ;;  %2650 = vlog2.f32 %v1188_v50  ;;  %v1213_v53 = vadd.f32 1.0, %v2641_v10  ;;  %v1096_v18 = vmul.f32 1.442695, %v935_v9 }
 0x12b   :  { %v1680_v15 = vadd.f32 %v1582_v8, %v406_v3  ;;  %v2645_v6 = vpop.eup %2644  ;;  %v1311_v23 = vmul.f32 0.6931472, %v2643_v55  ;;  %2652 = vpow2.f32 %v1062_v34  ;;  %v875_v57 = vsub.f32 0.0, %v777_v35  ;;  %v625_v8 = vld [vmem:[#allocation9 + $0x178] sm:$0xff] }
 0x12c   :  { %v1662_v22 = vadd.f32 %v1564_v11, %v388_v20  ;;  %v723_v28 = vmax.f32 %v4037_v62, 0.0  ;;  %2654 = vlog2.f32 %v1213_v53  ;;  %v1170_v13 = vadd.f32 1.0, %v2645_v6  ;;  %v4078_v11 = vld [vmem:[#allocation7 + $0x98] sm:$0xff] }
 0x12d   :  { %2297 = vmatpush.msra.mxu1 %v1680_v15  ;;  %v794_v25 = vand.u32 2147483647, %v4063_v14  ;;  %v2647_v1 = vpop.eup %2646  ;;  %v1483_v39 = vadd.f32 %v1311_v23, %v699_v16  ;;  %2656 = vpow2.f32 %v1096_v18  ;;  %v976_v26 = vmul.f32 1.442695, %v875_v57  ;;  %v582_v15 = vld [vmem:[#allocation9 + $0x20] sm:$0xff] }
 0x12e   :  { %2279 = vmatpush.msra.mxu0 %v1662_v22  ;;  %v819_v32 = vand.u32 2147483647, %v4065_v21  ;;  %v680_v37 = vmax.f32 %v4040_v4, 0.0  ;;  %2658 = vlog2.f32 %v1170_v13  ;;  %v1187_v38 = vadd.f32 1.0, %v2647_v1  ;;  %v583_v4 = vld [vmem:[#allocation9 + $0x28] sm:$0xff] }
 0x12f   :  { %v892_v30 = vsub.f32 0.0, %v794_v25  ;;  %v2649_v62 = vpop.eup %2648  ;;  %v1581_v42 = vmul.f32 %v1483_v39, %v601_v24  ;;  %2660 = vpow2.f32 %v976_v26  ;;  %v836_v45 = vand.u32 2147483647, %v4069_v12  ;;  %v4080_v24 = vld [vmem:[#allocation7 + $0x160] sm:$0xff]  ;;  %v599_v25 = vld [vmem:[#allocation9 + $0xa8] sm:$0xff] }
 0x130   :  { %v917_v44 = vsub.f32 0.0, %v819_v32  ;;  %v2651_v29 = vpop.eup %2650  ;;  %v1275_v17 = vmul.f32 0.6931472, %v2649_v62  ;;  %v697_v40 = vmax.f32 %v4046_v19, 0.0  ;;  %2662 = vlog2.f32 %v1187_v38 }
 0x131   :  { %v1010_v51 = vmul.f32 1.442695, %v892_v30  ;;  %v2653_v52 = vpop.eup %2652  ;;  %v1679_v46 = vadd.f32 %v1581_v42, %v405_v36  ;;  %v1309_v16 = vmul.f32 0.6931472, %v2651_v29  ;;  %v934_v49 = vsub.f32 0.0, %v836_v45  ;;  %v403_v42 = vld [vmem:[#allocation4 + $0xa8] sm:$0xff] }
 0x132   :  { %v1060_v0 = vmul.f32 1.442695, %v917_v44  ;;  %v2655_v43 = vpop.eup %2654  ;;  %v1465_v48 = vadd.f32 %v1275_v17, %v681_v2  ;;  %v1212_v56 = vadd.f32 1.0, %v2653_v52  ;;  %v776_v58 = vand.u32 2147483647, %v4074_v31  ;;  %v4086_v52 = vld [vmem:[#allocation7 + $0x1e8] sm:$0xff] }
 0x133   :  { %2664 = vpow2.f32 %v1010_v51  ;;  %v2657_v59 = vpop.eup %2656  ;;  %2298 = vmatpush.msra.mxu1 %v1679_v46  ;;  %v1482_v33 = vadd.f32 %v1309_v16, %v698_v7  ;;  %v1359_v19 = vmul.f32 0.6931472, %v2655_v43  ;;  %v1094_v63 = vmul.f32 1.442695, %v934_v49  ;;  %v429_v7 = vld [vmem:[#allocation4 + $0x178] sm:$0xff]  ;;  %v428_v43 = vld [vmem:[#allocation4 + $0x170] sm:$0xff] }
 0x134   :  { %2666 = vpow2.f32 %v1060_v0  ;;  %v2659_v3 = vpop.eup %2658  ;;  %v1563_v60 = vmul.f32 %v1465_v48, %v583_v4  ;;  %v1229_v20 = vadd.f32 1.0, %v2657_v59  ;;  %v874_v50 = vsub.f32 0.0, %v776_v58  ;;  %v624_v4 = vld [vmem:[#allocation9 + $0x170] sm:$0xff]  ;;  %v4089_v58 = vld [vmem:[#allocation7 + $0x8] sm:$0xff] }
 0x135   :  { %2668 = vlog2.f32 %v1212_v56  ;;  %v2661_v2 = vpop.eup %2660  ;;  %v1580_v34 = vmul.f32 %v1482_v33, %v600_v54  ;;  %v1507_v9 = vadd.f32 %v1359_v19, %v723_v28  ;;  %v1273_v10 = vmul.f32 0.6931472, %v2659_v3  ;;  %v386_v28 = vld [vmem:[#allocation4 + $0x20] sm:$0xff] }
 0x136   :  { %2670 = vpow2.f32 %v1094_v63  ;;  %v2663_v35 = vpop.eup %2662  ;;  %v1661_v55 = vadd.f32 %v1563_v60, %v387_v47  ;;  %v1169_v53 = vadd.f32 1.0, %v2661_v2  ;;  %v974_v18 = vmul.f32 1.442695, %v874_v50  ;;  %v641_v47 = vld [vmem:[#allocation9 + $0x1f8] sm:$0xff] }
 0x137   :  { %2672 = vlog2.f32 %v1229_v20  ;;  %v1678_v6 = vadd.f32 %v1580_v34, %v404_v5  ;;  %v1605_v22 = vmul.f32 %v1507_v9, %v625_v8  ;;  %v1464_v23 = vadd.f32 %v1273_v10, %v680_v37  ;;  %v445_v20 = vld [vmem:[#allocation4 + $0x1f8] sm:$0xff] }
 0x138   :  { %v1307_v57 = vmul.f32 0.6931472, %v2663_v35  ;;  %2280 = vmatpush.msra.mxu0 %v1661_v55  ;;  %v722_v1 = vmax.f32 %v4049_v27, 0.0  ;;  %v739_v39 = vmax.f32 %v4054_v41, 0.0  ;;  %2674 = vlog2.f32 %v1169_v53  ;;  %v581_v50 = vld [vmem:[#allocation9 + $0x18] sm:$0xff]  ;;  %v4097_v53 = vld [vmem:[#allocation7 + $0x158] sm:$0xff] }
 0x139   :  { %v2665_v13 = vpop.eup %2664  ;;  %v793_v26 = vand.u32 2147483647, %v4078_v11  ;;  %2299 = vmatpush.msra.mxu1 %v1678_v6  ;;  %v1703_v36 = vadd.f32 %v1605_v22, %v429_v7  ;;  %v1562_v38 = vmul.f32 %v1464_v23, %v582_v15  ;;  %2676 = vpow2.f32 %v974_v18  ;;  %v385_v35 = vld [vmem:[#allocation4 + $0x18] sm:$0xff]  ;;  %v4095_v15 = vld [vmem:[#allocation7 + $0x90] sm:$0xff] }
 0x13a   :  { %v2667_v32 = vpop.eup %2666  ;;  %v1481_v30 = vadd.f32 %v1307_v57, %v697_v40  ;;  %v1186_v37 = vadd.f32 1.0, %v2665_v13  ;;  %v818_v29 = vand.u32 2147483647, %v4080_v24  ;;  %v679_v56 = vmax.f32 %v4058_v61, 0.0 }
 0x13b   :  { %v2669_v62 = vpop.eup %2668  ;;  %v1211_v44 = vadd.f32 1.0, %v2667_v32  ;;  %v891_v45 = vsub.f32 0.0, %v793_v26  ;;  %2310 = vmatpush.msra.mxu2 %v1703_v36  ;;  %v1660_v27 = vadd.f32 %v1562_v38, %v386_v28  ;;  %v696_v33 = vmax.f32 %v4063_v14, 0.0  ;;  %v598_v28 = vld [vmem:[#allocation9 + $0xa0] sm:$0xff]  ;;  %v623_v26 = vld [vmem:[#allocation9 + $0x168] sm:$0xff] }
 0x13c   :  { %v2671_v17 = vpop.eup %2670  ;;  %v1579_v41 = vmul.f32 %v1481_v30, %v599_v25  ;;  %v1357_v51 = vmul.f32 0.6931472, %v2669_v62  ;;  %2678 = vlog2.f32 %v1186_v37  ;;  %v916_v0 = vsub.f32 0.0, %v818_v29  ;;  %v402_v37 = vld [vmem:[#allocation4 + $0xa0] sm:$0xff]  ;;  %v427_v29 = vld [vmem:[#allocation4 + $0x168] sm:$0xff] }
 0x13d   :  { %v2673_v46 = vpop.eup %2672  ;;  %2680 = vlog2.f32 %v1211_v44  ;;  %v1228_v40 = vadd.f32 1.0, %v2671_v17  ;;  %v1008_v16 = vmul.f32 1.442695, %v891_v45  ;;  %2281 = vmatpush.msra.mxu0 %v1660_v27  ;;  %v835_v63 = vand.u32 2147483647, %v4086_v52  ;;  %v640_v17 = vld [vmem:[#allocation9 + $0x1f0] sm:$0xff] }
 0x13e   :  { %v1677_v49 = vadd.f32 %v1579_v41, %v403_v42  ;;  %v1506_v48 = vadd.f32 %v1357_v51, %v722_v1  ;;  %v1391_v54 = vmul.f32 0.6931472, %v2673_v46  ;;  %v2675_v59 = vpop.eup %2674  ;;  %v1058_v19 = vmul.f32 1.442695, %v916_v0 }
 0x13f   :  { %2682 = vlog2.f32 %v1228_v40  ;;  %v1271_v5 = vmul.f32 0.6931472, %v2675_v59  ;;  %v2677_v8 = vpop.eup %2676  ;;  %v721_v61 = vmax.f32 %v4065_v21, 0.0  ;;  %v933_v2 = vsub.f32 0.0, %v835_v63 }
 0x140   :  { %2300 = vmatpush.msra.mxu1 %v1677_v49  ;;  %v1604_v3 = vmul.f32 %v1506_v48, %v624_v4  ;;  %v1523_v60 = vadd.f32 %v1391_v54, %v739_v39  ;;  %2684 = vpow2.f32 %v1008_v16  ;;  %v775_v34 = vand.u32 2147483647, %v4089_v58  ;;  %v4102_v16 = vld [vmem:[#allocation7 + $0x1e0] sm:$0xff] }
 0x141   :  { %2686 = vpow2.f32 %v1058_v19  ;;  %v1463_v55 = vadd.f32 %v1271_v5, %v679_v56  ;;  %v1168_v7 = vadd.f32 1.0, %v2677_v8  ;;  %v738_v22 = vmax.f32 %v4069_v12, 0.0  ;;  %v444_v49 = vld [vmem:[#allocation4 + $0x1f0] sm:$0xff]  ;;  %v4107_v19 = vld [vmem:[#allocation7 + $0x88] sm:$0xff] }
 0x142   :  { %v2679_v9 = vpop.eup %2678  ;;  %v1702_v14 = vadd.f32 %v1604_v3, %v428_v43  ;;  %v1621_v10 = vmul.f32 %v1523_v60, %v641_v47  ;;  %v1092_v23 = vmul.f32 1.442695, %v933_v2  ;;  %v873_v21 = vsub.f32 0.0, %v775_v34  ;;  %v4105_v54 = vld [vmem:[#allocation7] sm:$0xff] }
 0x143   :  { %v2681_v18 = vpop.eup %2680  ;;  %v1305_v6 = vmul.f32 0.6931472, %v2679_v9  ;;  %v1561_v13 = vmul.f32 %v1463_v55, %v581_v50  ;;  %2688 = vlog2.f32 %v1168_v7  ;;  %v792_v36 = vand.u32 2147483647, %v4095_v15  ;;  %v580_v8 = vld [vmem:[#allocation9 + $0x10] sm:$0xff] }
 0x144   :  { %2311 = vmatpush.msra.mxu2 %v1702_v14  ;;  %v1719_v57 = vadd.f32 %v1621_v10, %v445_v20  ;;  %v1355_v25 = vmul.f32 0.6931472, %v2681_v18  ;;  %2690 = vpow2.f32 %v1092_v23  ;;  %v972_v32 = vmul.f32 1.442695, %v873_v21 }
 0x145   :  { %v2683_v1 = vpop.eup %2682  ;;  %v1480_v39 = vadd.f32 %v1305_v6, %v696_v33  ;;  %v1659_v30 = vadd.f32 %v1561_v13, %v385_v35  ;;  %v817_v42 = vand.u32 2147483647, %v4097_v53  ;;  %v890_v41 = vsub.f32 0.0, %v792_v36 }
 0x146   :  { %v2685_v38 = vpop.eup %2684  ;;  %2330 = vmatpush.msra.mxu3 %v1719_v57  ;;  %v1505_v12 = vadd.f32 %v1355_v25, %v721_v61  ;;  %v1389_v62 = vmul.f32 0.6931472, %v2683_v1  ;;  %2692 = vpow2.f32 %v972_v32  ;;  %v678_v43 = vmax.f32 %v4074_v31, 0.0  ;;  %v4112_v61 = vld [vmem:[#allocation7 + $0x150] sm:$0xff]  ;;  %v4119_v25 = vld [vmem:[#allocation7 + $0x1d8] sm:$0xff] }
 0x147   :  { %v2687_v44 = vpop.eup %2686  ;;  %v1578_v45 = vmul.f32 %v1480_v39, %v598_v28  ;;  %v1185_v27 = vadd.f32 1.0, %v2685_v38  ;;  %2282 = vmatpush.msra.mxu0 %v1659_v30  ;;  %v915_v40 = vsub.f32 0.0, %v817_v42  ;;  %v1006_v48 = vmul.f32 1.442695, %v890_v41  ;;  %v622_v30 = vld [vmem:[#allocation9 + $0x160] sm:$0xff] }
 0x148   :  { %v1603_v51 = vmul.f32 %v1505_v12, %v623_v26  ;;  %v1522_v46 = vadd.f32 %v1389_v62, %v738_v22  ;;  %v1210_v4 = vadd.f32 1.0, %v2687_v44  ;;  %v695_v60 = vmax.f32 %v4078_v11, 0.0  ;;  %v384_v11 = vld [vmem:[#allocation4 + $0x10] sm:$0xff]  ;;  %v401_v62 = vld [vmem:[#allocation4 + $0x98] sm:$0xff] }
 0x149   :  { %v1676_v0 = vadd.f32 %v1578_v45, %v402_v37  ;;  %2694 = vlog2.f32 %v1185_v27  ;;  %v2689_v56 = vpop.eup %2688  ;;  %v1056_v33 = vmul.f32 1.442695, %v915_v40  ;;  %v834_v5 = vand.u32 2147483647, %v4102_v16  ;;  %v4122_v45 = vld [vmem:[#allocation7 + $0x278] sm:$0xff]  ;;  %v426_v27 = vld [vmem:[#allocation4 + $0x160] sm:$0xff] }
 0x14a   :  { %v1701_v59 = vadd.f32 %v1603_v51, %v427_v29  ;;  %v1620_v47 = vmul.f32 %v1522_v46, %v640_v17  ;;  %2696 = vlog2.f32 %v1210_v4  ;;  %v2691_v63 = vpop.eup %2690  ;;  %v1269_v3 = vmul.f32 0.6931472, %v2689_v56 }
 0x14b   :  { %2301 = vmatpush.msra.mxu1 %v1676_v0  ;;  %2698 = vpow2.f32 %v1006_v48  ;;  %v1227_v20 = vadd.f32 1.0, %v2691_v63  ;;  %v774_v50 = vand.u32 2147483647, %v4105_v54  ;;  %v720_v9 = vmax.f32 %v4080_v24, 0.0  ;;  %v4125_v0 = vld [vmem:[#allocation7 + $0x80] sm:$0xff]  ;;  %v639_v48 = vld [vmem:[#allocation9 + $0x1e8] sm:$0xff] }
 0x14c   :  { %2312 = vmatpush.msra.mxu2 %v1701_v59  ;;  %v1718_v31 = vadd.f32 %v1620_v47, %v444_v49  ;;  %2700 = vpow2.f32 %v1056_v33  ;;  %v2693_v2 = vpop.eup %2692  ;;  %v1462_v34 = vadd.f32 %v1269_v3, %v678_v43  ;;  %v932_v14 = vsub.f32 0.0, %v834_v5  ;;  %v443_v63 = vld [vmem:[#allocation4 + $0x1e8] sm:$0xff] }
 0x14d   :  { %v791_v10 = vand.u32 2147483647, %v4107_v19  ;;  %v737_v35 = vmax.f32 %v4086_v52, 0.0  ;;  %2702 = vlog2.f32 %v1227_v20  ;;  %v1167_v55 = vadd.f32 1.0, %v2693_v2  ;;  %v597_v52 = vld [vmem:[#allocation9 + $0x98] sm:$0xff] }
 0x14e   :  { %2331 = vmatpush.msra.mxu3 %v1718_v31  ;;  %v872_v7 = vsub.f32 0.0, %v774_v50  ;;  %v1560_v6 = vmul.f32 %v1462_v34, %v580_v8  ;;  %v1090_v22 = vmul.f32 1.442695, %v932_v14  ;;  %v816_v21 = vand.u32 2147483647, %v4112_v61  ;;  %v579_v31 = vld [vmem:[#allocation9 + $0x8] sm:$0xff] }
 0x14f   :  { %v2695_v18 = vpop.eup %2694  ;;  %v889_v23 = vsub.f32 0.0, %v791_v10  ;;  %v677_v24 = vmax.f32 %v4089_v58, 0.0  ;;  %2704 = vlog2.f32 %v1167_v55  ;;  %v833_v44 = vand.u32 2147483647, %v4119_v25  ;;  %v4131_v10 = vld [vmem:[#allocation7 + $0x148] sm:$0xff] }
 0x150   :  { %v2697_v57 = vpop.eup %2696  ;;  %v1303_v13 = vmul.f32 0.6931472, %v2695_v18  ;;  %v970_v28 = vmul.f32 1.442695, %v872_v7  ;;  %v1658_v39 = vadd.f32 %v1560_v6, %v384_v11  ;;  %2706 = vpow2.f32 %v1090_v22 }
 0x151   :  { %v2699_v1 = vpop.eup %2698  ;;  %v1353_v26 = vmul.f32 0.6931472, %v2697_v57  ;;  %v1004_v32 = vmul.f32 1.442695, %v889_v23  ;;  %v914_v12 = vsub.f32 0.0, %v816_v21  ;;  %v694_v41 = vmax.f32 %v4095_v15, 0.0 }
 0x152   :  { %v2701_v36 = vpop.eup %2700  ;;  %v1479_v38 = vadd.f32 %v1303_v13, %v695_v60  ;;  %v1184_v37 = vadd.f32 1.0, %v2699_v1  ;;  %2708 = vpow2.f32 %v970_v28  ;;  %2283 = vmatpush.msra.mxu0 %v1658_v39  ;;  %v931_v40 = vsub.f32 0.0, %v833_v44  ;;  %v596_v21 = vld [vmem:[#allocation9 + $0x90] sm:$0xff]  ;;  %v4133_v13 = vld [vmem:[#allocation7 + $0x1d0] sm:$0xff]  ;;  %v425_v44 = vld [vmem:[#allocation4 + $0x158] sm:$0xff] }
 0x153   :  { %v1504_v42 = vadd.f32 %v1353_v26, %v720_v9  ;;  %v1209_v58 = vadd.f32 1.0, %v2701_v36  ;;  %2710 = vpow2.f32 %v1004_v32  ;;  %v2703_v29 = vpop.eup %2702  ;;  %v1054_v51 = vmul.f32 1.442695, %v914_v12  ;;  %v621_v32 = vld [vmem:[#allocation9 + $0x158] sm:$0xff] }
 0x154   :  { %v1577_v17 = vmul.f32 %v1479_v38, %v597_v52  ;;  %2712 = vlog2.f32 %v1184_v37  ;;  %v1387_v4 = vmul.f32 0.6931472, %v2703_v29  ;;  %v719_v56 = vmax.f32 %v4097_v53, 0.0  ;;  %v4136_v38 = vld [vmem:[#allocation7 + $0x270] sm:$0xff] }
 0x155   :  { %v1602_v46 = vmul.f32 %v1504_v42, %v622_v30  ;;  %2714 = vlog2.f32 %v1209_v58  ;;  %v2705_v49 = vpop.eup %2704  ;;  %v853_v59 = vand.u32 2147483647, %v4122_v45  ;;  %v1088_v60 = vmul.f32 1.442695, %v931_v40  ;;  %v400_v30 = vld [vmem:[#allocation4 + $0x90] sm:$0xff] }
 0x156   :  { %v1675_v43 = vadd.f32 %v1577_v17, %v401_v62  ;;  %2716 = vpow2.f32 %v1054_v51  ;;  %v2707_v47 = vpop.eup %2706  ;;  %v1521_v15 = vadd.f32 %v1387_v4, %v737_v35  ;;  %v1267_v3 = vmul.f32 0.6931472, %v2705_v49  ;;  %v383_v35 = vld [vmem:[#allocation4 + $0x8] sm:$0xff] }
 0x157   :  { %v1700_v33 = vadd.f32 %v1602_v46, %v426_v27  ;;  %v736_v8 = vmax.f32 %v4102_v16, 0.0  ;;  %v1226_v20 = vadd.f32 1.0, %v2707_v47  ;;  %v951_v50 = vsub.f32 0.0, %v853_v59 }
 0x158   :  { %v2709_v5 = vpop.eup %2708  ;;  %2302 = vmatpush.msra.mxu1 %v1675_v43  ;;  %v790_v2 = vand.u32 2147483647, %v4125_v0  ;;  %v1619_v53 = vmul.f32 %v1521_v15, %v639_v48  ;;  %v1461_v9 = vadd.f32 %v1267_v3, %v677_v24  ;;  %2718 = vpow2.f32 %v1088_v60  ;;  %v442_v3 = vld [vmem:[#allocation4 + $0x1e0] sm:$0xff] }
 0x159   :  { %v2711_v34 = vpop.eup %2710  ;;  %2313 = vmatpush.msra.mxu2 %v1700_v33  ;;  %v1166_v14 = vadd.f32 1.0, %v2709_v5  ;;  %2720 = vlog2.f32 %v1226_v20  ;;  %v1128_v7 = vmul.f32 1.442695, %v951_v50  ;;  %v815_v39 = vand.u32 2147483647, %v4131_v10  ;;  %v578_v5 = vld [vmem:[#allocation9] sm:$0xff] }
 0x15a   :  { %v2713_v11 = vpop.eup %2712  ;;  %v1183_v55 = vadd.f32 1.0, %v2711_v34  ;;  %v888_v18 = vsub.f32 0.0, %v790_v2  ;;  %v1717_v22 = vadd.f32 %v1619_v53, %v443_v63  ;;  %v1559_v23 = vmul.f32 %v1461_v9, %v579_v31  ;;  %v595_v2 = vld [vmem:[#allocation9 + $0x88] sm:$0xff] }
 0x15b   :  { %v2715_v6 = vpop.eup %2714  ;;  %v1301_v57 = vmul.f32 0.6931472, %v2713_v11  ;;  %2722 = vlog2.f32 %v1166_v14  ;;  %v676_v12 = vmax.f32 %v4105_v54, 0.0  ;;  %v913_v62 = vsub.f32 0.0, %v815_v39 }
 0x15c   :  { %v2717_v28 = vpop.eup %2716  ;;  %v1351_v24 = vmul.f32 0.6931472, %v2715_v6  ;;  %2724 = vlog2.f32 %v1183_v55  ;;  %v1002_v1 = vmul.f32 1.442695, %v888_v18  ;;  %2332 = vmatpush.msra.mxu3 %v1717_v22  ;;  %v1657_v52 = vadd.f32 %v1559_v23, %v383_v35  ;;  %v382_v35 = vld [vmem:[#allocation4] sm:$0xff]  ;;  %v4148_v22 = vld [vmem:[#allocation7 + $0x140] sm:$0xff] }
 0x15d   :  { %v1478_v26 = vadd.f32 %v1301_v57, %v694_v41  ;;  %v1208_v36 = vadd.f32 1.0, %v2717_v28  ;;  %2726 = vpow2.f32 %v1128_v7  ;;  %v693_v29 = vmax.f32 %v4107_v19, 0.0  ;;  %v638_v19 = vld [vmem:[#allocation9 + $0x1e0] sm:$0xff]  ;;  %v620_v57 = vld [vmem:[#allocation9 + $0x150] sm:$0xff] }
 0x15e   :  { %v1503_v37 = vadd.f32 %v1351_v24, %v719_v56  ;;  %2728 = vpow2.f32 %v1002_v1  ;;  %v2719_v42 = vpop.eup %2718  ;;  %2284 = vmatpush.msra.mxu0 %v1657_v52  ;;  %v832_v17 = vand.u32 2147483647, %v4133_v13  ;;  %v1052_v46 = vmul.f32 1.442695, %v913_v62  ;;  %v4143_v56 = vld [vmem:[#allocation7 + $0x2f8] sm:$0xff]  ;;  %v4151_v24 = vld [vmem:[#allocation7 + $0x1c8] sm:$0xff] }
 0x15f   :  { %v1576_v58 = vmul.f32 %v1478_v26, %v596_v21  ;;  %2730 = vlog2.f32 %v1208_v36  ;;  %v2721_v27 = vpop.eup %2720  ;;  %v1225_v51 = vadd.f32 1.0, %v2719_v42  ;;  %v852_v4 = vand.u32 2147483647, %v4136_v38 }
 0x160   :  { %v1601_v41 = vmul.f32 %v1503_v37, %v621_v32  ;;  %v1385_v54 = vmul.f32 0.6931472, %v2721_v27  ;;  %v718_v43 = vmax.f32 %v4112_v61, 0.0  ;;  %v930_v48 = vsub.f32 0.0, %v832_v17  ;;  %v4153_v32 = vld [vmem:[#allocation7 + $0x268] sm:$0xff]  ;;  %v424_v37 = vld [vmem:[#allocation4 + $0x150] sm:$0xff] }
 0x161   :  { %v2723_v40 = vpop.eup %2722  ;;  %v1674_v49 = vadd.f32 %v1576_v58, %v400_v30  ;;  %2732 = vlog2.f32 %v1225_v51  ;;  %v950_v63 = vsub.f32 0.0, %v852_v4  ;;  %v869_v9 = vand.u32 2147483647, %v4143_v56  ;;  %v637_v58 = vld [vmem:[#allocation9 + $0x1d8] sm:$0xff] }
 0x162   :  { %v2725_v59 = vpop.eup %2724  ;;  %v1699_v47 = vadd.f32 %v1601_v41, %v425_v44  ;;  %v1265_v33 = vmul.f32 0.6931472, %v2723_v40  ;;  %v1520_v60 = vadd.f32 %v1385_v54, %v736_v8  ;;  %2734 = vpow2.f32 %v1052_v46  ;;  %v399_v8 = vld [vmem:[#allocation4 + $0x88] sm:$0xff] }
 0x163   :  { %v2727_v15 = vpop.eup %2726  ;;  %2303 = vmatpush.msra.mxu1 %v1674_v49  ;;  %v1299_v31 = vmul.f32 0.6931472, %v2725_v59  ;;  %v1086_v20 = vmul.f32 1.442695, %v930_v48  ;;  %v1126_v53 = vmul.f32 1.442695, %v950_v63 }
 0x164   :  { %v2729_v61 = vpop.eup %2728  ;;  %2314 = vmatpush.msra.mxu2 %v1699_v47  ;;  %v1460_v50 = vadd.f32 %v1265_v33, %v676_v12  ;;  %v1245_v34 = vadd.f32 1.0, %v2727_v15  ;;  %v1618_v11 = vmul.f32 %v1520_v60, %v638_v19  ;;  %v967_v6 = vsub.f32 0.0, %v869_v9  ;;  %v4160_v33 = vld [vmem:[#allocation7 + $0x2f0] sm:$0xff]  ;;  %v657_v15 = vld [vmem:[#allocation9 + $0x278] sm:$0xff] }
 0x165   :  { %v2731_v14 = vpop.eup %2730  ;;  %v1477_v55 = vadd.f32 %v1299_v31, %v693_v29  ;;  %v1182_v7 = vadd.f32 1.0, %v2729_v61  ;;  %2736 = vpow2.f32 %v1086_v20  ;;  %v735_v28 = vmax.f32 %v4119_v25, 0.0  ;;  %v594_v20 = vld [vmem:[#allocation9 + $0x80] sm:$0xff] }
 0x166   :  { %v1558_v16 = vmul.f32 %v1460_v50, %v578_v5  ;;  %v1349_v18 = vmul.f32 0.6931472, %v2731_v14  ;;  %2738 = vlog2.f32 %v1245_v34  ;;  %v1716_v23 = vadd.f32 %v1618_v11, %v442_v3  ;;  %v4163_v50 = vld [vmem:[#allocation7 + $0x138] sm:$0xff]  ;;  %v461_v34 = vld [vmem:[#allocation4 + $0x278] sm:$0xff] }
 0x167   :  { %v1575_v21 = vmul.f32 %v1477_v55, %v595_v2  ;;  %2740 = vlog2.f32 %v1182_v7  ;;  %v2733_v1 = vpop.eup %2732  ;;  %v1160_v26 = vmul.f32 1.442695, %v967_v6  ;;  %v755_v62 = vmax.f32 %v4122_v45, 0.0  ;;  %v441_v45 = vld [vmem:[#allocation4 + $0x1d8] sm:$0xff]  ;;  %v4167_v7 = vld [vmem:[#allocation7 + $0x1c0] sm:$0xff] }
 0x168   :  { %v1656_v39 = vadd.f32 %v1558_v16, %v382_v35  ;;  %v1502_v52 = vadd.f32 %v1349_v18, %v718_v43  ;;  %2742 = vpow2.f32 %v1126_v53  ;;  %v2735_v36 = vpop.eup %2734  ;;  %2333 = vmatpush.msra.mxu3 %v1716_v23  ;;  %v1383_v12 = vmul.f32 0.6931472, %v2733_v1  ;;  %v398_v35 = vld [vmem:[#allocation4 + $0x80] sm:$0xff]  ;;  %v4170_v23 = vld [vmem:[#allocation7 + $0x260] sm:$0xff] }
 0x169   :  { %v1673_v30 = vadd.f32 %v1575_v21, %v399_v8  ;;  %v814_v42 = vand.u32 2147483647, %v4148_v22  ;;  %v1207_v44 = vadd.f32 1.0, %v2735_v36  ;;  %2744 = vpow2.f32 %v1160_v26 }
 0x16a   :  { %2285 = vmatpush.msra.mxu0 %v1656_v39  ;;  %v1600_v25 = vmul.f32 %v1502_v52, %v620_v57  ;;  %v831_v29 = vand.u32 2147483647, %v4151_v24  ;;  %v1519_v27 = vadd.f32 %v1383_v12, %v735_v28  ;;  %v692_v41 = vmax.f32 %v4125_v0, 0.0 }
 0x16b   :  { %v2737_v17 = vpop.eup %2736  ;;  %2304 = vmatpush.msra.mxu1 %v1673_v30  ;;  %v912_v51 = vsub.f32 0.0, %v814_v42  ;;  %v851_v46 = vand.u32 2147483647, %v4153_v32  ;;  %2746 = vlog2.f32 %v1207_v44  ;;  %v717_v3 = vmax.f32 %v4131_v10, 0.0 }
 0x16c   :  { %v2739_v4 = vpop.eup %2738  ;;  %v1698_v40 = vadd.f32 %v1600_v25, %v424_v37  ;;  %v1224_v49 = vadd.f32 1.0, %v2737_v17  ;;  %v929_v54 = vsub.f32 0.0, %v831_v29  ;;  %v1617_v48 = vmul.f32 %v1519_v27, %v637_v58  ;;  %v423_v58 = vld [vmem:[#allocation4 + $0x148] sm:$0xff] }
 0x16d   :  { %v2741_v43 = vpop.eup %2740  ;;  %v1423_v59 = vmul.f32 0.6931472, %v2739_v4  ;;  %v1050_v47 = vmul.f32 1.442695, %v912_v51  ;;  %v949_v19 = vsub.f32 0.0, %v851_v46  ;;  %v734_v10 = vmax.f32 %v4133_v13, 0.0 }
 0x16e   :  { %v2743_v63 = vpop.eup %2742  ;;  %2315 = vmatpush.msra.mxu2 %v1698_v40  ;;  %v1297_v0 = vmul.f32 0.6931472, %v2741_v43  ;;  %2748 = vlog2.f32 %v1224_v49  ;;  %v1084_v60 = vmul.f32 1.442695, %v929_v54  ;;  %v1715_v5 = vadd.f32 %v1617_v48, %v441_v45  ;;  %v619_v13 = vld [vmem:[#allocation9 + $0x148] sm:$0xff]  ;;  %v4176_v40 = vld [vmem:[#allocation7 + $0x2e8] sm:$0xff] }
 0x16f   :  { %v1539_v31 = vadd.f32 %v1423_v59, %v755_v62  ;;  %v1244_v61 = vadd.f32 1.0, %v2743_v63  ;;  %2750 = vpow2.f32 %v1050_v47  ;;  %v2745_v2 = vpop.eup %2744  ;;  %v1124_v9 = vmul.f32 1.442695, %v949_v19  ;;  %v440_v49 = vld [vmem:[#allocation4 + $0x1d0] sm:$0xff] }
 0x170   :  { %v1476_v53 = vadd.f32 %v1297_v0, %v692_v41  ;;  %2752 = vpow2.f32 %v1084_v60  ;;  %v868_v14 = vand.u32 2147483647, %v4160_v33  ;;  %2334 = vmatpush.msra.mxu3 %v1715_v5  ;;  %v1261_v55 = vadd.f32 1.0, %v2745_v2  ;;  %v656_v19 = vld [vmem:[#allocation9 + $0x270] sm:$0xff]  ;;  %v4183_v2 = vld [vmem:[#allocation7 + $0x1b8] sm:$0xff] }
 0x171   :  { %v1637_v11 = vmul.f32 %v1539_v31, %v657_v15  ;;  %2754 = vlog2.f32 %v1244_v61  ;;  %v2747_v16 = vpop.eup %2746  ;;  %v813_v6 = vand.u32 2147483647, %v4163_v50  ;;  %v754_v28 = vmax.f32 %v4136_v38, 0.0  ;;  %v636_v38 = vld [vmem:[#allocation9 + $0x1d0] sm:$0xff]  ;;  %v4179_v15 = vld [vmem:[#allocation7 + $0x130] sm:$0xff] }
 0x172   :  { %v1574_v8 = vmul.f32 %v1476_v53, %v594_v20  ;;  %2756 = vpow2.f32 %v1124_v9  ;;  %v966_v18 = vsub.f32 0.0, %v868_v14  ;;  %v1347_v57 = vmul.f32 0.6931472, %v2747_v16  ;;  %v460_v31 = vld [vmem:[#allocation4 + $0x270] sm:$0xff]  ;;  %v673_v20 = vld [vmem:[#allocation9 + $0x2f8] sm:$0xff] }
 0x173   :  { %v1735_v21 = vadd.f32 %v1637_v11, %v461_v34  ;;  %2758 = vlog2.f32 %v1261_v55  ;;  %v911_v26 = vsub.f32 0.0, %v813_v6  ;;  %v830_v36 = vand.u32 2147483647, %v4167_v7  ;;  %v477_v11 = vld [vmem:[#allocation4 + $0x2f8] sm:$0xff] }
 0x174   :  { %v2749_v1 = vpop.eup %2748  ;;  %v1672_v39 = vadd.f32 %v1574_v8, %v398_v35  ;;  %v1158_v52 = vmul.f32 1.442695, %v966_v18  ;;  %v1501_v37 = vadd.f32 %v1347_v57, %v717_v3  ;;  %v771_v62 = vmax.f32 %v4143_v56, 0.0 }
 0x175   :  { %v2751_v30 = vpop.eup %2750  ;;  %2350 = vmatpush.msrb.mxu0 %v1735_v21  ;;  %v1381_v12 = vmul.f32 0.6931472, %v2749_v1  ;;  %v850_v42 = vand.u32 2147483647, %v4170_v23  ;;  %v1048_v29 = vmul.f32 1.442695, %v911_v26 }
 0x176   :  { %v2753_v25 = vpop.eup %2752  ;;  %2305 = vmatpush.msra.mxu1 %v1672_v39  ;;  %v1206_v44 = vadd.f32 1.0, %v2751_v30  ;;  %2760 = vpow2.f32 %v1158_v52  ;;  %v928_v17 = vsub.f32 0.0, %v830_v36  ;;  %v1599_v41 = vmul.f32 %v1501_v37, %v619_v13  ;;  %v4188_v21 = vld [vmem:[#allocation7 + $0x258] sm:$0xff]  ;;  %v618_v52 = vld [vmem:[#allocation9 + $0x140] sm:$0xff] }
 0x177   :  { %v2755_v27 = vpop.eup %2754  ;;  %v1518_v51 = vadd.f32 %v1381_v12, %v734_v10  ;;  %v1223_v46 = vadd.f32 1.0, %v2753_v25  ;;  %v948_v4 = vsub.f32 0.0, %v850_v42  ;;  %v716_v54 = vmax.f32 %v4148_v22, 0.0 }
 0x178   :  { %v2757_v45 = vpop.eup %2756  ;;  %v1421_v56 = vmul.f32 0.6931472, %v2755_v27  ;;  %2762 = vlog2.f32 %v1206_v44  ;;  %v1082_v43 = vmul.f32 1.442695, %v928_v17  ;;  %v1697_v59 = vadd.f32 %v1599_v41, %v423_v58  ;;  %v439_v41 = vld [vmem:[#allocation4 + $0x1c8] sm:$0xff] }
 0x179   :  { %v2759_v48 = vpop.eup %2758  ;;  %v1616_v47 = vmul.f32 %v1518_v51, %v636_v38  ;;  %2764 = vlog2.f32 %v1223_v46  ;;  %v1243_v63 = vadd.f32 1.0, %v2757_v45  ;;  %v1122_v60 = vmul.f32 1.442695, %v948_v4  ;;  %v422_v38 = vld [vmem:[#allocation4 + $0x140] sm:$0xff]  ;;  %v655_v51 = vld [vmem:[#allocation9 + $0x268] sm:$0xff] }
 0x17a   :  { %v1538_v0 = vadd.f32 %v1421_v56, %v754_v28  ;;  %v1455_v3 = vmul.f32 0.6931472, %v2759_v48  ;;  %2766 = vpow2.f32 %v1048_v29  ;;  %2316 = vmatpush.msra.mxu2 %v1697_v59  ;;  %v733_v22 = vmax.f32 %v4151_v24, 0.0 }
 0x17b   :  { %v1714_v5 = vadd.f32 %v1616_v47, %v440_v49  ;;  %2768 = vlog2.f32 %v1243_v63  ;;  %v867_v61 = vand.u32 2147483647, %v4176_v40  ;;  %v812_v14 = vand.u32 2147483647, %v4179_v15  ;;  %v459_v47 = vld [vmem:[#allocation4 + $0x268] sm:$0xff] }
 0x17c   :  { %v2761_v34 = vpop.eup %2760  ;;  %v1636_v53 = vmul.f32 %v1538_v0, %v656_v19  ;;  %v1555_v9 = vadd.f32 %v1455_v3, %v771_v62  ;;  %2770 = vpow2.f32 %v1082_v43  ;;  %v753_v35 = vmax.f32 %v4153_v32, 0.0  ;;  %v635_v62 = vld [vmem:[#allocation9 + $0x1c8] sm:$0xff]  ;;  %v4194_v43 = vld [vmem:[#allocation7 + $0x128] sm:$0xff] }
 0x17d   :  { %2335 = vmatpush.msra.mxu3 %v1714_v5  ;;  %v1260_v10 = vadd.f32 1.0, %v2761_v34  ;;  %2772 = vpow2.f32 %v1122_v60  ;;  %v965_v55 = vsub.f32 0.0, %v867_v61  ;;  %v910_v18 = vsub.f32 0.0, %v812_v14  ;;  %v4197_v5 = vld [vmem:[#allocation7 + $0x1b0] sm:$0xff] }
 0x17e   :  { %v2763_v16 = vpop.eup %2762  ;;  %v1734_v24 = vadd.f32 %v1636_v53, %v460_v31  ;;  %v1653_v8 = vmul.f32 %v1555_v9, %v673_v20  ;;  %v829_v6 = vand.u32 2147483647, %v4183_v2  ;;  %v770_v1 = vmax.f32 %v4160_v33, 0.0  ;;  %v672_v20 = vld [vmem:[#allocation9 + $0x2f0] sm:$0xff] }
 0x17f   :  { %v2765_v57 = vpop.eup %2764  ;;  %v1345_v28 = vmul.f32 0.6931472, %v2763_v16  ;;  %2774 = vlog2.f32 %v1260_v10  ;;  %v1156_v39 = vmul.f32 1.442695, %v965_v55  ;;  %v1046_v36 = vmul.f32 1.442695, %v910_v18 }
 0x180   :  { %v2767_v13 = vpop.eup %2766  ;;  %2351 = vmatpush.msrb.mxu0 %v1734_v24  ;;  %v1751_v32 = vadd.f32 %v1653_v8, %v477_v11  ;;  %v1379_v26 = vmul.f32 0.6931472, %v2765_v57  ;;  %v927_v30 = vsub.f32 0.0, %v829_v6  ;;  %v849_v25 = vand.u32 2147483647, %v4188_v21  ;;  %v476_v10 = vld [vmem:[#allocation4 + $0x2f0] sm:$0xff] }
 0x181   :  { %v2769_v37 = vpop.eup %2768  ;;  %v1500_v12 = vadd.f32 %v1345_v28, %v716_v54  ;;  %v1205_v42 = vadd.f32 1.0, %v2767_v13  ;;  %2776 = vpow2.f32 %v1156_v39  ;;  %v4192_v54 = vld [vmem:[#allocation7 + $0x2e0] sm:$0xff]  ;;  %v715_v19 = vmax.f32 %v4163_v50, 0.0  ;;  %v4205_v28 = vld [vmem:[#allocation7 + $0x250] sm:$0xff]  ;;  %v617_v39 = vld [vmem:[#allocation9 + $0x138] sm:$0xff] }
 0x182   :  { %v2771_v58 = vpop.eup %2770  ;;  %2370 = vmatpush.msrb.mxu1 %v1751_v32  ;;  %v1517_v33 = vadd.f32 %v1379_v26, %v733_v22  ;;  %v1419_v44 = vmul.f32 0.6931472, %v2769_v37  ;;  %2778 = vpow2.f32 %v1046_v36  ;;  %v1080_v29 = vmul.f32 1.442695, %v927_v30  ;;  %v421_v36 = vld [vmem:[#allocation4 + $0x138] sm:$0xff] }
 0x183   :  { %v2773_v17 = vpop.eup %2772  ;;  %v1598_v27 = vmul.f32 %v1500_v12, %v618_v52  ;;  %2780 = vlog2.f32 %v1205_v42  ;;  %v1222_v46 = vadd.f32 1.0, %v2771_v58  ;;  %v947_v4 = vsub.f32 0.0, %v849_v25  ;;  %v634_v25 = vld [vmem:[#allocation9 + $0x1c0] sm:$0xff] }
 0x184   :  { %v1615_v45 = vmul.f32 %v1517_v33, %v635_v62  ;;  %v1537_v49 = vadd.f32 %v1419_v44, %v753_v35  ;;  %v1242_v56 = vadd.f32 1.0, %v2773_v17  ;;  %2782 = vpow2.f32 %v1080_v29  ;;  %v4207_v62 = vld [vmem:[#allocation7 + $0x2d8] sm:$0xff]  ;;  %v654_v29 = vld [vmem:[#allocation9 + $0x260] sm:$0xff] }
 0x185   :  { %v2775_v48 = vpop.eup %2774  ;;  %v1696_v59 = vadd.f32 %v1598_v27, %v422_v38  ;;  %2784 = vlog2.f32 %v1222_v46  ;;  %v1120_v63 = vmul.f32 1.442695, %v947_v4  ;;  %v732_v22 = vmax.f32 %v4167_v7, 0.0  ;;  %v438_v27 = vld [vmem:[#allocation4 + $0x1c0] sm:$0xff] }
 0x186   :  { %v1713_v0 = vadd.f32 %v1615_v45, %v439_v41  ;;  %v1635_v3 = vmul.f32 %v1537_v49, %v655_v51  ;;  %v1453_v60 = vmul.f32 0.6931472, %v2775_v48  ;;  %2786 = vlog2.f32 %v1242_v56  ;;  %v458_v56 = vld [vmem:[#allocation4 + $0x260] sm:$0xff]  ;;  %v4212_v48 = vld [vmem:[#allocation7 + $0x120] sm:$0xff] }
 0x187   :  { %v2777_v31 = vpop.eup %2776  ;;  %2317 = vmatpush.msra.mxu2 %v1696_v59  ;;  %2788 = vpow2.f32 %v1120_v63  ;;  %v866_v61 = vand.u32 2147483647, %v4192_v54  ;;  %v811_v34 = vand.u32 2147483647, %v4194_v43  ;;  %v752_v14 = vmax.f32 %v4170_v23, 0.0 }
 0x188   :  { %v2779_v53 = vpop.eup %2778  ;;  %2336 = vmatpush.msra.mxu3 %v1713_v0  ;;  %v1733_v50 = vadd.f32 %v1635_v3, %v459_v47  ;;  %v1554_v9 = vadd.f32 %v1453_v60, %v770_v1  ;;  %v1259_v11 = vadd.f32 1.0, %v2777_v31  ;;  %v828_v8 = vand.u32 2147483647, %v4197_v5  ;;  %v671_v3 = vld [vmem:[#allocation9 + $0x2e8] sm:$0xff] }
 0x189   :  { %v2781_v35 = vpop.eup %2780  ;;  %v1204_v55 = vadd.f32 1.0, %v2779_v53  ;;  %v964_v16 = vsub.f32 0.0, %v866_v61  ;;  %v909_v24 = vsub.f32 0.0, %v811_v34  ;;  %v769_v57 = vmax.f32 %v4176_v40, 0.0 }
 0x18a   :  { %v2783_v7 = vpop.eup %2782  ;;  %2352 = vmatpush.msrb.mxu0 %v1733_v50  ;;  %v1652_v18 = vmul.f32 %v1554_v9, %v672_v20  ;;  %v1343_v6 = vmul.f32 0.6931472, %v2781_v35  ;;  %2790 = vlog2.f32 %v1259_v11  ;;  %v926_v12 = vsub.f32 0.0, %v828_v8  ;;  %v616_v50 = vld [vmem:[#allocation9 + $0x130] sm:$0xff]  ;;  %v475_v11 = vld [vmem:[#allocation4 + $0x2e8] sm:$0xff] }
 0x18b   :  { %v2785_v1 = vpop.eup %2784  ;;  %2792 = vlog2.f32 %v1204_v55  ;;  %v1221_v23 = vadd.f32 1.0, %v2783_v7  ;;  %v1154_v13 = vmul.f32 1.442695, %v964_v16  ;;  %v1044_v32 = vmul.f32 1.442695, %v909_v24  ;;  %v420_v8 = vld [vmem:[#allocation4 + $0x130] sm:$0xff] }
 0x18c   :  { %v2787_v52 = vpop.eup %2786  ;;  %v1750_v26 = vadd.f32 %v1652_v18, %v476_v10  ;;  %v1499_v30 = vadd.f32 %v1343_v6, %v715_v19  ;;  %v1377_v37 = vmul.f32 0.6931472, %v2785_v1  ;;  %v714_v58 = vmax.f32 %v4179_v15, 0.0  ;;  %v633_v7 = vld [vmem:[#allocation9 + $0x1b8] sm:$0xff] }
 0x18d   :  { %v2789_v42 = vpop.eup %2788  ;;  %v1417_v40 = vmul.f32 0.6931472, %v2787_v52  ;;  %2794 = vlog2.f32 %v1221_v23  ;;  %v848_v38 = vand.u32 2147483647, %v4205_v28  ;;  %v1078_v51 = vmul.f32 1.442695, %v926_v12 }
 0x18e   :  { %2371 = vmatpush.msrb.mxu1 %v1750_v26  ;;  %v1597_v33 = vmul.f32 %v1499_v30, %v617_v39  ;;  %v1516_v44 = vadd.f32 %v1377_v37, %v732_v22  ;;  %v1241_v17 = vadd.f32 1.0, %v2789_v42  ;;  %2796 = vpow2.f32 %v1154_v13  ;;  %v4215_v22 = vld [vmem:[#allocation7 + $0x1a8] sm:$0xff] }
 0x18f   :  { %v1536_v41 = vadd.f32 %v1417_v40, %v752_v14  ;;  %2798 = vpow2.f32 %v1044_v32  ;;  %v946_v46 = vsub.f32 0.0, %v848_v38  ;;  %v865_v15 = vand.u32 2147483647, %v4207_v62  ;;  %v437_v26 = vld [vmem:[#allocation4 + $0x1b8] sm:$0xff]  ;;  %v4222_v40 = vld [vmem:[#allocation7 + $0x2d0] sm:$0xff] }
 0x190   :  { %v2791_v4 = vpop.eup %2790  ;;  %v1695_v45 = vadd.f32 %v1597_v33, %v421_v36  ;;  %v1614_v49 = vmul.f32 %v1516_v44, %v634_v25  ;;  %2800 = vlog2.f32 %v1241_v17  ;;  %v731_v31 = vmax.f32 %v4183_v2, 0.0  ;;  %v4220_v30 = vld [vmem:[#allocation7 + $0x248] sm:$0xff] }
 0x191   :  { %v2793_v59 = vpop.eup %2792  ;;  %v1634_v47 = vmul.f32 %v1536_v41, %v654_v29  ;;  %v1451_v19 = vmul.f32 0.6931472, %v2791_v4  ;;  %2802 = vpow2.f32 %v1078_v51  ;;  %v1118_v63 = vmul.f32 1.442695, %v946_v46  ;;  %v653_v42 = vld [vmem:[#allocation9 + $0x258] sm:$0xff]  ;;  %v4225_v29 = vld [vmem:[#allocation7 + $0x118] sm:$0xff] }
 0x192   :  { %2318 = vmatpush.msra.mxu2 %v1695_v45  ;;  %v1712_v0 = vadd.f32 %v1614_v49, %v438_v27  ;;  %v1341_v60 = vmul.f32 0.6931472, %v2793_v59  ;;  %v963_v20 = vsub.f32 0.0, %v865_v15  ;;  %v810_v9 = vand.u32 2147483647, %v4212_v48  ;;  %v457_v27 = vld [vmem:[#allocation4 + $0x258] sm:$0xff] }
 0x193   :  { %v2795_v61 = vpop.eup %2794  ;;  %v1732_v34 = vadd.f32 %v1634_v47, %v458_v56  ;;  %v1553_v53 = vadd.f32 %v1451_v19, %v769_v57  ;;  %2804 = vpow2.f32 %v1118_v63  ;;  %v751_v55 = vmax.f32 %v4188_v21, 0.0  ;;  %v4232_v47 = vld [vmem:[#allocation7 + $0x1a0] sm:$0xff] }
 0x194   :  { %v2797_v14 = vpop.eup %2796  ;;  %2337 = vmatpush.msra.mxu3 %v1712_v0  ;;  %v1498_v35 = vadd.f32 %v1341_v60, %v714_v58  ;;  %v1375_v10 = vmul.f32 0.6931472, %v2795_v61  ;;  %v1152_v16 = vmul.f32 1.442695, %v963_v20  ;;  %v908_v6 = vsub.f32 0.0, %v810_v9  ;;  %v670_v0 = vld [vmem:[#allocation9 + $0x2e0] sm:$0xff] }
 0x195   :  { %v2799_v24 = vpop.eup %2798  ;;  %2353 = vmatpush.msrb.mxu0 %v1732_v34  ;;  %v1651_v2 = vmul.f32 %v1553_v53, %v671_v3  ;;  %v1258_v18 = vadd.f32 1.0, %v2797_v14  ;;  %v827_v57 = vand.u32 2147483647, %v4215_v22  ;;  %v768_v33 = vmax.f32 %v4192_v54, 0.0 }
 0x196   :  { %v2801_v1 = vpop.eup %2800  ;;  %v1596_v39 = vmul.f32 %v1498_v35, %v616_v50  ;;  %v1515_v23 = vadd.f32 %v1375_v10, %v731_v31  ;;  %v1203_v13 = vadd.f32 1.0, %v2799_v24  ;;  %2806 = vpow2.f32 %v1152_v16  ;;  %v615_v10 = vld [vmem:[#allocation9 + $0x128] sm:$0xff]  ;;  %v474_v24 = vld [vmem:[#allocation4 + $0x2e0] sm:$0xff] }
 0x197   :  { %v2803_v32 = vpop.eup %2802  ;;  %v1749_v52 = vadd.f32 %v1651_v2, %v475_v11  ;;  %v1415_v36 = vmul.f32 0.6931472, %v2801_v1  ;;  %2808 = vlog2.f32 %v1258_v18  ;;  %v1042_v21 = vmul.f32 1.442695, %v908_v6  ;;  %v419_v6 = vld [vmem:[#allocation4 + $0x128] sm:$0xff] }
 0x198   :  { %v1694_v37 = vadd.f32 %v1596_v39, %v420_v8  ;;  %v1613_v12 = vmul.f32 %v1515_v23, %v633_v7  ;;  %2810 = vlog2.f32 %v1203_v13  ;;  %v1220_v25 = vadd.f32 1.0, %v2803_v32 }
 0x199   :  { %v2805_v58 = vpop.eup %2804  ;;  %2372 = vmatpush.msrb.mxu1 %v1749_v52  ;;  %v1535_v38 = vadd.f32 %v1415_v36, %v751_v55  ;;  %2812 = vpow2.f32 %v1042_v21  ;;  %v925_v44 = vsub.f32 0.0, %v827_v57  ;;  %v847_v51 = vand.u32 2147483647, %v4220_v30  ;;  %v632_v57 = vld [vmem:[#allocation9 + $0x1b0] sm:$0xff] }
 0x19a   :  { %2319 = vmatpush.msra.mxu2 %v1694_v37  ;;  %v1711_v17 = vadd.f32 %v1613_v12, %v437_v26  ;;  %2814 = vlog2.f32 %v1220_v25  ;;  %v1240_v41 = vadd.f32 1.0, %v2805_v58  ;;  %v713_v4 = vmax.f32 %v4194_v43, 0.0  ;;  %v4234_v43 = vld [vmem:[#allocation7 + $0x240] sm:$0xff]  ;;  %v4240_v26 = vld [vmem:[#allocation7 + $0x2c8] sm:$0xff] }
 0x19b   :  { %v1633_v46 = vmul.f32 %v1535_v38, %v653_v42  ;;  %v1076_v45 = vmul.f32 1.442695, %v925_v44  ;;  %v864_v49 = vand.u32 2147483647, %v4222_v40  ;;  %v730_v54 = vmax.f32 %v4197_v5, 0.0  ;;  %v436_v21 = vld [vmem:[#allocation4 + $0x1b0] sm:$0xff] }
 0x19c   :  { %v2807_v56 = vpop.eup %2806  ;;  %2338 = vmatpush.msra.mxu3 %v1711_v17  ;;  %2816 = vlog2.f32 %v1240_v41  ;;  %v945_v15 = vsub.f32 0.0, %v847_v51  ;;  %v809_v59 = vand.u32 2147483647, %v4225_v29  ;;  %v750_v61 = vmax.f32 %v4205_v28, 0.0  ;;  %v652_v37 = vld [vmem:[#allocation9 + $0x250] sm:$0xff] }
 0x19d   :  { %v2809_v19 = vpop.eup %2808  ;;  %v1731_v63 = vadd.f32 %v1633_v46, %v457_v27  ;;  %v1257_v3 = vadd.f32 1.0, %v2807_v56  ;;  %2818 = vpow2.f32 %v1076_v45  ;;  %v962_v60 = vsub.f32 0.0, %v864_v49  ;;  %v669_v56 = vld [vmem:[#allocation9 + $0x2d8] sm:$0xff] }
 0x19e   :  { %v2811_v31 = vpop.eup %2810  ;;  %v1449_v20 = vmul.f32 0.6931472, %v2809_v19  ;;  %v1116_v34 = vmul.f32 1.442695, %v945_v15  ;;  %v907_v5 = vsub.f32 0.0, %v809_v59  ;;  %v767_v1 = vmax.f32 %v4207_v62, 0.0 }
 0x19f   :  { %v2813_v53 = vpop.eup %2812  ;;  %2354 = vmatpush.msrb.mxu0 %v1731_v63  ;;  %v1339_v50 = vmul.f32 0.6931472, %v2811_v31  ;;  %2820 = vlog2.f32 %v1257_v3  ;;  %v1150_v9 = vmul.f32 1.442695, %v962_v60  ;;  %v826_v14 = vand.u32 2147483647, %v4232_v47 }
 0x1a0   :  { %v2815_v11 = vpop.eup %2814  ;;  %v1552_v35 = vadd.f32 %v1449_v20, %v768_v33  ;;  %v1202_v55 = vadd.f32 1.0, %v2813_v53  ;;  %2822 = vpow2.f32 %v1116_v34  ;;  %v1040_v16 = vmul.f32 1.442695, %v907_v5  ;;  %v456_v62 = vld [vmem:[#allocation4 + $0x250] sm:$0xff]  ;;  %v473_v31 = vld [vmem:[#allocation4 + $0x2d8] sm:$0xff]  ;;  %v4249_v34 = vld [vmem:[#allocation7 + $0x238] sm:$0xff] }
 0x1a1   :  { %v1497_v2 = vadd.f32 %v1339_v50, %v713_v4  ;;  %v1373_v8 = vmul.f32 0.6931472, %v2815_v11  ;;  %2824 = vpow2.f32 %v1150_v9  ;;  %v924_v28 = vsub.f32 0.0, %v826_v14  ;;  %v614_v53 = vld [vmem:[#allocation9 + $0x120] sm:$0xff] }
 0x1a2   :  { %v2817_v7 = vpop.eup %2816  ;;  %v1650_v18 = vmul.f32 %v1552_v35, %v670_v0  ;;  %2826 = vlog2.f32 %v1202_v55  ;;  %v846_v39 = vand.u32 2147483647, %v4234_v43  ;;  %v712_v17 = vmax.f32 %v4212_v48, 0.0  ;;  %v4244_v48 = vld [vmem:[#allocation7 + $0x110] sm:$0xff]  ;;  %v4246_v0 = vld [vmem:[#allocation7 + $0x198] sm:$0xff] }
 0x1a3   :  { %v2819_v23 = vpop.eup %2818  ;;  %v1595_v13 = vmul.f32 %v1497_v2, %v615_v10  ;;  %v1514_v32 = vadd.f32 %v1373_v8, %v730_v54  ;;  %v1413_v52 = vmul.f32 0.6931472, %v2817_v7  ;;  %2828 = vpow2.f32 %v1040_v16 }
 0x1a4   :  { %v1748_v36 = vadd.f32 %v1650_v18, %v474_v24  ;;  %v1219_v12 = vadd.f32 1.0, %v2819_v23  ;;  %v1074_v42 = vmul.f32 1.442695, %v924_v28  ;;  %v944_v25 = vsub.f32 0.0, %v846_v39  ;;  %v418_v24 = vld [vmem:[#allocation4 + $0x120] sm:$0xff] }
 0x1a5   :  { %v2821_v58 = vpop.eup %2820  ;;  %v1693_v38 = vadd.f32 %v1595_v13, %v419_v6  ;;  %v1612_v33 = vmul.f32 %v1514_v32, %v632_v57  ;;  %v1534_v44 = vadd.f32 %v1413_v52, %v750_v61  ;;  %v863_v46 = vand.u32 2147483647, %v4240_v26  ;;  %v4257_v13 = vld [vmem:[#allocation7 + $0x2c0] sm:$0xff]  ;;  %v435_v52 = vld [vmem:[#allocation4 + $0x1a8] sm:$0xff] }
 0x1a6   :  { %v2823_v27 = vpop.eup %2822  ;;  %2373 = vmatpush.msrb.mxu1 %v1748_v36  ;;  %v1447_v41 = vmul.f32 0.6931472, %v2821_v58  ;;  %2830 = vlog2.f32 %v1219_v12  ;;  %v1114_v51 = vmul.f32 1.442695, %v944_v25  ;;  %v729_v61 = vmax.f32 %v4215_v22, 0.0  ;;  %v4259_v12 = vld [vmem:[#allocation7 + $0x108] sm:$0xff] }
 0x1a7   :  { %v2825_v4 = vpop.eup %2824  ;;  %2320 = vmatpush.msra.mxu2 %v1693_v38  ;;  %v1710_v45 = vadd.f32 %v1612_v33, %v436_v21  ;;  %v1632_v49 = vmul.f32 %v1534_v44, %v652_v37  ;;  %v1239_v54 = vadd.f32 1.0, %v2823_v27  ;;  %2832 = vpow2.f32 %v1074_v42  ;;  %v651_v33 = vld [vmem:[#allocation9 + $0x248] sm:$0xff] }
 0x1a8   :  { %v2827_v15 = vpop.eup %2826  ;;  %v1551_v59 = vadd.f32 %v1447_v41, %v767_v1  ;;  %v1256_v19 = vadd.f32 1.0, %v2825_v4  ;;  %2834 = vpow2.f32 %v1114_v51  ;;  %v961_v63 = vsub.f32 0.0, %v863_v46  ;;  %v668_v41 = vld [vmem:[#allocation9 + $0x2d0] sm:$0xff] }
 0x1a9   :  { %v2829_v3 = vpop.eup %2828  ;;  %2339 = vmatpush.msra.mxu3 %v1710_v45  ;;  %v1730_v60 = vadd.f32 %v1632_v49, %v456_v62  ;;  %v1337_v20 = vmul.f32 0.6931472, %v2827_v15  ;;  %2836 = vlog2.f32 %v1239_v54  ;;  %v749_v11 = vmax.f32 %v4220_v30, 0.0  ;;  %v631_v30 = vld [vmem:[#allocation9 + $0x1a8] sm:$0xff]  ;;  %v4264_v15 = vld [vmem:[#allocation7 + $0x190] sm:$0xff] }
 0x1aa   :  { %v1649_v5 = vmul.f32 %v1551_v59, %v669_v56  ;;  %2838 = vlog2.f32 %v1256_v19  ;;  %v1201_v50 = vadd.f32 1.0, %v2829_v3  ;;  %v1148_v9 = vmul.f32 1.442695, %v961_v63  ;;  %v455_v49 = vld [vmem:[#allocation4 + $0x248] sm:$0xff]  ;;  %v472_v19 = vld [vmem:[#allocation4 + $0x2d0] sm:$0xff]  ;;  %v613_v63 = vld [vmem:[#allocation9 + $0x118] sm:$0xff] }
 0x1ab   :  { %2355 = vmatpush.msrb.mxu0 %v1730_v60  ;;  %v1496_v14 = vadd.f32 %v1337_v20, %v712_v17  ;;  %v808_v35 = vand.u32 2147483647, %v4244_v48  ;;  %v825_v10 = vand.u32 2147483647, %v4246_v0  ;;  %v766_v22 = vmax.f32 %v4222_v40, 0.0 }
 0x1ac   :  { %v2831_v55 = vpop.eup %2830  ;;  %v1747_v16 = vadd.f32 %v1649_v5, %v473_v31  ;;  %2840 = vlog2.f32 %v1201_v50  ;;  %v845_v2 = vand.u32 2147483647, %v4249_v34  ;;  %v711_v57 = vmax.f32 %v4225_v29, 0.0  ;;  %v417_v50 = vld [vmem:[#allocation4 + $0x118] sm:$0xff] }
 0x1ad   :  { %v2833_v8 = vpop.eup %2832  ;;  %v1594_v28 = vmul.f32 %v1496_v14, %v614_v53  ;;  %v1371_v7 = vmul.f32 0.6931472, %v2831_v55  ;;  %2842 = vpow2.f32 %v1148_v9  ;;  %v906_v18 = vsub.f32 0.0, %v808_v35 }
 0x1ae   :  { %v2835_v6 = vpop.eup %2834  ;;  %2374 = vmatpush.msrb.mxu1 %v1747_v16  ;;  %v1218_v1 = vadd.f32 1.0, %v2833_v8  ;;  %v923_v39 = vsub.f32 0.0, %v825_v10  ;;  %v943_v23 = vsub.f32 0.0, %v845_v2  ;;  %v862_v44 = vand.u32 2147483647, %v4257_v13  ;;  %v630_v2 = vld [vmem:[#allocation9 + $0x1a0] sm:$0xff] }
 0x1af   :  { %v2837_v32 = vpop.eup %2836  ;;  %v1692_v40 = vadd.f32 %v1594_v28, %v418_v24  ;;  %v1513_v36 = vadd.f32 %v1371_v7, %v729_v61  ;;  %v1238_v21 = vadd.f32 1.0, %v2835_v6  ;;  %v1038_v37 = vmul.f32 1.442695, %v906_v18  ;;  %v4268_v24 = vld [vmem:[#allocation7 + $0x230] sm:$0xff] }
 0x1b0   :  { %v2839_v42 = vpop.eup %2838  ;;  %v1411_v25 = vmul.f32 0.6931472, %v2837_v32  ;;  %2844 = vlog2.f32 %v1218_v1  ;;  %v1072_v58 = vmul.f32 1.442695, %v923_v39  ;;  %v1112_v38 = vmul.f32 1.442695, %v943_v23 }
 0x1b1   :  { %2321 = vmatpush.msra.mxu2 %v1692_v40  ;;  %v1611_v29 = vmul.f32 %v1513_v36, %v631_v30  ;;  %v1445_v62 = vmul.f32 0.6931472, %v2839_v42  ;;  %2846 = vlog2.f32 %v1238_v21  ;;  %v728_v51 = vmax.f32 %v4232_v47, 0.0  ;;  %v650_v30 = vld [vmem:[#allocation9 + $0x240] sm:$0xff]  ;;  %v4271_v1 = vld [vmem:[#allocation7 + $0x2b8] sm:$0xff] }
 0x1b2   :  { %v2841_v17 = vpop.eup %2840  ;;  %v1533_v27 = vadd.f32 %v1411_v25, %v749_v11  ;;  %2848 = vpow2.f32 %v1038_v37  ;;  %v807_v46 = vand.u32 2147483647, %v4259_v12  ;;  %v960_v60 = vsub.f32 0.0, %v862_v44  ;;  %v434_v23 = vld [vmem:[#allocation4 + $0x1a0] sm:$0xff] }
 0x1b3   :  { %v2843_v4 = vpop.eup %2842  ;;  %v1709_v45 = vadd.f32 %v1611_v29, %v435_v52  ;;  %v1550_v56 = vadd.f32 %v1445_v62, %v766_v22  ;;  %v1335_v54 = vmul.f32 0.6931472, %v2841_v17  ;;  %2850 = vpow2.f32 %v1072_v58  ;;  %v454_v21 = vld [vmem:[#allocation4 + $0x240] sm:$0xff] }
 0x1b4   :  { %v1631_v59 = vmul.f32 %v1533_v27, %v651_v33  ;;  %v1255_v3 = vadd.f32 1.0, %v2843_v4  ;;  %2852 = vpow2.f32 %v1112_v38  ;;  %v748_v20 = vmax.f32 %v4234_v43, 0.0  ;;  %v4276_v33 = vld [vmem:[#allocation7 + $0x100] sm:$0xff]  ;;  %v4279_v27 = vld [vmem:[#allocation7 + $0x188] sm:$0xff] }
 0x1b5   :  { %2340 = vmatpush.msra.mxu3 %v1709_v45  ;;  %v1648_v31 = vmul.f32 %v1550_v56, %v668_v41  ;;  %v1495_v47 = vadd.f32 %v1335_v54, %v711_v57  ;;  %v905_v61 = vsub.f32 0.0, %v807_v46  ;;  %v1146_v9 = vmul.f32 1.442695, %v960_v60  ;;  %v667_v46 = vld [vmem:[#allocation9 + $0x2c8] sm:$0xff] }
 0x1b6   :  { %v2845_v5 = vpop.eup %2844  ;;  %v1729_v53 = vadd.f32 %v1631_v59, %v455_v49  ;;  %2854 = vlog2.f32 %v1255_v3  ;;  %v824_v14 = vand.u32 2147483647, %v4264_v15  ;;  %v765_v43 = vmax.f32 %v4240_v26, 0.0 }
 0x1b7   :  { %v2847_v11 = vpop.eup %2846  ;;  %v1746_v35 = vadd.f32 %v1648_v31, %v472_v19  ;;  %v1593_v10 = vmul.f32 %v1495_v47, %v613_v63  ;;  %v1369_v55 = vmul.f32 0.6931472, %v2845_v5  ;;  %v1036_v16 = vmul.f32 1.442695, %v905_v61  ;;  %v4286_v19 = vld [vmem:[#allocation7 + $0x228] sm:$0xff]  ;;  %v471_v63 = vld [vmem:[#allocation4 + $0x2c8] sm:$0xff] }
 0x1b8   :  { %v2849_v22 = vpop.eup %2848  ;;  %2356 = vmatpush.msrb.mxu0 %v1729_v53  ;;  %v1409_v8 = vmul.f32 0.6931472, %v2847_v11  ;;  %2856 = vpow2.f32 %v1146_v9  ;;  %v922_v28 = vsub.f32 0.0, %v824_v14  ;;  %v844_v36 = vand.u32 2147483647, %v4268_v24 }
 0x1b9   :  { %v2851_v7 = vpop.eup %2850  ;;  %2375 = vmatpush.msrb.mxu1 %v1746_v35  ;;  %v1691_v18 = vadd.f32 %v1593_v10, %v417_v50  ;;  %v1512_v6 = vadd.f32 %v1369_v55, %v728_v51  ;;  %v1200_v57 = vadd.f32 1.0, %v2849_v22  ;;  %2858 = vpow2.f32 %v1036_v16  ;;  %v612_v35 = vld [vmem:[#allocation9 + $0x110] sm:$0xff]  ;;  %v4291_v16 = vld [vmem:[#allocation7 + $0x2b0] sm:$0xff] }
 0x1ba   :  { %v2853_v39 = vpop.eup %2852  ;;  %v1532_v32 = vadd.f32 %v1409_v8, %v748_v20  ;;  %v1217_v40 = vadd.f32 1.0, %v2851_v7  ;;  %v1070_v52 = vmul.f32 1.442695, %v922_v28  ;;  %v710_v37 = vmax.f32 %v4244_v48, 0.0  ;;  %v2244_v48 = vld [vmem:[%s4549_s9] sm:$0xff]  ;;  %v416_v7 = vld [vmem:[#allocation4 + $0x110] sm:$0xff] }
 0x1bb   :  { %2322 = vmatpush.msra.mxu2 %v1691_v18  ;;  %v1610_v26 = vmul.f32 %v1512_v6, %v630_v2  ;;  %2860 = vlog2.f32 %v1200_v57  ;;  %v1237_v42 = vadd.f32 1.0, %v2853_v39  ;;  %v942_v38 = vsub.f32 0.0, %v844_v36  ;;  %2251 = vst [vmem:[#allocation1] ss:$4 sm:$0xff] %v2244_v48  ;;  %v629_v8 = vld [vmem:[#allocation9 + $0x198] sm:$0xff] }
 0x1bc   :  { %v2855_v25 = vpop.eup %2854  ;;  %v1630_v58 = vmul.f32 %v1532_v32, %v650_v30  ;;  %2862 = vlog2.f32 %v1217_v40  ;;  %v861_v29 = vand.u32 2147483647, %v4271_v1  ;;  %v727_v17 = vmax.f32 %v4246_v0, 0.0  ;;  %v649_v6 = vld [vmem:[#allocation9 + $0x238] sm:$0xff] }
 0x1bd   :  { %v1708_v62 = vadd.f32 %v1610_v26, %v434_v23  ;;  %v1443_v44 = vmul.f32 0.6931472, %v2855_v25  ;;  %2864 = vlog2.f32 %v1237_v42  ;;  %v1110_v4 = vmul.f32 1.442695, %v942_v38  ;;  %v433_v32 = vld [vmem:[#allocation4 + $0x198] sm:$0xff] }
 0x1be   :  { %v2857_v41 = vpop.eup %2856  ;;  %v1728_v51 = vadd.f32 %v1630_v58, %v454_v21  ;;  %2866 = vpow2.f32 %v1070_v52  ;;  %v959_v45 = vsub.f32 0.0, %v861_v29  ;;  %v747_v54 = vmax.f32 %v4249_v34, 0.0  ;;  %v453_v21 = vld [vmem:[#allocation4 + $0x238] sm:$0xff] }
 0x1bf   :  { %v2859_v49 = vpop.eup %2858  ;;  %2341 = vmatpush.msra.mxu3 %v1708_v62  ;;  %v1549_v56 = vadd.f32 %v1443_v44, %v765_v43  ;;  %v1254_v0 = vadd.f32 1.0, %v2857_v41  ;;  %v806_v59 = vand.u32 2147483647, %v4276_v33  ;;  %2868 = vpow2.f32 %v1110_v4 }
 0x1c0   :  { %2357 = vmatpush.msrb.mxu0 %v1728_v51  ;;  %v1199_v3 = vadd.f32 1.0, %v2859_v49  ;;  %v1144_v60 = vmul.f32 1.442695, %v959_v45  ;;  %v823_v31 = vand.u32 2147483647, %v4279_v27  ;;  %v764_v61 = vmax.f32 %v4257_v13, 0.0 }
 0x1c1   :  { %v2861_v47 = vpop.eup %2860  ;;  %v1647_v20 = vmul.f32 %v1549_v56, %v667_v46  ;;  %2870 = vlog2.f32 %v1254_v0  ;;  %v904_v5 = vsub.f32 0.0, %v806_v59  ;;  %v843_v9 = vand.u32 2147483647, %v4286_v19  ;;  %v4297_v51 = vld [vmem:[#allocation7 + $0x180] sm:$0xff]  ;;  %v611_v45 = vld [vmem:[#allocation9 + $0x108] sm:$0xff]  ;;  %v470_v0 = vld [vmem:[#allocation4 + $0x2c0] sm:$0xff] }
 0x1c2   :  { %v2863_v53 = vpop.eup %2862  ;;  %v1333_v34 = vmul.f32 0.6931472, %v2861_v47  ;;  %2872 = vlog2.f32 %v1199_v3  ;;  %v921_v50 = vsub.f32 0.0, %v823_v31  ;;  %v709_v30 = vmax.f32 %v4259_v12, 0.0  ;;  %v4295_v12 = vld [vmem:[#allocation7 + $0x308] sm:$0xff] }
 0x1c3   :  { %v2865_v14 = vpop.eup %2864  ;;  %v1745_v11 = vadd.f32 %v1647_v20, %v471_v63  ;;  %v1367_v10 = vmul.f32 0.6931472, %v2863_v53  ;;  %2874 = vpow2.f32 %v1144_v60  ;;  %v1034_v55 = vmul.f32 1.442695, %v904_v5  ;;  %v415_v20 = vld [vmem:[#allocation4 + $0x108] sm:$0xff] }
 0x1c4   :  { %v2867_v22 = vpop.eup %2866  ;;  %v1494_v2 = vadd.f32 %v1333_v34, %v710_v37  ;;  %v1407_v13 = vmul.f32 0.6931472, %v2865_v14  ;;  %v1068_v43 = vmul.f32 1.442695, %v921_v50  ;;  %v941_v28 = vsub.f32 0.0, %v843_v9 }
 0x1c5   :  { %2376 = vmatpush.msrb.mxu1 %v1745_v11  ;;  %v1511_v18 = vadd.f32 %v1367_v10, %v727_v17  ;;  %v1216_v57 = vadd.f32 1.0, %v2867_v22  ;;  %2876 = vpow2.f32 %v1034_v55  ;;  %v2869_v39 = vpop.eup %2868  ;;  %v860_v42 = vand.u32 2147483647, %v4291_v16  ;;  %v666_v17 = vld [vmem:[#allocation9 + $0x2c0] sm:$0xff]  ;;  %v4305_v10 = vld [vmem:[#allocation7 + $0x2a8] sm:$0xff] }
 0x1c6   :  { %v1592_v23 = vmul.f32 %v1494_v2, %v612_v35  ;;  %v1531_v40 = vadd.f32 %v1407_v13, %v747_v54  ;;  %2878 = vpow2.f32 %v1068_v43  ;;  %v1108_v52 = vmul.f32 1.442695, %v941_v28  ;;  %v4303_v35 = vld [vmem:[#allocation7 + $0x220] sm:$0xff] }
 0x1c7   :  { %v2871_v36 = vpop.eup %2870  ;;  %v1609_v26 = vmul.f32 %v1511_v18, %v629_v8  ;;  %2880 = vlog2.f32 %v1216_v57  ;;  %v1236_v37 = vadd.f32 1.0, %v2869_v39  ;;  %v958_v41 = vsub.f32 0.0, %v860_v42  ;;  %v628_v2 = vld [vmem:[#allocation9 + $0x190] sm:$0xff] }
 0x1c8   :  { %v2873_v25 = vpop.eup %2872  ;;  %v1690_v58 = vadd.f32 %v1592_v23, %v416_v7  ;;  %v1629_v38 = vmul.f32 %v1531_v40, %v649_v6  ;;  %v1441_v29 = vmul.f32 0.6931472, %v2871_v36  ;;  %2882 = vpow2.f32 %v1108_v52  ;;  %v432_v43 = vld [vmem:[#allocation4 + $0x190] sm:$0xff] }
 0x1c9   :  { %v2875_v62 = vpop.eup %2874  ;;  %v1707_v44 = vadd.f32 %v1609_v26, %v433_v32  ;;  %v1331_v48 = vmul.f32 0.6931472, %v2873_v25  ;;  %2884 = vlog2.f32 %v1236_v37  ;;  %v726_v49 = vmax.f32 %v4264_v15, 0.0  ;;  %v2254_v26 = vld.sshfl [vmem:[#allocation1] sm:$0xff pattern:$0x73625140] }
 0x1ca   :  { %2323 = vmatpush.msra.mxu2 %v1690_v58  ;;  %v1727_v46 = vadd.f32 %v1629_v38, %v453_v21  ;;  %v1548_v4 = vadd.f32 %v1441_v29, %v764_v61  ;;  %v1253_v56 = vadd.f32 1.0, %v2875_v62  ;;  %v746_v63 = vmax.f32 %v4268_v24, 0.0  ;;  %v452_v37 = vld [vmem:[#allocation4 + $0x230] sm:$0xff]  ;;  %2286 = vmatmul.f32.vlgmr.msra.gmra.mxu0 %v2254_v26  ;;  %v469_v62 = vld [vmem:[#allocation4 + $0x2b8] sm:$0xff] }
 0x1cb   :  { %v2877_v54 = vpop.eup %2876  ;;  %2342 = vmatpush.msra.mxu3 %v1707_v44  ;;  %v1493_v59 = vadd.f32 %v1331_v48, %v709_v30  ;;  %v1142_v3 = vmul.f32 1.442695, %v958_v41  ;;  %v871_v60 = vand.u32 2147483647, %v4295_v12  ;;  %v822_v61 = vand.u32 2147483647, %v4297_v51 }
 0x1cc   :  { %v2879_v31 = vpop.eup %2878  ;;  %2358 = vmatpush.msrb.mxu0 %v1727_v46  ;;  %v1646_v47 = vmul.f32 %v1548_v4, %v666_v17  ;;  %2886 = vlog2.f32 %v1253_v56  ;;  %v1198_v5 = vadd.f32 1.0, %v2877_v54  ;;  %v763_v18 = vmax.f32 %v4271_v1, 0.0  ;;  %v648_v30 = vld [vmem:[#allocation9 + $0x230] sm:$0xff]  ;;  %v665_v44 = vld [vmem:[#allocation9 + $0x2b8] sm:$0xff]  ;;  %v610_v56 = vld [vmem:[#allocation9 + $0x100] sm:$0xff] }
 0x1cd   :  { %v2881_v53 = vpop.eup %2880  ;;  %v1591_v15 = vmul.f32 %v1493_v59, %v611_v45  ;;  %v1215_v34 = vadd.f32 1.0, %v2879_v31  ;;  %2888 = vpow2.f32 %v1142_v3  ;;  %v969_v50 = vsub.f32 0.0, %v871_v60  ;;  %v4316_v59 = vld [vmem:[#allocation7 + $0x2a0] sm:$0xff]  ;;  %v627_v31 = vld [vmem:[#allocation9 + $0x188] sm:$0xff] }
 0x1ce   :  { %v2883_v9 = vpop.eup %2882  ;;  %v1744_v14 = vadd.f32 %v1646_v47, %v470_v0  ;;  %v1365_v11 = vmul.f32 0.6931472, %v2881_v53  ;;  %2890 = vlog2.f32 %v1198_v5  ;;  %v920_v24 = vsub.f32 0.0, %v822_v61  ;;  %v2255_v47 = vld.sshfl [vmem:[#allocation1 + $0x8] sm:$0xff pattern:$0x73625140] }
 0x1cf   :  { %v2885_v55 = vpop.eup %2884  ;;  %v1689_v22 = vadd.f32 %v1591_v15, %v415_v20  ;;  %2892 = vlog2.f32 %v1215_v34  ;;  %v1235_v8 = vadd.f32 1.0, %v2883_v9  ;;  %v1164_v13 = vmul.f32 1.442695, %v969_v50  ;;  %v414_v5 = vld [vmem:[#allocation4 + $0x100] sm:$0xff]  ;;  %2306 = vmatmul.f32.vlgmr.msra.gmra.mxu1 %v2255_v47 }
 0x1d0   :  { %2377 = vmatpush.msrb.mxu1 %v1744_v14  ;;  %v1510_v28 = vadd.f32 %v1365_v11, %v726_v49  ;;  %v1405_v7 = vmul.f32 0.6931472, %v2885_v55  ;;  %v1066_v6 = vmul.f32 1.442695, %v920_v24  ;;  %v708_v57 = vmax.f32 %v4276_v33, 0.0  ;;  %v4312_v33 = vld [vmem:[#allocation7 + $0x218] sm:$0xff] }
 0x1d1   :  { %2324 = vmatpush.msra.mxu2 %v1689_v22  ;;  %2894 = vlog2.f32 %v1235_v8  ;;  %v842_v39 = vand.u32 2147483647, %v4303_v35  ;;  %v859_v23 = vand.u32 2147483647, %v4305_v10  ;;  %v725_v36 = vmax.f32 %v4279_v27, 0.0  ;;  %v431_v14 = vld [vmem:[#allocation4 + $0x188] sm:$0xff] }
 0x1d2   :  { %v2887_v32 = vpop.eup %2886  ;;  %v1608_v40 = vmul.f32 %v1510_v28, %v628_v2  ;;  %v1530_v52 = vadd.f32 %v1405_v7, %v746_v63  ;;  %2896 = vpow2.f32 %v1164_v13  ;;  %v745_v17 = vmax.f32 %v4286_v19, 0.0  ;;  %v647_v11 = vld [vmem:[#allocation9 + $0x228] sm:$0xff]  ;;  %v4320_v22 = vld [vmem:[#allocation7 + $0x300] sm:$0xff] }
 0x1d3   :  { %v2889_v21 = vpop.eup %2888  ;;  %v1439_v1 = vmul.f32 0.6931472, %v2887_v32  ;;  %2898 = vpow2.f32 %v1066_v6  ;;  %v940_v42 = vsub.f32 0.0, %v842_v39  ;;  %v957_v25 = vsub.f32 0.0, %v859_v23  ;;  %v451_v2 = vld [vmem:[#allocation4 + $0x228] sm:$0xff] }
 0x1d4   :  { %v2891_v58 = vpop.eup %2890  ;;  %v1706_v38 = vadd.f32 %v1608_v40, %v432_v43  ;;  %v1628_v29 = vmul.f32 %v1530_v52, %v648_v30  ;;  %v1252_v48 = vadd.f32 1.0, %v2889_v21  ;;  %v841_v0 = vand.u32 2147483647, %v4312_v33  ;;  %v2256_v7 = vld.sshfl [vmem:[#allocation1 + $0x10] sm:$0xff pattern:$0x73625140] }
 0x1d5   :  { %v2893_v27 = vpop.eup %2892  ;;  %v1547_v41 = vadd.f32 %v1439_v1, %v763_v18  ;;  %v1329_v46 = vmul.f32 0.6931472, %v2891_v58  ;;  %v1106_v4 = vmul.f32 1.442695, %v940_v42  ;;  %v1140_v45 = vmul.f32 1.442695, %v957_v25 }
 0x1d6   :  { %2343 = vmatpush.msra.mxu3 %v1706_v38  ;;  %v1726_v49 = vadd.f32 %v1628_v29, %v452_v37  ;;  %v1363_v54 = vmul.f32 0.6931472, %v2893_v27  ;;  %2900 = vlog2.f32 %v1252_v48  ;;  %v762_v19 = vmax.f32 %v4291_v16, 0.0  ;;  %v4323_v30 = vld [vmem:[#allocation7 + $0x210] sm:$0xff]  ;;  %v4330_v21 = vld [vmem:[#allocation7 + $0x298] sm:$0xff]  ;;  %v664_v42 = vld [vmem:[#allocation9 + $0x2b0] sm:$0xff] }
 0x1d7   :  { %v2895_v63 = vpop.eup %2894  ;;  %v1645_v3 = vmul.f32 %v1547_v41, %v665_v44  ;;  %v1492_v60 = vadd.f32 %v1329_v46, %v708_v57  ;;  %2902 = vpow2.f32 %v1106_v4  ;;  %v939_v15 = vsub.f32 0.0, %v841_v0  ;;  %v2245_v40 = vld [vmem:[%s4549_s9 + $0x8] sm:$0x3f]  ;;  %v4333_v29 = vld [vmem:[#allocation7 + $0x208] sm:$0xff] }
 0x1d8   :  { %v2897_v20 = vpop.eup %2896  ;;  %2359 = vmatpush.msrb.mxu0 %v1726_v49  ;;  %v1509_v61 = vadd.f32 %v1363_v54, %v725_v36  ;;  %v1403_v53 = vmul.f32 0.6931472, %v2895_v63  ;;  %2904 = vpow2.f32 %v1140_v45  ;;  %v858_v55 = vand.u32 2147483647, %v4316_v59  ;;  %2253 = vst [vmem:[#allocation1 + $0x20] ss:$4 sm:$0xff] %v2245_v40 }
 0x1d9   :  { %v2899_v34 = vpop.eup %2898  ;;  %v1743_v50 = vadd.f32 %v1645_v3, %v469_v62  ;;  %v1590_v9 = vmul.f32 %v1492_v60, %v610_v56  ;;  %v1263_v24 = vadd.f32 1.0, %v2897_v20  ;;  %v1104_v43 = vmul.f32 1.442695, %v939_v15  ;;  %v4339_v63 = vld [vmem:[#allocation7 + $0x290] sm:$0xff]  ;;  %v4348_v40 = vld [vmem:[#allocation7 + $0x288] sm:$0xff] }
 0x1da   :  { %v1607_v16 = vmul.f32 %v1509_v61, %v627_v31  ;;  %v1529_v8 = vadd.f32 %v1403_v53, %v745_v17  ;;  %v1214_v13 = vadd.f32 1.0, %v2899_v34  ;;  %v773_v18 = vmax.f32 %v4295_v12, 0.0  ;;  %v675_v31 = vld [vmem:[#allocation9 + $0x308] sm:$0xff] }
 0x1db   :  { %2378 = vmatpush.msrb.mxu1 %v1743_v50  ;;  %v1688_v28 = vadd.f32 %v1590_v9, %v414_v5  ;;  %2906 = vlog2.f32 %v1263_v24  ;;  %v956_v6 = vsub.f32 0.0, %v858_v55  ;;  %v870_v32 = vand.u32 2147483647, %v4320_v22  ;;  %v479_v5 = vld [vmem:[#allocation4 + $0x308] sm:$0xff]  ;;  %v4344_v24 = vld [vmem:[#allocation7 + $0x200] sm:$0xff] }
 0x1dc   :  { %v2901_v57 = vpop.eup %2900  ;;  %v1705_v39 = vadd.f32 %v1607_v16, %v431_v14  ;;  %v1627_v23 = vmul.f32 %v1529_v8, %v647_v11  ;;  %2908 = vlog2.f32 %v1214_v13  ;;  %v724_v26 = vmax.f32 %v4297_v51, 0.0  ;;  %v468_v51 = vld [vmem:[#allocation4 + $0x2b0] sm:$0xff] }
 0x1dd   :  { %v2903_v52 = vpop.eup %2902  ;;  %2325 = vmatpush.msra.mxu2 %v1688_v28  ;;  %v1437_v36 = vmul.f32 0.6931472, %v2901_v57  ;;  %2910 = vpow2.f32 %v1104_v43  ;;  %v1138_v12 = vmul.f32 1.442695, %v956_v6  ;;  %v968_v58 = vsub.f32 0.0, %v870_v32 }
 0x1de   :  { %v2905_v37 = vpop.eup %2904  ;;  %2344 = vmatpush.msra.mxu3 %v1705_v39  ;;  %v1725_v1 = vadd.f32 %v1627_v23, %v451_v2  ;;  %2326 = vmatmul.f32.vlgmr.msra.gmra.mxu2 %v2256_v7  ;;  %v1234_v25 = vadd.f32 1.0, %v2903_v52  ;;  %v840_v38 = vand.u32 2147483647, %v4323_v30  ;;  %v744_v44 = vmax.f32 %v4303_v35, 0.0  ;;  %v430_v2 = vld [vmem:[#allocation4 + $0x180] sm:$0xff] }
 0x1df   :  { %v1546_v62 = vadd.f32 %v1437_v36, %v762_v19  ;;  %v1251_v17 = vadd.f32 1.0, %v2905_v37  ;;  %2912 = vpow2.f32 %v1138_v12  ;;  %v1162_v48 = vmul.f32 1.442695, %v968_v58  ;;  %v646_v39 = vld [vmem:[#allocation9 + $0x220] sm:$0xff] }
 0x1e0   :  { %2360 = vmatpush.msrb.mxu0 %v1725_v1  ;;  %2914 = vlog2.f32 %v1234_v25  ;;  %v938_v27 = vsub.f32 0.0, %v840_v38  ;;  %v857_v41 = vand.u32 2147483647, %v4330_v21  ;;  %v761_v45 = vmax.f32 %v4305_v10, 0.0  ;;  %v626_v10 = vld [vmem:[#allocation9 + $0x180] sm:$0xff] }
 0x1e1   :  { %v2907_v46 = vpop.eup %2906  ;;  %v1644_v4 = vmul.f32 %v1546_v62, %v664_v42  ;;  %2916 = vlog2.f32 %v1251_v17  ;;  %v839_v49 = vand.u32 2147483647, %v4333_v29  ;;  %v743_v47 = vmax.f32 %v4312_v33, 0.0  ;;  %v2257_v12 = vld.sshfl [vmem:[#allocation1 + $0x18] sm:$0xff pattern:$0x73625140] }
 0x1e2   :  { %v2909_v56 = vpop.eup %2908  ;;  %v1459_v54 = vmul.f32 0.6931472, %v2907_v46  ;;  %2918 = vpow2.f32 %v1162_v48  ;;  %v1102_v35 = vmul.f32 1.442695, %v938_v27  ;;  %v955_v0 = vsub.f32 0.0, %v857_v41  ;;  %v450_v42 = vld [vmem:[#allocation4 + $0x220] sm:$0xff] }
 0x1e3   :  { %v2911_v3 = vpop.eup %2910  ;;  %v1742_v60 = vadd.f32 %v1644_v4, %v468_v51  ;;  %v1361_v19 = vmul.f32 0.6931472, %v2909_v56  ;;  %v937_v20 = vsub.f32 0.0, %v839_v49  ;;  %v760_v9 = vmax.f32 %v4316_v59, 0.0  ;;  %v467_v51 = vld [vmem:[#allocation4 + $0x2a8] sm:$0xff] }
 0x1e4   :  { %v1557_v61 = vadd.f32 %v1459_v54, %v773_v18  ;;  %v1233_v53 = vadd.f32 1.0, %v2911_v3  ;;  %2920 = vpow2.f32 %v1102_v35  ;;  %v1136_v15 = vmul.f32 1.442695, %v955_v0  ;;  %v4355_v0 = vld [vmem:[#allocation16 + $0x78] sm:$0xff] }
 0x1e5   :  { %v2913_v34 = vpop.eup %2912  ;;  %2379 = vmatpush.msrb.mxu1 %v1742_v60  ;;  %v1508_v50 = vadd.f32 %v1361_v19, %v724_v26  ;;  %v1100_v14 = vmul.f32 1.442695, %v937_v20  ;;  %v856_v11 = vand.u32 2147483647, %v4339_v63  ;;  %v772_v13 = vmax.f32 %v4320_v22, 0.0  ;;  %v663_v26 = vld [vmem:[#allocation9 + $0x2a8] sm:$0xff] }
 0x1e6   :  { %v2915_v55 = vpop.eup %2914  ;;  %v1655_v16 = vmul.f32 %v1557_v61, %v675_v31  ;;  %2922 = vlog2.f32 %v1233_v53  ;;  %v1250_v8 = vadd.f32 1.0, %v2913_v34  ;;  %v838_v32 = vand.u32 2147483647, %v4344_v24  ;;  %v645_v31 = vld [vmem:[#allocation9 + $0x218] sm:$0xff] }
 0x1e7   :  { %v2917_v43 = vpop.eup %2916  ;;  %v1606_v28 = vmul.f32 %v1508_v50, %v626_v10  ;;  %v1401_v7 = vmul.f32 0.6931472, %v2915_v55  ;;  %2924 = vpow2.f32 %v1136_v15  ;;  %v954_v18 = vsub.f32 0.0, %v856_v11  ;;  %v449_v61 = vld [vmem:[#allocation4 + $0x218] sm:$0xff]  ;;  %v662_v50 = vld [vmem:[#allocation9 + $0x2a0] sm:$0xff] }
 0x1e8   :  { %v2919_v6 = vpop.eup %2918  ;;  %v1753_v57 = vadd.f32 %v1655_v16, %v479_v5  ;;  %v1435_v23 = vmul.f32 0.6931472, %v2917_v43  ;;  %2926 = vlog2.f32 %v1250_v8  ;;  %v742_v58 = vmax.f32 %v4323_v30, 0.0  ;;  %v4362_v16 = vld [vmem:[#allocation16 + $0x70] sm:$0xff]  ;;  %v4374_v22 = vld [vmem:[#allocation16 + $0x60] sm:$0xff] }
 0x1e9   :  { %v1704_v52 = vadd.f32 %v1606_v28, %v430_v2  ;;  %v1528_v36 = vadd.f32 %v1401_v7, %v744_v44  ;;  %v1262_v37 = vadd.f32 1.0, %v2919_v6  ;;  %2928 = vpow2.f32 %v1100_v14  ;;  %v4352_v44 = vld [vmem:[#allocation7 + $0x280] sm:$0xff]  ;;  %v466_v28 = vld [vmem:[#allocation4 + $0x2a0] sm:$0xff] }
 0x1ea   :  { %v2921_v1 = vpop.eup %2920  ;;  %2404 = vmatpush.msrb.mxu2 %v1753_v57  ;;  %v1545_v25 = vadd.f32 %v1435_v23, %v761_v45  ;;  %v1134_v38 = vmul.f32 1.442695, %v954_v18  ;;  %v936_v62 = vsub.f32 0.0, %v838_v32  ;;  %v855_v27 = vand.u32 2147483647, %v4348_v40  ;;  %v674_v32 = vld [vmem:[#allocation9 + $0x300] sm:$0xff] }
 0x1eb   :  { %2345 = vmatpush.msra.mxu3 %v1704_v52  ;;  %v1626_v17 = vmul.f32 %v1528_v36, %v646_v39  ;;  %2930 = vlog2.f32 %v1262_v37  ;;  %v1232_v48 = vadd.f32 1.0, %v2921_v1  ;;  %v759_v4 = vmax.f32 %v4330_v21, 0.0  ;;  %v4370_v37 = vld [vmem:[#allocation16 + $0x68] sm:$0xff] }
 0x1ec   :  { %v2923_v41 = vpop.eup %2922  ;;  %v1643_v46 = vmul.f32 %v1545_v25, %v663_v26  ;;  %2346 = vmatmul.f32.vlgmr.msra.gmra.mxu3 %v2257_v12  ;;  %2932 = vpow2.f32 %v1134_v38  ;;  %v1098_v45 = vmul.f32 1.442695, %v936_v62  ;;  %v953_v35 = vsub.f32 0.0, %v855_v27  ;;  %v644_v25 = vld [vmem:[#allocation9 + $0x210] sm:$0xff] }
 0x1ed   :  { %v2925_v49 = vpop.eup %2924  ;;  %v1724_v56 = vadd.f32 %v1626_v17, %v450_v42  ;;  %v1399_v54 = vmul.f32 0.6931472, %v2923_v41  ;;  %2934 = vlog2.f32 %v1232_v48  ;;  %v854_v20 = vand.u32 2147483647, %v4352_v44  ;;  %v478_v42 = vld [vmem:[#allocation4 + $0x300] sm:$0xff]  ;;  %v448_v48 = vld [vmem:[#allocation4 + $0x210] sm:$0xff] }
 0x1ee   :  { %v2927_v3 = vpop.eup %2926  ;;  %v1741_v60 = vadd.f32 %v1643_v46, %v467_v51  ;;  %v1249_v19 = vadd.f32 1.0, %v2925_v49  ;;  %2936 = vpow2.f32 %v1098_v45  ;;  %v741_v15 = vmax.f32 %v4333_v29, 0.0 }
 0x1ef   :  { %v2929_v5 = vpop.eup %2928  ;;  %2361 = vmatpush.msrb.mxu0 %v1724_v56  ;;  %v1527_v10 = vadd.f32 %v1399_v54, %v743_v47  ;;  %v1433_v53 = vmul.f32 0.6931472, %v2927_v3  ;;  %v1132_v34 = vmul.f32 1.442695, %v953_v35  ;;  %v952_v11 = vsub.f32 0.0, %v854_v20  ;;  %v661_v35 = vld [vmem:[#allocation9 + $0x298] sm:$0xff] }
 0x1f0   :  { %2380 = vmatpush.msrb.mxu1 %v1741_v60  ;;  %2938 = vlog2.f32 %v1249_v19  ;;  %v1231_v14 = vadd.f32 1.0, %v2929_v5  ;;  %v1847_v55 = vand.u32 2147483647, %v4355_v0  ;;  %v758_v33 = vmax.f32 %v4339_v63, 0.0  ;;  %v4380_v20 = vld [vmem:[#allocation16 + $0x58] sm:$0xff] }
 0x1f1   :  { %v2931_v2 = vpop.eup %2930  ;;  %v1625_v8 = vmul.f32 %v1527_v10, %v645_v31  ;;  %v1544_v43 = vadd.f32 %v1433_v53, %v760_v9  ;;  %2940 = vpow2.f32 %v1132_v34  ;;  %v1130_v18 = vmul.f32 1.442695, %v952_v11  ;;  %v2260_v3 = vld.sshfl [vmem:[#allocation1 + $0x30] sm:$0xff pattern:$0x73625140]  ;;  %v465_v10 = vld [vmem:[#allocation4 + $0x298] sm:$0xff] }
 0x1f2   :  { %v2933_v47 = vpop.eup %2932  ;;  %v1457_v7 = vmul.f32 0.6931472, %v2931_v2  ;;  %2942 = vlog2.f32 %v1231_v14  ;;  %v1863_v6 = vsub.f32 0.0, %v1847_v55  ;;  %v1846_v36 = vand.u32 2147483647, %v4362_v16  ;;  %v643_v53 = vld [vmem:[#allocation9 + $0x208] sm:$0xff] }
 0x1f3   :  { %v2935_v57 = vpop.eup %2934  ;;  %v1723_v39 = vadd.f32 %v1625_v8, %v449_v61  ;;  %v1642_v23 = vmul.f32 %v1544_v43, %v662_v50  ;;  %v1248_v52 = vadd.f32 1.0, %v2933_v47  ;;  %2944 = vpow2.f32 %v1130_v18  ;;  %v447_v11 = vld [vmem:[#allocation4 + $0x208] sm:$0xff] }
 0x1f4   :  { %v2937_v26 = vpop.eup %2936  ;;  %v1556_v59 = vadd.f32 %v1457_v7, %v772_v13  ;;  %v1397_v9 = vmul.f32 0.6931472, %v2935_v57  ;;  %v1894_v12 = vmul.f32 1.442695, %v1863_v6  ;;  %v1862_v62 = vsub.f32 0.0, %v1846_v36  ;;  %v660_v6 = vld [vmem:[#allocation9 + $0x290] sm:$0xff] }
 0x1f5   :  { %2362 = vmatpush.msrb.mxu0 %v1723_v39  ;;  %v1740_v1 = vadd.f32 %v1642_v23, %v466_v28  ;;  %2946 = vlog2.f32 %v1248_v52  ;;  %v1230_v38 = vadd.f32 1.0, %v2937_v26  ;;  %v1845_v45 = vand.u32 2147483647, %v4370_v37  ;;  %v464_v52 = vld [vmem:[#allocation4 + $0x290] sm:$0xff]  ;;  %v642_v36 = vld [vmem:[#allocation9 + $0x200] sm:$0xff] }
 0x1f6   :  { %v2939_v17 = vpop.eup %2938  ;;  %v1654_v51 = vmul.f32 %v1556_v59, %v674_v32  ;;  %v1526_v27 = vadd.f32 %v1397_v9, %v742_v58  ;;  %2948 = vpow2.f32 %v1894_v12  ;;  %v1892_v46 = vmul.f32 1.442695, %v1862_v62  ;;  %v4393_v9 = vld [vmem:[#allocation16 + $0x48] sm:$0xff] }
 0x1f7   :  { %v2941_v13 = vpop.eup %2940  ;;  %2381 = vmatpush.msrb.mxu1 %v1740_v1  ;;  %v1431_v41 = vmul.f32 0.6931472, %v2939_v17  ;;  %2950 = vlog2.f32 %v1230_v38  ;;  %v740_v60 = vmax.f32 %v4344_v24, 0.0  ;;  %v1861_v19 = vsub.f32 0.0, %v1845_v45 }
 0x1f8   :  { %v2943_v49 = vpop.eup %2942  ;;  %v1752_v56 = vadd.f32 %v1654_v51, %v478_v42  ;;  %v1624_v54 = vmul.f32 %v1526_v27, %v644_v25  ;;  %v1247_v30 = vadd.f32 1.0, %v2941_v13  ;;  %2952 = vpow2.f32 %v1892_v46  ;;  %v446_v42 = vld [vmem:[#allocation4 + $0x200] sm:$0xff]  ;;  %v659_v27 = vld [vmem:[#allocation9 + $0x288] sm:$0xff]  ;;  %v2258_v45 = vld.sshfl [vmem:[#allocation1 + $0x20] sm:$0xff pattern:$0x73625140] }
 0x1f9   :  { %v1543_v58 = vadd.f32 %v1431_v41, %v759_v4  ;;  %v1395_v31 = vmul.f32 0.6931472, %v2943_v49  ;;  %v2945_v5 = vpop.eup %2944  ;;  %v757_v34 = vmax.f32 %v4348_v40, 0.0  ;;  %v1844_v50 = vand.u32 2147483647, %v4374_v22  ;;  %v4388_v40 = vld [vmem:[#allocation16 + $0x50] sm:$0xff] }
 0x1fa   :  { %2405 = vmatpush.msrb.mxu2 %v1752_v56  ;;  %v1722_v61 = vadd.f32 %v1624_v54, %v448_v48  ;;  %2954 = vlog2.f32 %v1247_v30  ;;  %v1246_v4 = vadd.f32 1.0, %v2945_v5  ;;  %v1890_v55 = vmul.f32 1.442695, %v1861_v19 }
 0x1fb   :  { %v2947_v24 = vpop.eup %2946  ;;  %v1641_v14 = vmul.f32 %v1543_v58, %v661_v35  ;;  %v1525_v21 = vadd.f32 %v1395_v31, %v741_v15  ;;  %2533 = vmatmul.msk.f32.vlgmr.msrb.gmra.mxu2 %vm2267_vm0, %v2260_v3  ;;  %v1860_v43 = vsub.f32 0.0, %v1844_v50  ;;  %v1843_v47 = vand.u32 2147483647, %v4380_v20  ;;  %v463_v35 = vld [vmem:[#allocation4 + $0x288] sm:$0xff]  ;;  %v658_v31 = vld [vmem:[#allocation9 + $0x280] sm:$0xff] }
 0x1fc   :  { %v2949_v2 = vpop.eup %2948  ;;  %2363 = vmatpush.msrb.mxu0 %v1722_v61  ;;  %v1429_v8 = vmul.f32 0.6931472, %v2947_v24  ;;  %2956 = vlog2.f32 %v1246_v4  ;;  %v1842_v59 = vand.u32 2147483647, %v4388_v40  ;;  %v756_v38 = vmax.f32 %v4352_v44, 0.0  ;;  %v462_v50 = vld [vmem:[#allocation4 + $0x280] sm:$0xff] }
 0x1fd   :  { %v2951_v28 = vpop.eup %2950  ;;  %v1739_v7 = vadd.f32 %v1641_v14, %v465_v10  ;;  %v1623_v18 = vmul.f32 %v1525_v21, %v643_v53  ;;  %v1911_v57 = vadd.f32 1.0, %v2949_v2  ;;  %2958 = vpow2.f32 %v1890_v55  ;;  %v1815_v24 = vld [vmem:[#allocation18 + $0x78] sm:$0xff] }
 0x1fe   :  { %v1542_v29 = vadd.f32 %v1429_v8, %v758_v33  ;;  %v1393_v15 = vmul.f32 0.6931472, %v2951_v28  ;;  %v1888_v39 = vmul.f32 1.442695, %v1860_v43  ;;  %v2953_v23 = vpop.eup %2952  ;;  %v1859_v26 = vsub.f32 0.0, %v1843_v47  ;;  %v1783_v2 = vld [vmem:[#allocation15 + $0x78] sm:$0xff] }
 0x1ff   :  { %2382 = vmatpush.msrb.mxu1 %v1739_v7  ;;  %v1721_v32 = vadd.f32 %v1623_v18, %v447_v11  ;;  %2960 = vlog2.f32 %v1911_v57  ;;  %v1910_v63 = vadd.f32 1.0, %v2953_v23  ;;  %v1858_v17 = vsub.f32 0.0, %v1842_v59  ;;  %v2259_v47 = vld.sshfl [vmem:[#allocation1 + $0x28] sm:$0xff pattern:$0x73625140] }
 0x200   :  { %v2955_v12 = vpop.eup %2954  ;;  %v1640_v1 = vmul.f32 %v1542_v29, %v660_v6  ;;  %v1524_v25 = vadd.f32 %v1393_v15, %v740_v60  ;;  %2962 = vpow2.f32 %v1888_v39  ;;  %v1886_v62 = vmul.f32 1.442695, %v1859_v26  ;;  %v1814_v7 = vld [vmem:[#allocation18 + $0x70] sm:$0xff] }
 0x201   :  { %2364 = vmatpush.msrb.mxu0 %v1721_v32  ;;  %v1427_v33 = vmul.f32 0.6931472, %v2955_v12  ;;  %2964 = vlog2.f32 %v1910_v63  ;;  %v1841_v13 = vand.u32 2147483647, %v4393_v9  ;;  %v1884_v49 = vmul.f32 1.442695, %v1858_v17 }
 0x202   :  { %v1738_v51 = vadd.f32 %v1640_v1, %v464_v52  ;;  %v1622_v48 = vmul.f32 %v1524_v25, %v642_v36  ;;  %v2957_v41 = vpop.eup %2956  ;;  %2966 = vpow2.f32 %v1886_v62  ;;  %v1831_v44 = vmax.f32 %v4355_v0, 0.0  ;;  %v1782_v29 = vld [vmem:[#allocation15 + $0x70] sm:$0xff]  ;;  %v1813_v1 = vld [vmem:[#allocation18 + $0x68] sm:$0xff] }
 0x203   :  { %v1541_v46 = vadd.f32 %v1427_v33, %v757_v34  ;;  %v2959_v56 = vpop.eup %2958  ;;  %v1425_v3 = vmul.f32 0.6931472, %v2957_v41  ;;  %v1857_v60 = vsub.f32 0.0, %v1841_v13  ;;  %2968 = vpow2.f32 %v1884_v49  ;;  %v1781_v33 = vld [vmem:[#allocation15 + $0x68] sm:$0xff] }
 0x204   :  { %2383 = vmatpush.msrb.mxu1 %v1738_v51  ;;  %v1720_v54 = vadd.f32 %v1622_v48, %v446_v42  ;;  %v1909_v19 = vadd.f32 1.0, %v2959_v56  ;;  %v1830_v14 = vmax.f32 %v4362_v16, 0.0  ;;  %v1829_v15 = vmax.f32 %v4370_v37, 0.0  ;;  %v1812_v37 = vld [vmem:[#allocation18 + $0x60] sm:$0xff] }
 0x205   :  { %v2961_v30 = vpop.eup %2960  ;;  %v1639_v58 = vmul.f32 %v1541_v46, %v659_v27  ;;  %v1540_v61 = vadd.f32 %v1425_v3, %v756_v38  ;;  %v1882_v53 = vmul.f32 1.442695, %v1857_v60  ;;  %v1828_v26 = vmax.f32 %v4374_v22, 0.0  ;;  %v1780_v48 = vld [vmem:[#allocation15 + $0x60] sm:$0xff]  ;;  %v1810_v3 = vld [vmem:[#allocation18 + $0x50] sm:$0xff] }
 0x206   :  { %v2963_v5 = vpop.eup %2962  ;;  %2365 = vmatpush.msrb.mxu0 %v1720_v54  ;;  %v1943_v10 = vmul.f32 0.6931472, %v2961_v30  ;;  %2970 = vlog2.f32 %v1909_v19  ;;  %v1827_v38 = vmax.f32 %v4380_v20, 0.0  ;;  %v1826_v22 = vmax.f32 %v4388_v40, 0.0 }
 0x207   :  { %v1737_v34 = vadd.f32 %v1639_v58, %v463_v35  ;;  %2366 = vmatmul.f32.vlgmr.msrb.gmra.mxu0 %v2258_v45  ;;  %v1908_v11 = vadd.f32 1.0, %v2963_v5  ;;  %v2965_v0 = vpop.eup %2964  ;;  %v1638_v21 = vmul.f32 %v1540_v61, %v658_v31  ;;  %2972 = vpow2.f32 %v1882_v53  ;;  %v1811_v45 = vld [vmem:[#allocation18 + $0x58] sm:$0xff]  ;;  %v1778_v58 = vld [vmem:[#allocation15 + $0x50] sm:$0xff]  ;;  %v1809_v5 = vld [vmem:[#allocation18 + $0x48] sm:$0xff] }
 0x208   :  { %v1959_v4 = vadd.f32 %v1943_v10, %v1831_v44  ;;  %v2967_v55 = vpop.eup %2966  ;;  %v1941_v8 = vmul.f32 0.6931472, %v2965_v0  ;;  %v1779_v35 = vld [vmem:[#allocation15 + $0x58] sm:$0xff]  ;;  %v1825_v20 = vmax.f32 %v4393_v9, 0.0  ;;  %v1777_v53 = vld [vmem:[#allocation15 + $0x48] sm:$0xff] }
 0x209   :  { %2384 = vmatpush.msrb.mxu1 %v1737_v34  ;;  %2974 = vlog2.f32 %v1908_v11  ;;  %v1736_v43 = vadd.f32 %v1638_v21, %v462_v50  ;;  %v1907_v18 = vadd.f32 1.0, %v2967_v55  ;;  %v2969_v6 = vpop.eup %2968  ;;  %v1791_v0 = vld [vmem:[#allocation16 + $0x38] sm:$0xff] }
 0x20a   :  { %v1975_v28 = vmul.f32 %v1959_v4, %v1815_v24  ;;  %v1958_v57 = vadd.f32 %v1941_v8, %v1830_v14  ;;  %v1906_v39 = vadd.f32 1.0, %v2969_v6  ;;  %v1792_v24 = vld [vmem:[#allocation16 + $0x40] sm:$0xff]  ;;  %v1839_v21 = vand.u32 2147483647, %v1791_v0  ;;  %v4404_v4 = vld [vmem:[#allocation12] sm:$0x1] }
 0x20b   :  { %2385 = vmatpush.msrb.mxu1 %v1736_v43  ;;  %2976 = vlog2.f32 %v1907_v18  ;;  %v1840_v14 = vand.u32 2147483647, %v1792_v24  ;;  %v1758_v8 = vand.u32 2147483647, %v4404_v4 }
 0x20c   :  { %v1991_v16 = vadd.f32 %v1975_v28, %v1783_v2  ;;  %v2971_v23 = vpop.eup %2970  ;;  %2386 = vmatmul.f32.vlgmr.msrb.gmra.mxu1 %v2259_v47  ;;  %v1974_v32 = vmul.f32 %v1958_v57, %v1814_v7  ;;  %2978 = vlog2.f32 %v1906_v39  ;;  %v1855_v55 = vsub.f32 0.0, %v1839_v21  ;;  %v4407_v7 = vld [vmem:[#allocation16 + $0x30] sm:$0xff] }
 0x20d   :  { %v2973_v52 = vpop.eup %2972  ;;  %v1939_v36 = vmul.f32 0.6931472, %v2971_v23  ;;  %v1856_v9 = vsub.f32 0.0, %v1840_v14  ;;  %v1759_v28 = vsub.f32 0.0, %v1758_v8  ;;  %v1838_v6 = vand.u32 2147483647, %v4407_v7 }
 0x20e   :  { %2414 = vmatpush.msrb.mxu3 %v1991_v16  ;;  %v1990_v12 = vadd.f32 %v1974_v32, %v1782_v29  ;;  %v1905_v42 = vadd.f32 1.0, %v2973_v52  ;;  %v1878_v2 = vmul.f32 1.442695, %v1855_v55  ;;  %v4410_v32 = vld [vmem:[#allocation16 + $0x28] sm:$0xff]  ;;  %v1806_v8 = vld [vmem:[#allocation18 + $0x30] sm:$0xff] }
 0x20f   :  { %v2975_v59 = vpop.eup %2974  ;;  %v1957_v25 = vadd.f32 %v1939_v36, %v1829_v15  ;;  %v1880_v11 = vmul.f32 1.442695, %v1856_v9  ;;  %v1760_v57 = vmul.f32 1.442695, %v1759_v28  ;;  %v1854_v29 = vsub.f32 0.0, %v1838_v6  ;;  %v1774_v6 = vld [vmem:[#allocation15 + $0x30] sm:$0xff] }
 0x210   :  { %v1937_v63 = vmul.f32 0.6931472, %v2975_v59  ;;  %2415 = vmatpush.msrb.mxu3 %v1990_v12  ;;  %2980 = vlog2.f32 %v1905_v42  ;;  %v1824_v15 = vmax.f32 %v1792_v24, 0.0  ;;  %v1837_v36 = vand.u32 2147483647, %v4410_v32  ;;  %v4413_v59 = vld [vmem:[#allocation16 + $0x20] sm:$0xff] }
 0x211   :  { %v2977_v62 = vpop.eup %2976  ;;  %v1973_v17 = vmul.f32 %v1957_v25, %v1813_v1  ;;  %2982 = vpow2.f32 %v1880_v11  ;;  %v1876_v23 = vmul.f32 1.442695, %v1854_v29  ;;  %v1836_v42 = vand.u32 2147483647, %v4413_v59  ;;  %v1776_v25 = vld [vmem:[#allocation15 + $0x40] sm:$0xff] }
 0x212   :  { %v1956_v51 = vadd.f32 %v1937_v63, %v1828_v26  ;;  %v1935_v27 = vmul.f32 0.6931472, %v2977_v62  ;;  %v2979_v13 = vpop.eup %2978  ;;  %2984 = vpow2.f32 %v1878_v2  ;;  %v1808_v26 = vld [vmem:[#allocation18 + $0x40] sm:$0xff]  ;;  %v1853_v1 = vsub.f32 0.0, %v1837_v36 }
 0x213   :  { %v1989_v41 = vadd.f32 %v1973_v17, %v1781_v33  ;;  %v1933_v56 = vmul.f32 0.6931472, %v2979_v13  ;;  %v1823_v63 = vmax.f32 %v1791_v0, 0.0  ;;  %v4416_v33 = vld [vmem:[#allocation16 + $0x18] sm:$0xff]  ;;  %v1852_v17 = vsub.f32 0.0, %v1836_v42 }
 0x214   :  { %v1972_v46 = vmul.f32 %v1956_v51, %v1812_v37  ;;  %v1955_v49 = vadd.f32 %v1935_v27, %v1827_v38  ;;  %v1874_v62 = vmul.f32 1.442695, %v1853_v1  ;;  %v1835_v51 = vand.u32 2147483647, %v4416_v33  ;;  %v4419_v27 = vld [vmem:[#allocation16 + $0x10] sm:$0xff] }
 0x215   :  { %2416 = vmatpush.msrb.mxu3 %v1989_v41  ;;  %v1954_v30 = vadd.f32 %v1933_v56, %v1826_v22  ;;  %v1807_v41 = vld [vmem:[#allocation18 + $0x38] sm:$0xff]  ;;  %v1822_v11 = vmax.f32 %v4407_v7, 0.0 }
 0x216   :  { %v1988_v54 = vadd.f32 %v1972_v46, %v1780_v48  ;;  %v2981_v44 = vpop.eup %2980  ;;  %v1971_v60 = vmul.f32 %v1955_v49, %v1811_v45  ;;  %v1872_v46 = vmul.f32 1.442695, %v1852_v17  ;;  %v1851_v45 = vsub.f32 0.0, %v1835_v51 }
 0x217   :  { %v1931_v31 = vmul.f32 0.6931472, %v2981_v44  ;;  %v1970_v40 = vmul.f32 %v1954_v30, %v1810_v3  ;;  %v2983_v43 = vpop.eup %2982  ;;  %v1775_v3 = vld [vmem:[#allocation15 + $0x38] sm:$0xff] }
 0x218   :  { %2417 = vmatpush.msrb.mxu3 %v1988_v54  ;;  %v1987_v19 = vadd.f32 %v1971_v60, %v1779_v35  ;;  %v1904_v47 = vadd.f32 1.0, %v2983_v43  ;;  %v2985_v18 = vpop.eup %2984  ;;  %v1834_v54 = vand.u32 2147483647, %v4419_v27  ;;  %v4422_v35 = vld [vmem:[#allocation16 + $0x8] sm:$0xff]  ;;  %v1870_v44 = vmul.f32 1.442695, %v1851_v45 }
 0x219   :  { %v1953_v61 = vadd.f32 %v1931_v31, %v1825_v20  ;;  %v1986_v10 = vadd.f32 %v1970_v40, %v1778_v58  ;;  %v1903_v16 = vadd.f32 1.0, %v2985_v18  ;;  %v1833_v58 = vand.u32 2147483647, %v4422_v35  ;;  %v4425_v31 = vld [vmem:[#allocation16] sm:$0xff] }
 0x21a   :  { %2418 = vmatpush.msrb.mxu3 %v1987_v19  ;;  %2986 = vlog2.f32 %v1904_v47  ;;  %v1850_v30 = vsub.f32 0.0, %v1834_v54  ;;  %v1832_v40 = vand.u32 2147483647, %v4425_v31  ;;  %v1803_v54 = vld [vmem:[#allocation18 + $0x18] sm:$0xff] }
 0x21b   :  { %v1969_v34 = vmul.f32 %v1953_v61, %v1809_v5  ;;  %2988 = vlog2.f32 %v1903_v16 }
 0x21c   :  { %2419 = vmatpush.msrb.mxu3 %v1986_v10  ;;  %2990 = vpow2.f32 %v1760_v57  ;;  %v1868_v61 = vmul.f32 1.442695, %v1850_v30  ;;  %v1849_v10 = vsub.f32 0.0, %v1833_v58  ;;  %v1821_v57 = vmax.f32 %v4410_v32, 0.0  ;;  %v1773_v32 = vld [vmem:[#allocation15 + $0x28] sm:$0xff] }
 0x21d   :  { %v1985_v50 = vadd.f32 %v1969_v34, %v1777_v53  ;;  %2992 = vpow2.f32 %v1876_v23  ;;  %v1848_v34 = vsub.f32 0.0, %v1832_v40 }
 0x21e   :  { %2994 = vpow2.f32 %v1874_v62  ;;  %v1866_v24 = vmul.f32 1.442695, %v1849_v10  ;;  %v1816_v10 = vmax.f32 %v4425_v31, 0.0 }
 0x21f   :  { %2420 = vmatpush.msrb.mxu3 %v1985_v50  ;;  %2996 = vpow2.f32 %v1872_v46  ;;  %v1864_v9 = vmul.f32 1.442695, %v1848_v34 }
 0x220   :  { %v2987_v39 = vpop.eup %2986 }
 0x221   :  { %v1929_v52 = vmul.f32 0.6931472, %v2987_v39  ;;  %v2989_v37 = vpop.eup %2988 }
 0x222   :  { %v1927_v48 = vmul.f32 0.6931472, %v2989_v37  ;;  %v2991_v22 = vpop.eup %2990 }
 0x223   :  { %v1952_v12 = vadd.f32 %v1929_v52, %v1824_v15  ;;  %v2993_v49 = vpop.eup %2992  ;;  %v1762_v19 = vadd.f32 1.0, %v2991_v22  ;;  %v1757_v52 = vmax.f32 %v4404_v4, 0.0  ;;  %v1804_v22 = vld [vmem:[#allocation18 + $0x20] sm:$0xff] }
 0x224   :  { %v1951_v56 = vadd.f32 %v1927_v48, %v1823_v63  ;;  %v1902_v20 = vadd.f32 1.0, %v2993_v49  ;;  %v2995_v53 = vpop.eup %2994  ;;  %v1820_v63 = vmax.f32 %v4413_v59, 0.0  ;;  %v1819_v48 = vmax.f32 %v4416_v33, 0.0  ;;  %v1756_v59 = vld [vmem:[#allocation13] sm:$0x1] }
 0x225   :  { %v1968_v38 = vmul.f32 %v1952_v12, %v1808_v26  ;;  %v1901_v50 = vadd.f32 1.0, %v2995_v53  ;;  %v2997_v14 = vpop.eup %2996  ;;  %v1805_v26 = vld [vmem:[#allocation18 + $0x28] sm:$0xff]  ;;  %v1818_v49 = vmax.f32 %v4419_v27, 0.0  ;;  %v1771_v33 = vld [vmem:[#allocation15 + $0x18] sm:$0xff] }
 0x226   :  { %v1967_v60 = vmul.f32 %v1951_v56, %v1807_v41  ;;  %2998 = vlog2.f32 %v1902_v20  ;;  %v1900_v0 = vadd.f32 1.0, %v2997_v14  ;;  %v1772_v56 = vld [vmem:[#allocation15 + $0x20] sm:$0xff]  ;;  %v1754_v53 = vld [vmem:[#allocation10] sm:$0x1]  ;;  %v1801_v14 = vld [vmem:[#allocation18 + $0x8] sm:$0xff] }
 0x227   :  { %v1984_v13 = vadd.f32 %v1968_v38, %v1776_v25  ;;  %3000 = vpow2.f32 %v1870_v44 }
 0x228   :  { %v1983_v5 = vadd.f32 %v1967_v60, %v1775_v3  ;;  %3002 = vpow2.f32 %v1868_v61  ;;  %v1817_v60 = vmax.f32 %v4422_v35, 0.0 }
 0x229   :  { %2421 = vmatpush.msrb.mxu3 %v1984_v13  ;;  %3004 = vlog2.f32 %v1762_v19  ;;  %v1802_v19 = vld [vmem:[#allocation18 + $0x10] sm:$0xff] }
 0x22a   :  { %3006 = vlog2.f32 %v1901_v50  ;;  %v1770_v50 = vld [vmem:[#allocation15 + $0x10] sm:$0xff] }
 0x22b   :  { %2422 = vmatpush.msrb.mxu3 %v1983_v5  ;;  %3008 = vpow2.f32 %v1866_v24 }
 0x22c   :  { %v2999_v21 = vpop.eup %2998  ;;  %3010 = vlog2.f32 %v1900_v0  ;;  %v1769_v0 = vld [vmem:[#allocation15 + $0x8] sm:$0xff] }
 0x22d   :  { %v3001_v55 = vpop.eup %3000  ;;  %v1925_v2 = vmul.f32 0.6931472, %v2999_v21  ;;  %3012 = vpow2.f32 %v1864_v9  ;;  %v1800_v21 = vld [vmem:[#allocation18] sm:$0xff] }
 0x22e   :  { %v1899_v43 = vadd.f32 1.0, %v3001_v55  ;;  %v3003_v47 = vpop.eup %3002 }
 0x22f   :  { %v1950_v28 = vadd.f32 %v1925_v2, %v1822_v11  ;;  %v3005_v18 = vpop.eup %3004  ;;  %v1898_v16 = vadd.f32 1.0, %v3003_v47 }
 0x230   :  { %3014 = vlog2.f32 %v1899_v43  ;;  %v3007_v29 = vpop.eup %3006  ;;  %v1764_v42 = vmul.f32 0.6931472, %v3005_v18  ;;  %v1768_v43 = vld [vmem:[#allocation15] sm:$0xff] }
 0x231   :  { %v1966_v7 = vmul.f32 %v1950_v28, %v1806_v8  ;;  %v3009_v15 = vpop.eup %3008  ;;  %v1923_v39 = vmul.f32 0.6931472, %v3007_v29  ;;  %3016 = vlog2.f32 %v1898_v16  ;;  %v4439_v29 = vld [vmem:[#allocation25 + $0x70] sm:$0xff] }
 0x232   :  { %v3011_v23 = vpop.eup %3010  ;;  %v1897_v12 = vadd.f32 1.0, %v3009_v15  ;;  %v1765_v41 = vadd.f32 %v1764_v42, %v1757_v52  ;;  %v4442_v15 = vld [vmem:[#allocation25 + $0x68] sm:$0xff] }
 0x233   :  { %v1982_v36 = vadd.f32 %v1966_v7, %v1774_v6  ;;  %v3013_v1 = vpop.eup %3012  ;;  %v1949_v25 = vadd.f32 %v1923_v39, %v1821_v57  ;;  %v1921_v37 = vmul.f32 0.6931472, %v3011_v23  ;;  %v4436_v57 = vld [vmem:[#allocation25 + $0x78] sm:$0xff]  ;;  %v2084_v7 = vand.u32 2147483647, %v4439_v29 }
 0x234   :  { %3018 = vlog2.f32 %v1897_v12  ;;  %v1896_v38 = vadd.f32 1.0, %v3013_v1  ;;  %v1766_v5 = vmul.f32 %v1765_v41, %v1756_v59  ;;  %v2085_v16 = vand.u32 2147483647, %v4436_v57  ;;  %v4454_v41 = vld [vmem:[#allocation25 + $0x48] sm:$0xff] }
 0x235   :  { %2423 = vmatpush.msrb.mxu3 %v1982_v36  ;;  %v1965_v17 = vmul.f32 %v1949_v25, %v1805_v26  ;;  %v1948_v51 = vadd.f32 %v1921_v37, %v1820_v63  ;;  %v2083_v52 = vand.u32 2147483647, %v4442_v15  ;;  %v4445_v36 = vld [vmem:[#allocation25 + $0x60] sm:$0xff]  ;;  %v2100_v12 = vsub.f32 0.0, %v2084_v7  ;;  %v4448_v63 = vld [vmem:[#allocation25 + $0x58] sm:$0xff] }
 0x236   :  { %v3015_v62 = vpop.eup %3014  ;;  %3020 = vlog2.f32 %v1896_v38  ;;  %v1767_v55 = vadd.f32 %v1766_v5, %v1754_v53  ;;  %v2101_v23 = vsub.f32 0.0, %v2085_v16  ;;  %v2082_v1 = vand.u32 2147483647, %v4445_v36 }
 0x237   :  { %v1919_v4 = vmul.f32 0.6931472, %v3015_v62  ;;  %v3017_v13 = vpop.eup %3016  ;;  %v1981_v46 = vadd.f32 %v1965_v17, %v1773_v32  ;;  %v1964_v45 = vmul.f32 %v1948_v51, %v1804_v22  ;;  %v2099_v25 = vsub.f32 0.0, %v2083_v52  ;;  %v4451_v51 = vld [vmem:[#allocation25 + $0x50] sm:$0xff] }
 0x238   :  { %v1917_v20 = vmul.f32 0.6931472, %v3017_v13  ;;  %v2247_v31 = vperm.slane %v1767_v55, 0  ;;  %v2132_v42 = vmul.f32 1.442695, %v2101_v23  ;;  %v2098_v32 = vsub.f32 0.0, %v2082_v1 }
 0x239   :  { %v1947_v3 = vadd.f32 %v1919_v4, %v1819_v48  ;;  %2424 = vmatpush.msrb.mxu3 %v1981_v46  ;;  %v1980_v44 = vadd.f32 %v1964_v45, %v1772_v56  ;;  %v2130_v37 = vmul.f32 1.442695, %v2100_v12  ;;  %v2081_v38 = vand.u32 2147483647, %v4448_v63  ;;  %v4468_v55 = vld [vmem:[#allocation25 + $0x28] sm:$0xff] }
 0x23a   :  { %v3019_v30 = vpop.eup %3018  ;;  %v1946_v40 = vadd.f32 %v1917_v20, %v1818_v49  ;;  %3022 = vpow2.f32 %v2132_v42  ;;  %v2128_v17 = vmul.f32 1.442695, %v2099_v25  ;;  %v2126_v22 = vmul.f32 1.442695, %v2098_v32 }
 0x23b   :  { %v1963_v58 = vmul.f32 %v1947_v3, %v1803_v54  ;;  %2425 = vmatpush.msrb.mxu3 %v1980_v44  ;;  %v1915_v61 = vmul.f32 0.6931472, %v3019_v30  ;;  %3024 = vpow2.f32 %v2130_v37  ;;  %v2097_v4 = vsub.f32 0.0, %v2081_v38  ;;  %v4457_v3 = vld [vmem:[#allocation25 + $0x40] sm:$0xff]  ;;  %v2053_v37 = vld [vmem:[#allocation27 + $0x78] sm:$0xff] }
 0x23c   :  { %v3021_v27 = vpop.eup %3020  ;;  %v1962_v24 = vmul.f32 %v1946_v40, %v1802_v19  ;;  %3026 = vpow2.f32 %v2128_v17  ;;  %v2080_v13 = vand.u32 2147483647, %v4451_v51  ;;  %v2079_v45 = vand.u32 2147483647, %v4454_v41 }
 0x23d   :  { %v1979_v34 = vadd.f32 %v1963_v58, %v1771_v33  ;;  %v1945_v9 = vadd.f32 %v1915_v61, %v1817_v60  ;;  %v1913_v11 = vmul.f32 0.6931472, %v3021_v27  ;;  %3028 = vpow2.f32 %v2126_v22  ;;  %v4460_v58 = vld [vmem:[#allocation25 + $0x38] sm:$0xff] }
 0x23e   :  { %v1978_v35 = vadd.f32 %v1962_v24, %v1770_v50  ;;  %v2124_v46 = vmul.f32 1.442695, %v2097_v4  ;;  %v2096_v59 = vsub.f32 0.0, %v2080_v13  ;;  %v2095_v54 = vsub.f32 0.0, %v2079_v45  ;;  %v4463_v50 = vld [vmem:[#allocation25 + $0x30] sm:$0xff] }
 0x23f   :  { %2426 = vmatpush.msrb.mxu3 %v1979_v34  ;;  %v1961_v2 = vmul.f32 %v1945_v9, %v1801_v14  ;;  %v1944_v8 = vadd.f32 %v1913_v11, %v1816_v10  ;;  %v2078_v60 = vand.u32 2147483647, %v4457_v3  ;;  %v2077_v34 = vand.u32 2147483647, %v4460_v58  ;;  %v2052_v4 = vld [vmem:[#allocation27 + $0x70] sm:$0xff] }
 0x240   :  { %3030 = vpow2.f32 %v2124_v46  ;;  %v3023_v20 = vpop.eup %3022  ;;  %v2122_v44 = vmul.f32 1.442695, %v2096_v59  ;;  %v2120_v53 = vmul.f32 1.442695, %v2095_v54  ;;  %v2069_v24 = vmax.f32 %v4436_v57, 0.0  ;;  %v2021_v59 = vld [vmem:[#allocation24 + $0x78] sm:$0xff] }
 0x241   :  { %2427 = vmatpush.msrb.mxu3 %v1978_v35  ;;  %v1977_v47 = vadd.f32 %v1961_v2, %v1769_v0  ;;  %v1960_v28 = vmul.f32 %v1944_v8, %v1800_v21  ;;  %v3025_v30 = vpop.eup %3024  ;;  %v2149_v33 = vadd.f32 1.0, %v3023_v20  ;;  %v2094_v61 = vsub.f32 0.0, %v2078_v60  ;;  %v2051_v54 = vld [vmem:[#allocation27 + $0x68] sm:$0xff]  ;;  %v2020_v60 = vld [vmem:[#allocation24 + $0x70] sm:$0xff] }
 0x242   :  { %v3027_v19 = vpop.eup %3026  ;;  %v2148_v5 = vadd.f32 1.0, %v3025_v30  ;;  %3032 = vpow2.f32 %v2122_v44  ;;  %v2068_v14 = vmax.f32 %v4439_v29, 0.0  ;;  %v2093_v0 = vsub.f32 0.0, %v2077_v34 }
 0x243   :  { %2428 = vmatpush.msrb.mxu3 %v1977_v47  ;;  %v1976_v18 = vadd.f32 %v1960_v28, %v1768_v43  ;;  %v3029_v10 = vpop.eup %3028  ;;  %3034 = vlog2.f32 %v2149_v33  ;;  %v2147_v27 = vadd.f32 1.0, %v3027_v19  ;;  %v2118_v35 = vmul.f32 1.442695, %v2094_v61  ;;  %v2050_v33 = vld [vmem:[#allocation27 + $0x60] sm:$0xff] }
 0x244   :  { %3036 = vlog2.f32 %v2148_v5  ;;  %v2146_v9 = vadd.f32 1.0, %v3029_v10  ;;  %v2076_v21 = vand.u32 2147483647, %v4463_v50  ;;  %v2067_v8 = vmax.f32 %v4442_v15, 0.0  ;;  %v2019_v10 = vld [vmem:[#allocation24 + $0x68] sm:$0xff] }
 0x245   :  { %2429 = vmatpush.msrb.mxu3 %v1976_v18  ;;  %3038 = vlog2.f32 %v2147_v27  ;;  %v2075_v47 = vand.u32 2147483647, %v4468_v55  ;;  %v2066_v28 = vmax.f32 %v4445_v36, 0.0  ;;  %v2065_v16 = vmax.f32 %v4448_v63, 0.0 }
 0x246   :  { %v3031_v11 = vpop.eup %3030  ;;  %3040 = vlog2.f32 %v2146_v9  ;;  %v2092_v18 = vsub.f32 0.0, %v2076_v21  ;;  %v2064_v63 = vmax.f32 %v4451_v51, 0.0 }
 0x247   :  { %v2287_v6 = vpop.f32.mrf.mxu0  ;;  %v2145_v43 = vadd.f32 1.0, %v3031_v11  ;;  %3042 = vpow2.f32 %v2120_v53  ;;  %v2091_v29 = vsub.f32 0.0, %v2075_v47 }
 0x248   :  { %v2288_v39 = vadd.f32 %v2287_v6, %v2247_v31  ;;  %v2116_v31 = vmul.f32 1.442695, %v2093_v0  ;;  %v4473_v6 = vld [vmem:[#allocation25 + $0x20] sm:$0xff]  ;;  %v3033_v57 = vpop.eup %3032  ;;  %v2114_v52 = vmul.f32 1.442695, %v2092_v18 }
 0x249   :  { %3044 = vlog2.f32 %v2145_v43  ;;  %v2074_v7 = vand.u32 2147483647, %v4473_v6  ;;  %v2144_v23 = vadd.f32 1.0, %v3033_v57  ;;  %v2112_v1 = vmul.f32 1.442695, %v2091_v29  ;;  %v2017_v29 = vld [vmem:[#allocation24 + $0x58] sm:$0xff] }
 0x24a   :  { %3046 = vpow2.f32 %v2118_v35 }
 0x24b   :  { %3048 = vpow2.f32 %v2116_v31  ;;  %v2090_v42 = vsub.f32 0.0, %v2074_v7 }
 0x24c   :  { %v2307_v26 = vpop.f32.mrf.mxu1  ;;  %3050 = vlog2.f32 %v2144_v23 }
 0x24d   :  { %v2308_v62 = vadd.f32 %v2307_v26, %v2288_v39  ;;  %v3035_v39 = vpop.eup %3034  ;;  %v4477_v26 = vld [vmem:[#allocation25 + $0x18] sm:$0xff]  ;;  %3052 = vpow2.f32 %v2114_v52  ;;  %v2110_v46 = vmul.f32 1.442695, %v2090_v42  ;;  %v2063_v42 = vmax.f32 %v4454_v41, 0.0 }
 0x24e   :  { %v3037_v36 = vpop.eup %3036  ;;  %v2181_v12 = vmul.f32 0.6931472, %v3035_v39  ;;  %v2073_v38 = vand.u32 2147483647, %v4477_v26  ;;  %3054 = vpow2.f32 %v2112_v1  ;;  %v2048_v39 = vld [vmem:[#allocation27 + $0x50] sm:$0xff]  ;;  %v2061_v41 = vmax.f32 %v4460_v58, 0.0 }
 0x24f   :  { %v3039_v25 = vpop.eup %3038  ;;  %v2179_v32 = vmul.f32 0.6931472, %v3037_v36  ;;  %3056 = vpow2.f32 %v2110_v46 }
 0x250   :  { %v2197_v22 = vadd.f32 %v2181_v12, %v2069_v24  ;;  %v2177_v13 = vmul.f32 0.6931472, %v3039_v25  ;;  %v2089_v23 = vsub.f32 0.0, %v2073_v38  ;;  %v2062_v38 = vmax.f32 %v4457_v3, 0.0 }
 0x252   :  { %v2213_v51 = vmul.f32 %v2197_v22, %v2053_v37  ;;  %v2195_v30 = vadd.f32 %v2177_v13, %v2067_v8  ;;  %v2108_v37 = vmul.f32 1.442695, %v2089_v23 }
 0x254   :  { %v2229_v24 = vadd.f32 %v2213_v51, %v2021_v59  ;;  %v2211_v9 = vmul.f32 %v2195_v30, %v2051_v54  ;;  %v2046_v59 = vld [vmem:[#allocation27 + $0x40] sm:$0xff]  ;;  %v2059_v51 = vmax.f32 %v4468_v55, 0.0 }
 0x255   :  { %v2014_v30 = vld [vmem:[#allocation24 + $0x40] sm:$0xff] }
 0x256   :  { %2438 = vmatpush.msra.mxu2 %v2229_v24  ;;  %v2227_v31 = vadd.f32 %v2211_v9, %v2019_v10  ;;  %v2043_v9 = vld [vmem:[#allocation27 + $0x28] sm:$0xff] }
 0x261   :  { %v2327_v48 = vpop.f32.mrf.mxu2 }
 0x262   :  { %v2328_v49 = vadd.f32 %v2327_v48, %v2308_v62  ;;  %v3041_v62 = vpop.eup %3040 }
 0x263   :  { %v3043_v45 = vpop.eup %3042  ;;  %v2175_v20 = vmul.f32 0.6931472, %v3041_v62 }
 0x264   :  { %v3045_v44 = vpop.eup %3044  ;;  %v2143_v19 = vadd.f32 1.0, %v3043_v45 }
 0x265   :  { %v2194_v27 = vadd.f32 %v2175_v20, %v2066_v28  ;;  %v2173_v53 = vmul.f32 0.6931472, %v3045_v44 }
 0x266   :  { %3058 = vlog2.f32 %v2143_v19 }
 0x267   :  { %v2210_v8 = vmul.f32 %v2194_v27, %v2050_v33  ;;  %v2193_v43 = vadd.f32 %v2173_v53, %v2065_v16  ;;  %v2016_v16 = vld [vmem:[#allocation24 + $0x50] sm:$0xff]  ;;  %v2045_v33 = vld [vmem:[#allocation27 + $0x38] sm:$0xff] }
 0x268   :  { %v2044_v27 = vld [vmem:[#allocation27 + $0x30] sm:$0xff] }
 0x26f   :  { %v2347_v56 = vpop.f32.mrf.mxu3 }
 0x270   :  { %v2348_v40 = vadd.f32 %v2347_v56, %v2328_v49  ;;  %v2196_v56 = vadd.f32 %v2179_v32, %v2068_v14  ;;  %v2049_v14 = vld [vmem:[#allocation27 + $0x58] sm:$0xff] }
 0x271   :  { %v2209_v7 = vmul.f32 %v2193_v43, %v2049_v14 }
 0x272   :  { %v2212_v61 = vmul.f32 %v2196_v56, %v2052_v4  ;;  %v2047_v4 = vld [vmem:[#allocation27 + $0x48] sm:$0xff]  ;;  %v2060_v56 = vmax.f32 %v4463_v50, 0.0 }
 0x273   :  { %v2225_v62 = vadd.f32 %v2209_v7, %v2017_v29 }
 0x274   :  { %v2228_v21 = vadd.f32 %v2212_v61, %v2020_v60 }
 0x276   :  { %2439 = vmatpush.msra.mxu2 %v2228_v21  ;;  %v2042_v21 = vld [vmem:[#allocation27 + $0x20] sm:$0xff] }
 0x278   :  { %2440 = vmatpush.msra.mxu2 %v2227_v31 }
 0x27e   :  { %v2407_v48 = vpop.f32.mrf.mxu2 }
 0x284   :  { %v2367_v2 = vpop.f32.mrf.mxu0 }
 0x285   :  { %v2368_v15 = vadd.f32 %v2367_v2, %v2348_v40  ;;  %v3047_v40 = vpop.eup %3046  ;;  %v2018_v2 = vld [vmem:[#allocation24 + $0x60] sm:$0xff] }
 0x286   :  { %v3049_v34 = vpop.eup %3048  ;;  %v2142_v11 = vadd.f32 1.0, %v3047_v40  ;;  %v2226_v36 = vadd.f32 %v2210_v8, %v2018_v2  ;;  %v2058_v40 = vmax.f32 %v4473_v6, 0.0  ;;  %v2011_v6 = vld [vmem:[#allocation24 + $0x28] sm:$0xff] }
 0x287   :  { %v3051_v35 = vpop.eup %3050  ;;  %v2141_v57 = vadd.f32 1.0, %v3049_v34  ;;  %v2013_v34 = vld [vmem:[#allocation24 + $0x38] sm:$0xff] }
 0x288   :  { %v3053_v47 = vpop.eup %3052  ;;  %v2171_v18 = vmul.f32 0.6931472, %v3051_v35  ;;  %3060 = vlog2.f32 %v2142_v11  ;;  %2441 = vmatpush.msra.mxu2 %v2226_v36  ;;  %v2012_v35 = vld [vmem:[#allocation24 + $0x30] sm:$0xff] }
 0x289   :  { %v2387_v17 = vpop.f32.mrf.mxu1  ;;  %v3055_v28 = vpop.eup %3054  ;;  %3062 = vlog2.f32 %v2141_v57  ;;  %v2010_v57 = vld [vmem:[#allocation24 + $0x20] sm:$0xff] }
 0x28a   :  { %v2388_v49 = vadd.f32 %v2387_v17, %v2368_v15  ;;  %v2140_v15 = vadd.f32 1.0, %v3053_v47  ;;  %v3057_v52 = vpop.eup %3056  ;;  %v2192_v12 = vadd.f32 %v2171_v18, %v2064_v63  ;;  %v2139_v1 = vadd.f32 1.0, %v3055_v28  ;;  %2442 = vmatpush.msra.mxu2 %v2225_v62 }
 0x28b   :  { %v2138_v25 = vadd.f32 1.0, %v3057_v52  ;;  %v3059_v32 = vpop.eup %3058  ;;  %v2041_v52 = vld [vmem:[#allocation27 + $0x18] sm:$0xff] }
 0x28c   :  { %v2408_v5 = vadd.f32 %v2407_v48, %v2388_v49  ;;  %3064 = vlog2.f32 %v2140_v15  ;;  %v2208_v17 = vmul.f32 %v2192_v12, %v2048_v39  ;;  %v2169_v48 = vmul.f32 0.6931472, %v3059_v32  ;;  %v2015_v49 = vld [vmem:[#allocation24 + $0x48] sm:$0xff]  ;;  %v2009_v12 = vld [vmem:[#allocation24 + $0x18] sm:$0xff] }
 0x28d   :  { %3066 = vlog2.f32 %v2139_v1  ;;  %v2057_v39 = vmax.f32 %v4477_v26, 0.0  ;;  %v1993_v26 = vld [vmem:[#allocation21] sm:$0x1] }
 0x28e   :  { %v2410_v0 = vmax.f32 %v2408_v5, 0.0  ;;  %3068 = vlog2.f32 %v2138_v25  ;;  %v3061_v22 = vpop.eup %3060  ;;  %v2224_v63 = vadd.f32 %v2208_v17, %v2016_v16  ;;  %v2191_v13 = vadd.f32 %v2169_v48, %v2063_v42  ;;  %v2024_v42 = vld [vmem:[#allocation25 + $0x10] sm:$0xff]  ;;  %v2022_v17 = vld [vmem:[#allocation25] sm:$0xff] }
 0x28f   :  { %3070 = vpow2.f32 %v2108_v37  ;;  %v2167_v46 = vmul.f32 0.6931472, %v3061_v22  ;;  %v3063_v45 = vpop.eup %3062  ;;  %v2072_v25 = vand.u32 2147483647, %v2024_v42  ;;  %v2023_v37 = vld [vmem:[#allocation25 + $0x8] sm:$0xff] }
 0x290   :  { %2430 = vmatmul.f32.vlgmr.msrb.gmra.mxu3 %v2410_v0  ;;  %v2207_v20 = vmul.f32 %v2191_v13, %v2047_v4  ;;  %v2165_v3 = vmul.f32 0.6931472, %v3063_v45  ;;  %2443 = vmatpush.msra.mxu2 %v2224_v63  ;;  %v2071_v62 = vand.u32 2147483647, %v2023_v37  ;;  %v2070_v22 = vand.u32 2147483647, %v2022_v17 }
 0x291   :  { %v2190_v44 = vadd.f32 %v2167_v46, %v2062_v38  ;;  %v2088_v32 = vsub.f32 0.0, %v2072_v25  ;;  %v1996_v46 = vand.u32 2147483647, %v1993_v26 }
 0x292   :  { %v3065_v54 = vpop.eup %3064  ;;  %v2223_v5 = vadd.f32 %v2207_v20, %v2015_v49  ;;  %v2189_v10 = vadd.f32 %v2165_v3, %v2061_v41  ;;  %v2087_v38 = vsub.f32 0.0, %v2071_v62  ;;  %v2086_v4 = vsub.f32 0.0, %v2070_v22  ;;  %v2230_v22 = vld [vmem:[#allocation28] sm:$0x1] }
 0x293   :  { %v3067_v60 = vpop.eup %3066  ;;  %v2163_v19 = vmul.f32 0.6931472, %v3065_v54  ;;  %v2206_v61 = vmul.f32 %v2190_v44, %v2046_v59  ;;  %v2106_v48 = vmul.f32 1.442695, %v2088_v32  ;;  %v1997_v45 = vsub.f32 0.0, %v1996_v46 }
 0x294   :  { %v3069_v58 = vpop.eup %3068  ;;  %v2161_v53 = vmul.f32 0.6931472, %v3067_v60  ;;  %2444 = vmatpush.msra.mxu2 %v2223_v5  ;;  %v2205_v11 = vmul.f32 %v2189_v10, %v2045_v33  ;;  %v2104_v63 = vmul.f32 1.442695, %v2087_v38  ;;  %v2102_v13 = vmul.f32 1.442695, %v2086_v4 }
 0x295   :  { %v3071_v50 = vpop.eup %3070  ;;  %v2188_v24 = vadd.f32 %v2163_v19, %v2060_v56  ;;  %v2159_v14 = vmul.f32 0.6931472, %v3069_v58  ;;  %v2222_v55 = vadd.f32 %v2206_v61, %v2014_v30  ;;  %v1998_v20 = vmul.f32 1.442695, %v1997_v45  ;;  %v2040_v5 = vld [vmem:[#allocation27 + $0x10] sm:$0xff] }
 0x296   :  { %v2187_v0 = vadd.f32 %v2161_v53, %v2059_v51  ;;  %v2137_v2 = vadd.f32 1.0, %v3071_v50  ;;  %v2221_v47 = vadd.f32 %v2205_v11, %v2013_v34  ;;  %v2056_v51 = vmax.f32 %v2024_v42, 0.0  ;;  %v2008_v34 = vld [vmem:[#allocation24 + $0x10] sm:$0xff]  ;;  %v2007_v11 = vld [vmem:[#allocation24 + $0x8] sm:$0xff] }
 0x297   :  { %v2204_v8 = vmul.f32 %v2188_v24, %v2044_v27  ;;  %v2186_v43 = vadd.f32 %v2159_v14, %v2058_v40  ;;  %2445 = vmatpush.msra.mxu2 %v2222_v55  ;;  %v2055_v19 = vmax.f32 %v2023_v37, 0.0  ;;  %v2054_v27 = vmax.f32 %v2022_v17, 0.0  ;;  %v2039_v24 = vld [vmem:[#allocation27 + $0x8] sm:$0xff] }
 0x298   :  { %v2203_v31 = vmul.f32 %v2187_v0, %v2043_v9  ;;  %3072 = vlog2.f32 %v2137_v2 }
 0x299   :  { %v2220_v18 = vadd.f32 %v2204_v8, %v2012_v35  ;;  %v2202_v28 = vmul.f32 %v2186_v43, %v2042_v21  ;;  %2446 = vmatpush.msra.mxu2 %v2221_v47  ;;  %3074 = vpow2.f32 %v2106_v48  ;;  %v2038_v35 = vld [vmem:[#allocation27] sm:$0xff]  ;;  %v1995_v47 = vmax.f32 %v1993_v26, 0.0 }
 0x29a   :  { %v2219_v29 = vadd.f32 %v2203_v31, %v2011_v6  ;;  %3076 = vpow2.f32 %v2104_v63  ;;  %v2006_v8 = vld [vmem:[#allocation24] sm:$0xff] }
 0x29b   :  { %2447 = vmatpush.msra.mxu2 %v2220_v18  ;;  %v2218_v7 = vadd.f32 %v2202_v28, %v2010_v57  ;;  %3078 = vpow2.f32 %v2102_v13  ;;  %v1994_v57 = vld [vmem:[#allocation22] sm:$0x1]  ;;  %v2232_v48 = vld [vmem:[#allocation31] sm:$0x1] }
 0x29d   :  { %2448 = vmatpush.msra.mxu2 %v2219_v29  ;;  %v1992_v29 = vld [vmem:[#allocation19] sm:$0x1] }
 0x29e   :  { %v3073_v15 = vpop.eup %3072 }
 0x29f   :  { %v2157_v23 = vmul.f32 0.6931472, %v3073_v15  ;;  %2449 = vmatpush.msra.mxu2 %v2218_v7  ;;  %v3075_v41 = vpop.eup %3074 }
 0x2a0   :  { %v2136_v49 = vadd.f32 1.0, %v3075_v41  ;;  %v3077_v59 = vpop.eup %3076 }
 0x2a1   :  { %v2185_v36 = vadd.f32 %v2157_v23, %v2057_v39  ;;  %v2135_v56 = vadd.f32 1.0, %v3077_v59  ;;  %v3079_v54 = vpop.eup %3078 }
 0x2a2   :  { %3080 = vlog2.f32 %v2136_v49  ;;  %v2134_v44 = vadd.f32 1.0, %v3079_v54 }
 0x2a3   :  { %v2201_v1 = vmul.f32 %v2185_v36, %v2041_v52  ;;  %3082 = vlog2.f32 %v2135_v56  ;;  %v2231_v36 = vld [vmem:[#allocation30] sm:$0x1] }
 0x2a4   :  { %3084 = vlog2.f32 %v2134_v44  ;;  %v2233_v32 = vmax.f32 %v2231_v36, 0.0 }
 0x2a5   :  { %v2217_v16 = vadd.f32 %v2201_v1, %v2009_v12  ;;  %3086 = vpow2.f32 %v1998_v20  ;;  %v2234_v12 = vand.u32 2147483647, %v2231_v36 }
 0x2a7   :  { %2450 = vmatpush.msra.mxu2 %v2217_v16  ;;  %v2235_v1 = vsub.f32 0.0, %v2234_v12 }
 0x2a8   :  { %v3081_v3 = vpop.eup %3080 }
 0x2a9   :  { %v2155_v60 = vmul.f32 0.6931472, %v3081_v3  ;;  %v3083_v30 = vpop.eup %3082  ;;  %v2236_v16 = vmul.f32 1.442695, %v2235_v1 }
 0x2aa   :  { %v2153_v40 = vmul.f32 0.6931472, %v3083_v30  ;;  %v3085_v58 = vpop.eup %3084 }
 0x2ab   :  { %v2184_v33 = vadd.f32 %v2155_v60, %v2056_v51  ;;  %v2151_v53 = vmul.f32 0.6931472, %v3085_v58  ;;  %v3087_v50 = vpop.eup %3086 }
 0x2ac   :  { %v2183_v10 = vadd.f32 %v2153_v40, %v2055_v19  ;;  %v2000_v0 = vadd.f32 1.0, %v3087_v50 }
 0x2ad   :  { %v2200_v61 = vmul.f32 %v2184_v33, %v2040_v5  ;;  %v2182_v55 = vadd.f32 %v2151_v53, %v2054_v27 }
 0x2ae   :  { %v2199_v14 = vmul.f32 %v2183_v10, %v2039_v24  ;;  %3088 = vlog2.f32 %v2000_v0 }
 0x2af   :  { %v2216_v9 = vadd.f32 %v2200_v61, %v2008_v34  ;;  %v2198_v2 = vmul.f32 %v2182_v55, %v2038_v35  ;;  %3090 = vpow2.f32 %v2236_v16 }
 0x2b0   :  { %v2215_v21 = vadd.f32 %v2199_v14, %v2007_v11 }
 0x2b1   :  { %2451 = vmatpush.msra.mxu2 %v2216_v9  ;;  %v2214_v6 = vadd.f32 %v2198_v2, %v2006_v8 }
 0x2b3   :  { %2452 = vmatpush.msra.mxu2 %v2215_v21 }
 0x2b4   :  { %v3089_v43 = vpop.eup %3088 }
 0x2b5   :  { %2453 = vmatpush.msra.mxu2 %v2214_v6  ;;  %v2002_v31 = vmul.f32 0.6931472, %v3089_v43  ;;  %v3091_v42 = vpop.eup %3090 }
 0x2b6   :  { %v2238_v25 = vadd.f32 1.0, %v3091_v42 }
 0x2b7   :  { %v2003_v18 = vadd.f32 %v2002_v31, %v1995_v47 }
 0x2b8   :  { %3092 = vlog2.f32 %v2238_v25 }
 0x2b9   :  { %v2004_v28 = vmul.f32 %v2003_v18, %v1994_v57 }
 0x2bb   :  { %v2005_v7 = vadd.f32 %v2004_v28, %v1992_v29 }
 0x2bd   :  { %v2412_v39 = vperm.slane %v2005_v7, 0 }
 0x2be   :  { %v3093_v37 = vpop.eup %3092 }
 0x2bf   :  { %v2240_v62 = vmul.f32 0.6931472, %v3093_v37 }
 0x2c1   :  { %v2241_v17 = vadd.f32 %v2240_v62, %v2233_v32 }
 0x2c3   :  { %v2242_v38 = vmul.f32 %v2241_v17, %v2232_v48 }
 0x2c5   :  { %v2243_v26 = vadd.f32 %v2242_v38, %v2230_v22 }
 0x2c7   :  { %v2436_v63 = vperm.slane %v2243_v26, 0 }
 0x313   :  { %v2431_v15 = vpop.f32.mrf.mxu3 }
 0x314   :  { %v2432_v23 = vadd.f32 %v2431_v15, %v2412_v39 }
 0x316   :  { %v2434_v52 = vmax.f32 %v2432_v23, 0.0 }
 0x318   :  { %2454 = vmatmul.f32.vlgmr.msra.gmra.mxu2 %v2434_v52 }
 0x39b   :  { %v2455_v4 = vpop.f32.mrf.mxu2 }
 0x39c   :  { %v2456_v13 = vadd.f32 %v2455_v4, %v2436_v63 }
 0x39e   :  { %v2459_v46 = vsel %vm2458_vm1, %v2456_v13, -inf }
 0x39f   :  { %2460 = vmax.xlane.f32.xlu0 %v2459_v46 }
 0x412   :  { %v2461_v41 = vpop.xlane.xlu0 %2460 }
 0x413   :  { %v2462_v45 = vsub.f32 %v2456_v13, %v2461_v41 }
 0x415   :  { %v2463_v49 = vmul.f32 1.442695, %v2462_v45 }
 0x417   :  { %3094 = vpow2.f32 %v2463_v49 }
 0x41d   :  { %v3095_v59 = vpop.eup %3094 }
 0x41e   :  { %v2465_v56 = vsel %vm2458_vm1, %v3095_v59, 0.0 }
 0x41f   :  { %2466 = vadd.xlane.f32.xlu0 %v2465_v56 }
 0x492   :  { %v2467_v54 = vpop.xlane.xlu0 %2466 }
 0x493   :  { %3096 = vrcp.f32 %v2467_v54 }
 0x499   :  { %v3097_v20 = vpop.eup %3096 }
 0x49a   :  { %v2469_v44 = vmul.f32 %v3097_v20, %v3095_v59 }
 0x49c   :  { %2470 = vst [vmem:[#allocation33] sm:$0x3] %v2469_v44 }
 0x49d   :  { %2481 = dma.vmem_to_hbm [thread:$0]  %s2477_s23, 32, %s2479_s17, [#allocation6]  }
 0x49e   :  { %3588 = dma.done.wait [#allocation6], 32  }
 0x49f   :  { %3589 = vsyncadd [#allocation6], 4294967264 }
 0x4a0   :  { %2486 = vsyncpa [#allocation5], 1 }
 0x4a1   :  { %2487 = vsyncpa [#allocation8], 1 }
 0x4a2   :  { %2488 = vsyncpa [#allocation11], 1 }
 0x4a3   :  { %2489 = vsyncpa [#allocation14], 1 }
 0x4a4   :  { %2490 = vsyncpa [#allocation17], 1 }
 0x4a5   :  { %2491 = vsyncpa [#allocation20], 1 }
 0x4a6   :  { %2492 = vsyncpa [#allocation23], 1 }
 0x4a7   :  { %2493 = vsyncpa [#allocation26], 1 }
 0x4a8   :  { %2494 = vsyncpa [#allocation29], 1 }
 0x4a9   :  { %2495 = vsyncpa [#allocation32], 1 }
 0x4aa   :  { %2496 = vsyncpa [#allocation6], 1 }

</bundles_post_ra>
